<compile_context>
chip_gen: v5e
topology: v5e:2x2
jax: 0.10.0
libtpu: 0.0.40
codegen_flags: <defaults>
</compile_context>

<pallas_src>
import functools

import jax
import jax.numpy as jnp
from jax.experimental import pallas as pl
from jax.experimental.pallas import tpu as pltpu

EPS = 1e-6  # timm ViT/DeiT LayerNorm eps


# ----------------------------------------------------------------------------
# in-kernel helpers
# ----------------------------------------------------------------------------
def _layernorm(x, g, b):
    mu = jnp.mean(x, axis=-1, keepdims=True)
    var = jnp.mean((x - mu) ** 2, axis=-1, keepdims=True)
    return (x - mu) * jax.lax.rsqrt(var + EPS) * g + b


def _erf(z):
    # Abramowitz & Stegun 7.1.26 rational approximation (|err| <= 1.5e-7).
    # Uses only mul/add/div/exp/where -> guaranteed Mosaic lowering, and is
    # numerically indistinguishable (f32) from PyTorch's exact-erf GELU.
    p = jnp.float32(0.3275911)
    a1 = jnp.float32(0.254829592)
    a2 = jnp.float32(-0.284496736)
    a3 = jnp.float32(1.421413741)
    a4 = jnp.float32(-1.453152027)
    a5 = jnp.float32(1.061405429)
    az = jnp.abs(z)
    t = 1.0 / (1.0 + p * az)
    poly = ((((a5 * t + a4) * t + a3) * t + a2) * t + a1) * t
    r = 1.0 - poly * jnp.exp(-az * az)
    return jnp.where(z >= 0, r, -r)


def _gelu(x):
    # exact GELU (PyTorch nn.GELU default): 0.5 * x * (1 + erf(x / sqrt(2)))
    return 0.5 * x * (1.0 + _erf(x * jnp.float32(0.7071067811865476)))


# ----------------------------------------------------------------------------
# fused kernel: patch embed + depth x transformer block + final norm + head
# grid = (batch_tiles, depth); residual stream lives in VMEM scratch across depth
# ----------------------------------------------------------------------------
def _deit_fused_kernel(num_heads, bt, s_pad, s_real,
                       patches_ref, base_ref, pw_ref, ng_ref, nb_ref,
                       hw_ref, hb_ref,
                       ln1g_ref, ln1b_ref, wqkv_ref, bqkv_ref,
                       wpr_ref, bpr_ref,
                       ln2g_ref, ln2b_ref, w1_ref, b1_ref, w2_ref, b2_ref,
                       o_ref, x_vmem):
    d = pl.program_id(1)
    n_layers = pl.num_programs(1)

    D = x_vmem.shape[-1]
    H = num_heads
    hd = D // H
    scale = jnp.float32(1.0 / (hd ** 0.5))

    # ---- first layer prolog: patch embedding; cls/pos/patch-bias folded in base
    @pl.when(d == 0)
    def _():
        tok = jnp.dot(patches_ref[...], pw_ref[...],
                      preferred_element_type=jnp.float32)            # (Bt*S, D)
        x_vmem[...] = tok + base_ref[...]

    x = x_vmem[...]                                                   # (Bt*S, D) f32

    # ---- multi-head self-attention ----------------------------------------
    # fused QKV projection: one full-width matmul on the whole batch tile
    h = _layernorm(x, ln1g_ref[0], ln1b_ref[0]).astype(jnp.bfloat16)  # (Bt*S, D)
    qkv = (jnp.dot(h, wqkv_ref[0], preferred_element_type=jnp.float32)
           + bqkv_ref[0])                                             # (Bt*S, 3D)
    qkv = qkv.reshape(bt, s_pad, 3 * D).astype(jnp.bfloat16)

    # regroup heads with static slices + concatenation (group g = head*Bt + b)
    qs = [qkv[:, :, i * hd:(i + 1) * hd] for i in range(H)]
    ks = [qkv[:, :, D + i * hd: D + (i + 1) * hd] for i in range(H)]
    vs = [qkv[:, :, 2 * D + i * hd: 2 * D + (i + 1) * hd] for i in range(H)]
    q = jnp.concatenate(qs, axis=0)                                   # (Bt*H, S, hd)
    k = jnp.concatenate(ks, axis=0)
    v = jnp.concatenate(vs, axis=0)

    # scores contract on the last dim of both operands (no explicit transpose)
    logits = jnp.einsum('gqe,gke->gqk', q, k,
                        preferred_element_type=jnp.float32) * scale   # (G, S, S)
    if s_pad != s_real:                                               # mask pad keys
        kid = jax.lax.broadcasted_iota(jnp.int32, (1, 1, s_pad), 2)
        logits = jnp.where(kid < s_real, logits, jnp.float32(-1e30))
    logits = logits - jnp.max(logits, axis=-1, keepdims=True)
    p = jnp.exp(logits)
    p = p / jnp.sum(p, axis=-1, keepdims=True)                        # exact softmax

    ctx = jnp.einsum('gqk,gke->gqe', p.astype(jnp.bfloat16), v,
                     preferred_element_type=jnp.float32)              # (G, S, hd)
    # re-assemble (Bt, S, D) in head-major column order, then ONE proj matmul
    ctx = jnp.concatenate([ctx[i * bt:(i + 1) * bt] for i in range(H)],
                          axis=-1)                                    # (Bt, S, D)
    ctx = ctx.reshape(bt * s_pad, D).astype(jnp.bfloat16)
    attn = (jnp.dot(ctx, wpr_ref[0], preferred_element_type=jnp.float32)
            + bpr_ref[0])                                             # (Bt*S, D)
    x = x + attn

    # ---- MLP ----------------------------------------------------------------
    h2 = _layernorm(x, ln2g_ref[0], ln2b_ref[0]).astype(jnp.bfloat16)
    m = jnp.dot(h2, w1_ref[0], preferred_element_type=jnp.float32) + b1_ref[0]
    m = _gelu(m)
    m = jnp.dot(m.astype(jnp.bfloat16), w2_ref[0],
                preferred_element_type=jnp.float32) + b2_ref[0]
    x = x + m

    # residual stream stays resident in VMEM for the next layer
    x_vmem[...] = x

    # ---- final LayerNorm + cls pooling + classification head ---------------
    # (LN is per-token, so norm-then-pool == pool-then-norm for 'token' pooling)
    @pl.when(d == n_layers - 1)
    def _():
        cls = x.reshape(bt, s_pad, D)[:, 0:1, :].reshape(bt, D)       # (Bt, D)
        hc = _layernorm(cls, ng_ref[...], nb_ref[...]).astype(jnp.bfloat16)
        o_ref[...] = (jnp.dot(hc, hw_ref[...], preferred_element_type=jnp.float32)
                      + hb_ref[...])                                  # (Bt, NCp)


# ----------------------------------------------------------------------------
# wrapper: host-side layout plumbing + single pallas_call
# ----------------------------------------------------------------------------
def deit_forward(x_nchw, params, *, patch=4, num_heads=4, batch_tile=None):
    B, C, Hi, Wi = x_nchw.shape
    Gh, Gw = Hi // patch, Wi // patch
    N = Gh * Gw
    S = N + 1
    D = params["pos_embed"].shape[-1]
    K = C * patch * patch
    depth = params["wq"].shape[0]
    NC = params["head_w"].shape[-1]
    bf16 = jnp.bfloat16

    # padding for clean sublane / lane tiling
    S_pad = ((S + 7) // 8) * 8                       # sequence -> multiple of 8
    NC_pad = ((NC + 127) // 128) * 128               # classes  -> multiple of 128

    Bt = batch_tile if batch_tile is not None else min(B, 8)
    B_pad = ((B + Bt - 1) // Bt) * Bt
    nb = B_pad // Bt

    # extract non-overlapping patches, flatten in (C, ph, pw) order (Conv2d layout)
    xp = x_nchw.reshape(B, C, Gh, patch, Gw, patch)
    xp = xp.transpose(0, 2, 4, 1, 3, 5).reshape(B, N, K)
    # row 0 (cls position) and pad rows stay zero; cast to bf16 on the host
    patches = jnp.zeros((B_pad, S_pad, K), bf16)
    patches = patches.at[:B, 1:S, :].set(xp.astype(bf16))
    patches2 = patches.reshape(B_pad * S_pad, K)                       # (nb*Bt*S, K)

    # fold cls token, patch-embed bias and pos_embed into one constant slab
    base = jnp.concatenate(
        [params["cls_token"][0],
         jnp.broadcast_to(params["patch_b"].reshape(1, D), (N, D))], axis=0)
    base = base + params["pos_embed"][0]                               # (S, D)
    base = jnp.pad(base, ((0, S_pad - S), (0, 0)))                     # (S_pad, D)
    base = jnp.tile(base, (Bt, 1))                                     # (Bt*S_pad, D)

    # fused QKV weight/bias (columns: [q | k | v], head-major inside each third)
    wqkv = jnp.concatenate([params["wq"], params["wk"], params["wv"]],
                           axis=-1).astype(bf16)                       # (depth, D, 3D)
    bqkv = jnp.concatenate([params["bq"], params["bk"], params["bv"]],
                           axis=-1)                                    # (depth, 1, 3D)

    # lane-dense classification head (zero-padded classes, sliced off afterwards)
    head_w = jnp.zeros((D, NC_pad), jnp.float32).at[:, :NC].set(
        params["head_w"]).astype(bf16)
    head_b = jnp.zeros((1, NC_pad), jnp.float32).at[:, :NC].set(params["head_b"])

    inputs = [
        patches2, base,
        params["patch_w"].astype(bf16),
        params["norm_g"], params["norm_b"],
        head_w, head_b,
        # per-layer (leading depth axis), streamed & double-buffered by BlockSpec:
        params["ln1_g"], params["ln1_b"],
        wqkv, bqkv,
        params["wproj"].astype(bf16), params["bproj"],
        params["ln2_g"], params["ln2_b"],
        params["w1"].astype(bf16), params["b1"],
        params["w2"].astype(bf16), params["b2"],
    ]

    def const_spec(a):
        return pl.BlockSpec(a.shape, lambda b, d, _n=a.ndim: (0,) * _n)

    def layer_spec(a):
        return pl.BlockSpec((1,) + a.shape[1:],
                            lambda b, d, _n=a.ndim: (d,) + (0,) * (_n - 1))

    in_specs = ([pl.BlockSpec((Bt * S_pad, K), lambda b, d: (b, 0))]   # patches
                + [const_spec(a) for a in inputs[1:7]]                 # base + globals
                + [layer_spec(a) for a in inputs[7:]])                 # stacked layers

    out = pl.pallas_call(
        functools.partial(_deit_fused_kernel, num_heads, Bt, S_pad, S),
        out_shape=jax.ShapeDtypeStruct((B_pad, NC_pad), jnp.float32),
        grid=(nb, depth),
        in_specs=in_specs,
        out_specs=pl.BlockSpec((Bt, NC_pad), lambda b, d: (b, 0)),
        scratch_shapes=[pltpu.VMEM((Bt * S_pad, D), jnp.float32)],     # residual stream
        compiler_params=pltpu.CompilerParams(
            dimension_semantics=("parallel", "arbitrary"),
            # explicit VMEM budget (fits all of v5e/v6e/v7x physical VMEM);
            # raise toward ~100 MiB on v5e/v6e for full-size DeiT weights.
            vmem_limit_bytes=64 * 1024 * 1024),
    )(*inputs)
    return out[:B, :NC]


# ----------------------------------------------------------------------------
# deterministic parameter construction (torch-like logical layout)
# ----------------------------------------------------------------------------
def make_params(key, *, C=3, patch=4, D=32, depth=2, mlp_ratio=4, num_classes=10,
                num_patches=16):
    S = num_patches + 1
    Dm = mlp_ratio * D
    keys = list(jax.random.split(key, 16))
    kit = iter(keys)

    def nrm(shape, scale=0.02):
        return (scale * jax.random.normal(next(kit), shape)).astype(jnp.float32)

    p = {}
    # patch embed: Conv2d(C, D, kernel=patch, stride=patch) flattened to a matmul
    conv_w = nrm((D, C, patch, patch))
    p["patch_w"] = conv_w.reshape(D, C * patch * patch).T          # (K, D)
    p["patch_b"] = jnp.zeros((1, 1, D), jnp.float32)
    p["cls_token"] = nrm((1, 1, D))
    p["pos_embed"] = nrm((1, S, D))

    # transformer blocks, stacked with a leading depth axis
    p["ln1_g"] = jnp.ones((depth, 1, D), jnp.float32)
    p["ln1_b"] = jnp.zeros((depth, 1, D), jnp.float32)
    p["wq"] = nrm((depth, D, D))
    p["wk"] = nrm((depth, D, D))
    p["wv"] = nrm((depth, D, D))
    p["bq"] = jnp.zeros((depth, 1, D), jnp.float32)
    p["bk"] = jnp.zeros((depth, 1, D), jnp.float32)
    p["bv"] = jnp.zeros((depth, 1, D), jnp.float32)
    p["wproj"] = nrm((depth, D, D))
    p["bproj"] = jnp.zeros((depth, 1, D), jnp.float32)
    p["ln2_g"] = jnp.ones((depth, 1, D), jnp.float32)
    p["ln2_b"] = jnp.zeros((depth, 1, D), jnp.float32)
    p["w1"] = nrm((depth, D, Dm))
    p["b1"] = jnp.zeros((depth, 1, Dm), jnp.float32)
    p["w2"] = nrm((depth, Dm, D))
    p["b2"] = jnp.zeros((depth, 1, D), jnp.float32)

    # final norm + head (fc_norm = Identity, Linear(D, num_classes))
    p["norm_g"] = jnp.ones((1, D), jnp.float32)
    p["norm_b"] = jnp.zeros((1, D), jnp.float32)
    p["head_w"] = nrm((D, num_classes))
    p["head_b"] = jnp.zeros((1, num_classes), jnp.float32)
    return p


if __name__ == "__main__":
    B, C, H, W = 2, 3, 16, 16
    PATCH, D, HEADS, DEPTH, NC = 4, 32, 4, 2, 10
    N = (H // PATCH) * (W // PATCH)

    key = jax.random.PRNGKey(0)
    k_x, k_p = jax.random.split(key)
    x = jax.random.normal(k_x, (B, C, H, W), dtype=jnp.float32)
    params = make_params(k_p, C=C, patch=PATCH, D=D, depth=DEPTH,
                         num_classes=NC, num_patches=N)

    # pos_drop / attn / proj / mlp dropouts are identity in eval mode;
    # grad_checkpointing is a training-only no-op for this inference forward.
    fwd = jax.jit(functools.partial(deit_forward, patch=PATCH, num_heads=HEADS))
    out = jax.block_until_ready(fwd(x, params))
    assert out.shape == (B, NC), out.shape
    print("KERNEL_OK")
</pallas_src>

<mosaic_0001>
module attributes {stable_mosaic.version = 11 : i64} {
  func.func @_deit_fused_kernel(%arg0: i32, %arg1: i32, %arg2: memref<48x48xbf16, #tpu.memory_space<vmem>>, %arg3: memref<48x32xf32, #tpu.memory_space<vmem>>, %arg4: memref<48x32xbf16, #tpu.memory_space<vmem>>, %arg5: memref<1x32xf32, #tpu.memory_space<vmem>>, %arg6: memref<1x32xf32, #tpu.memory_space<vmem>>, %arg7: memref<32x128xbf16, #tpu.memory_space<vmem>>, %arg8: memref<1x128xf32, #tpu.memory_space<vmem>>, %arg9: memref<1x1x32xf32, #tpu.memory_space<vmem>>, %arg10: memref<1x1x32xf32, #tpu.memory_space<vmem>>, %arg11: memref<1x32x96xbf16, #tpu.memory_space<vmem>>, %arg12: memref<1x1x96xf32, #tpu.memory_space<vmem>>, %arg13: memref<1x32x32xbf16, #tpu.memory_space<vmem>>, %arg14: memref<1x1x32xf32, #tpu.memory_space<vmem>>, %arg15: memref<1x1x32xf32, #tpu.memory_space<vmem>>, %arg16: memref<1x1x32xf32, #tpu.memory_space<vmem>>, %arg17: memref<1x32x128xbf16, #tpu.memory_space<vmem>>, %arg18: memref<1x1x128xf32, #tpu.memory_space<vmem>>, %arg19: memref<1x128x32xbf16, #tpu.memory_space<vmem>>, %arg20: memref<1x1x32xf32, #tpu.memory_space<vmem>>, %arg21: memref<2x128xf32, #tpu.memory_space<vmem>>, %arg22: memref<48x32xf32, #tpu.memory_space<vmem>>) attributes {dimension_semantics = [#tpu.dimension_semantics<parallel>, #tpu.dimension_semantics<arbitrary>], iteration_bounds = array<i64: 1, 2>, scalar_prefetch = 0 : i64, scratch_operands = 1 : i64, tpu.core_type = #tpu.core_type<tc>, window_params = [{transform_indices = @transform_0, window_bounds = array<i64: 48, 48>}, {pipeline_mode = #tpu.pipeline_mode<synchronous>, transform_indices = @transform_1, window_bounds = array<i64: 48, 32>}, {pipeline_mode = #tpu.pipeline_mode<synchronous>, transform_indices = @transform_2, window_bounds = array<i64: 48, 32>}, {pipeline_mode = #tpu.pipeline_mode<synchronous>, transform_indices = @transform_3, window_bounds = array<i64: 1, 32>}, {pipeline_mode = #tpu.pipeline_mode<synchronous>, transform_indices = @transform_4, window_bounds = array<i64: 1, 32>}, {pipeline_mode = #tpu.pipeline_mode<synchronous>, transform_indices = @transform_5, window_bounds = array<i64: 32, 128>}, {pipeline_mode = #tpu.pipeline_mode<synchronous>, transform_indices = @transform_6, window_bounds = array<i64: 1, 128>}, {transform_indices = @transform_7, window_bounds = array<i64: 1, 1, 32>}, {transform_indices = @transform_8, window_bounds = array<i64: 1, 1, 32>}, {transform_indices = @transform_9, window_bounds = array<i64: 1, 32, 96>}, {transform_indices = @transform_10, window_bounds = array<i64: 1, 1, 96>}, {transform_indices = @transform_11, window_bounds = array<i64: 1, 32, 32>}, {transform_indices = @transform_12, window_bounds = array<i64: 1, 1, 32>}, {transform_indices = @transform_13, window_bounds = array<i64: 1, 1, 32>}, {transform_indices = @transform_14, window_bounds = array<i64: 1, 1, 32>}, {transform_indices = @transform_15, window_bounds = array<i64: 1, 32, 128>}, {transform_indices = @transform_16, window_bounds = array<i64: 1, 1, 128>}, {transform_indices = @transform_17, window_bounds = array<i64: 1, 128, 32>}, {transform_indices = @transform_18, window_bounds = array<i64: 1, 1, 32>}, {transform_indices = @transform_19, window_bounds = array<i64: 2, 128>}]} {
    %c0_i32 = arith.constant 0 : i32
    %0 = arith.cmpi eq, %arg1, %c0_i32 : i32
    %1 = arith.extui %0 : i1 to i32
    %c0_i32_0 = arith.constant 0 : i32
    %2 = arith.cmpi ne, %1, %c0_i32_0 : i32
    scf.if %2 {
      %c0_75 = arith.constant 0 : index
      %c0_76 = arith.constant 0 : index
      %178 = vector.load %arg2[%c0_75, %c0_76] : memref<48x48xbf16, #tpu.memory_space<vmem>>, vector<48x48xbf16>
      %c0_77 = arith.constant 0 : index
      %c0_78 = arith.constant 0 : index
      %179 = vector.load %arg4[%c0_77, %c0_78] : memref<48x32xbf16, #tpu.memory_space<vmem>>, vector<48x32xbf16>
      %cst_79 = arith.constant dense<0.000000e+00> : vector<48x32xf32>
      %180 = tpu.matmul %178, %179, %cst_79 {dimension_numbers = #tpu.dot_dimension_numbers<[1], [0], [0], [1], [0, 0, 1, 1], [], []>} : vector<48x48xbf16>, vector<48x32xbf16>, vector<48x32xf32> -> vector<48x32xf32>
      %c0_80 = arith.constant 0 : index
      %c0_81 = arith.constant 0 : index
      %181 = vector.load %arg3[%c0_80, %c0_81] : memref<48x32xf32, #tpu.memory_space<vmem>>, vector<48x32xf32>
      %182 = arith.addf %180, %181 : vector<48x32xf32>
      %c0_82 = arith.constant 0 : index
      %c0_83 = arith.constant 0 : index
      %183 = vector.load %arg22[%c0_82, %c0_83] : memref<48x32xf32, #tpu.memory_space<vmem>>, vector<48x32xf32>
      tpu.vector_store %arg22[%c0_82, %c0_83], %182 {strides = array<i32>} : memref<48x32xf32, #tpu.memory_space<vmem>>, vector<48x32xf32>,
    } else {
    }
    %c0 = arith.constant 0 : index
    %c0_1 = arith.constant 0 : index
    %3 = vector.load %arg22[%c0, %c0_1] : memref<48x32xf32, #tpu.memory_space<vmem>>, vector<48x32xf32>
    %c0_2 = arith.constant 0 : index
    %c0_3 = arith.constant 0 : index
    %c0_4 = arith.constant 0 : index
    %4 = vector.load %arg9[%c0_2, %c0_3, %c0_4] : memref<1x1x32xf32, #tpu.memory_space<vmem>>, vector<1x1x32xf32>
    %5 = vector.shape_cast %4 : vector<1x1x32xf32> to vector<1x32xf32>
    %c0_5 = arith.constant 0 : index
    %c0_6 = arith.constant 0 : index
    %c0_7 = arith.constant 0 : index
    %6 = vector.load %arg10[%c0_5, %c0_6, %c0_7] : memref<1x1x32xf32, #tpu.memory_space<vmem>>, vector<1x1x32xf32>
    %7 = vector.shape_cast %6 : vector<1x1x32xf32> to vector<1x32xf32>
    %cst = arith.constant dense<0.000000e+00> : vector<48xf32>
    %8 = vector.multi_reduction <add>, %3, %cst [1] : vector<48x32xf32> to vector<48xf32>
    %9 = vector.shape_cast %8 : vector<48xf32> to vector<48x1xf32>
    %cst_8 = arith.constant 3.200000e+01 : f32
    %10 = vector.broadcast %cst_8 : f32 to vector<48x1xf32>
    %11 = arith.divf %9, %10 : vector<48x1xf32>
    %12 = vector.broadcast %11 : vector<48x1xf32> to vector<48x32xf32>
    %13 = arith.subf %3, %12 : vector<48x32xf32>
    %14 = arith.mulf %13, %13 : vector<48x32xf32>
    %cst_9 = arith.constant dense<0.000000e+00> : vector<48xf32>
    %15 = vector.multi_reduction <add>, %14, %cst_9 [1] : vector<48x32xf32> to vector<48xf32>
    %16 = vector.shape_cast %15 : vector<48xf32> to vector<48x1xf32>
    %cst_10 = arith.constant 3.200000e+01 : f32
    %17 = vector.broadcast %cst_10 : f32 to vector<48x1xf32>
    %18 = arith.divf %16, %17 : vector<48x1xf32>
    %19 = vector.broadcast %11 : vector<48x1xf32> to vector<48x32xf32>
    %20 = arith.subf %3, %19 : vector<48x32xf32>
    %cst_11 = arith.constant 9.99999997E-7 : f32
    %21 = vector.broadcast %cst_11 : f32 to vector<48x1xf32>
    %22 = arith.addf %18, %21 : vector<48x1xf32>
    %23 = math.rsqrt %22 : vector<48x1xf32>
    %24 = vector.broadcast %23 : vector<48x1xf32> to vector<48x32xf32>
    %25 = arith.mulf %20, %24 : vector<48x32xf32>
    %26 = vector.broadcast %5 : vector<1x32xf32> to vector<48x32xf32>
    %27 = arith.mulf %25, %26 : vector<48x32xf32>
    %28 = vector.broadcast %7 : vector<1x32xf32> to vector<48x32xf32>
    %29 = arith.addf %27, %28 : vector<48x32xf32>
    %30 = arith.truncf %29 : vector<48x32xf32> to vector<48x32xbf16>
    %c0_12 = arith.constant 0 : index
    %c0_13 = arith.constant 0 : index
    %c0_14 = arith.constant 0 : index
    %31 = vector.load %arg11[%c0_12, %c0_13, %c0_14] : memref<1x32x96xbf16, #tpu.memory_space<vmem>>, vector<1x32x96xbf16>
    %32 = vector.shape_cast %31 : vector<1x32x96xbf16> to vector<32x96xbf16>
    %cst_15 = arith.constant dense<0.000000e+00> : vector<48x96xf32>
    %33 = tpu.matmul %30, %32, %cst_15 {dimension_numbers = #tpu.dot_dimension_numbers<[1], [0], [0], [1], [0, 0, 1, 1], [], []>} : vector<48x32xbf16>, vector<32x96xbf16>, vector<48x96xf32> -> vector<48x96xf32>
    %c0_16 = arith.constant 0 : index
    %c0_17 = arith.constant 0 : index
    %c0_18 = arith.constant 0 : index
    %34 = vector.load %arg12[%c0_16, %c0_17, %c0_18] : memref<1x1x96xf32, #tpu.memory_space<vmem>>, vector<1x1x96xf32>
    %35 = vector.shape_cast %34 : vector<1x1x96xf32> to vector<1x96xf32>
    %36 = vector.broadcast %35 : vector<1x96xf32> to vector<48x96xf32>
    %37 = arith.addf %33, %36 : vector<48x96xf32>
    %38 = vector.shape_cast %37 : vector<48x96xf32> to vector<2x24x96xf32>
    %39 = arith.truncf %38 : vector<2x24x96xf32> to vector<2x24x96xbf16>
    %40 = vector.extract_strided_slice %39 {offsets = [0, 0, 0], sizes = [2, 24, 8], strides = [1, 1, 1]} : vector<2x24x96xbf16> to vector<2x24x8xbf16>
    %41 = vector.extract_strided_slice %39 {offsets = [0, 0, 8], sizes = [2, 24, 8], strides = [1, 1, 1]} : vector<2x24x96xbf16> to vector<2x24x8xbf16>
    %42 = vector.extract_strided_slice %39 {offsets = [0, 0, 16], sizes = [2, 24, 8], strides = [1, 1, 1]} : vector<2x24x96xbf16> to vector<2x24x8xbf16>
    %43 = vector.extract_strided_slice %39 {offsets = [0, 0, 24], sizes = [2, 24, 8], strides = [1, 1, 1]} : vector<2x24x96xbf16> to vector<2x24x8xbf16>
    %44 = vector.extract_strided_slice %39 {offsets = [0, 0, 32], sizes = [2, 24, 8], strides = [1, 1, 1]} : vector<2x24x96xbf16> to vector<2x24x8xbf16>
    %45 = vector.extract_strided_slice %39 {offsets = [0, 0, 40], sizes = [2, 24, 8], strides = [1, 1, 1]} : vector<2x24x96xbf16> to vector<2x24x8xbf16>
    %46 = vector.extract_strided_slice %39 {offsets = [0, 0, 48], sizes = [2, 24, 8], strides = [1, 1, 1]} : vector<2x24x96xbf16> to vector<2x24x8xbf16>
    %47 = vector.extract_strided_slice %39 {offsets = [0, 0, 56], sizes = [2, 24, 8], strides = [1, 1, 1]} : vector<2x24x96xbf16> to vector<2x24x8xbf16>
    %48 = vector.extract_strided_slice %39 {offsets = [0, 0, 64], sizes = [2, 24, 8], strides = [1, 1, 1]} : vector<2x24x96xbf16> to vector<2x24x8xbf16>
    %49 = vector.extract_strided_slice %39 {offsets = [0, 0, 72], sizes = [2, 24, 8], strides = [1, 1, 1]} : vector<2x24x96xbf16> to vector<2x24x8xbf16>
    %50 = vector.extract_strided_slice %39 {offsets = [0, 0, 80], sizes = [2, 24, 8], strides = [1, 1, 1]} : vector<2x24x96xbf16> to vector<2x24x8xbf16>
    %51 = vector.extract_strided_slice %39 {offsets = [0, 0, 88], sizes = [2, 24, 8], strides = [1, 1, 1]} : vector<2x24x96xbf16> to vector<2x24x8xbf16>
    %52 = tpu.concatenate %40, %41, %42, %43 in 0 : vector<2x24x8xbf16>, vector<2x24x8xbf16>, vector<2x24x8xbf16>, vector<2x24x8xbf16> -> vector<8x24x8xbf16>
    %53 = tpu.concatenate %44, %45, %46, %47 in 0 : vector<2x24x8xbf16>, vector<2x24x8xbf16>, vector<2x24x8xbf16>, vector<2x24x8xbf16> -> vector<8x24x8xbf16>
    %54 = tpu.concatenate %48, %49, %50, %51 in 0 : vector<2x24x8xbf16>, vector<2x24x8xbf16>, vector<2x24x8xbf16>, vector<2x24x8xbf16> -> vector<8x24x8xbf16>
    "tpu.trace_start"() <{level = 10 : i32, message = "gqe,gke->gqk"}> : () -> ()
    %cst_19 = arith.constant dense<0.000000e+00> : vector<8x24x24xf32>
    %55 = tpu.matmul %52, %53, %cst_19 {dimension_numbers = #tpu.dot_dimension_numbers<[2], [2], [1], [1], [0, 0, 0, 1, 1, 1], [0], [0]>} : vector<8x24x8xbf16>, vector<8x24x8xbf16>, vector<8x24x24xf32> -> vector<8x24x24xf32>
    "tpu.trace_stop"() : () -> ()
    %cst_20 = arith.constant 0.353553385 : f32
    %56 = vector.broadcast %cst_20 : f32 to vector<8x24x24xf32>
    %57 = arith.mulf %55, %56 : vector<8x24x24xf32>
    %58 = tpu.iota {dimensions = array<i32: 2>} : vector<1x1x24xi32>
    %c17_i32 = arith.constant 17 : i32
    %59 = vector.broadcast %c17_i32 : i32 to vector<1x1x24xi32>
    %60 = arith.cmpi slt, %58, %59 : vector<1x1x24xi32>
    %cst_21 = arith.constant -1.000000e+30 : f32
    %61 = vector.shape_cast %60 : vector<1x1x24xi1> to vector<1x1x24xi1>
    %62 = vector.broadcast %61 : vector<1x1x24xi1> to vector<8x24x24xi1>
    %63 = vector.broadcast %cst_21 : f32 to vector<8x24x24xf32>
    %64 = arith.select %62, %57, %63 : vector<8x24x24xi1>, vector<8x24x24xf32>
    %cst_22 = arith.constant dense<0xFF800000> : vector<8x24xf32>
    %65 = vector.multi_reduction <maximumf>, %64, %cst_22 [2] : vector<8x24x24xf32> to vector<8x24xf32>
    %66 = vector.shape_cast %65 : vector<8x24xf32> to vector<8x24x1xf32>
    %67 = vector.broadcast %66 : vector<8x24x1xf32> to vector<8x24x24xf32>
    %68 = arith.subf %64, %67 : vector<8x24x24xf32>
    %69 = math.exp %68 : vector<8x24x24xf32>
    %cst_23 = arith.constant dense<0.000000e+00> : vector<8x24xf32>
    %70 = vector.multi_reduction <add>, %69, %cst_23 [2] : vector<8x24x24xf32> to vector<8x24xf32>
    %71 = vector.shape_cast %70 : vector<8x24xf32> to vector<8x24x1xf32>
    %72 = vector.broadcast %71 : vector<8x24x1xf32> to vector<8x24x24xf32>
    %73 = arith.divf %69, %72 : vector<8x24x24xf32>
    %74 = arith.truncf %73 : vector<8x24x24xf32> to vector<8x24x24xbf16>
    "tpu.trace_start"() <{level = 10 : i32, message = "gqk,gke->gqe"}> : () -> ()
    %cst_24 = arith.constant dense<0.000000e+00> : vector<8x24x8xf32>
    %75 = tpu.matmul %74, %54, %cst_24 {dimension_numbers = #tpu.dot_dimension_numbers<[2], [1], [1], [2], [0, 0, 0, 1, 1, 2], [0], [0]>} : vector<8x24x24xbf16>, vector<8x24x8xbf16>, vector<8x24x8xf32> -> vector<8x24x8xf32>
    "tpu.trace_stop"() : () -> ()
    %76 = vector.extract_strided_slice %75 {offsets = [0, 0, 0], sizes = [2, 24, 8], strides = [1, 1, 1]} : vector<8x24x8xf32> to vector<2x24x8xf32>
    %77 = vector.extract_strided_slice %75 {offsets = [2, 0, 0], sizes = [2, 24, 8], strides = [1, 1, 1]} : vector<8x24x8xf32> to vector<2x24x8xf32>
    %78 = vector.extract_strided_slice %75 {offsets = [4, 0, 0], sizes = [2, 24, 8], strides = [1, 1, 1]} : vector<8x24x8xf32> to vector<2x24x8xf32>
    %79 = vector.extract_strided_slice %75 {offsets = [6, 0, 0], sizes = [2, 24, 8], strides = [1, 1, 1]} : vector<8x24x8xf32> to vector<2x24x8xf32>
    %80 = tpu.concatenate %76, %77, %78, %79 in 2 : vector<2x24x8xf32>, vector<2x24x8xf32>, vector<2x24x8xf32>, vector<2x24x8xf32> -> vector<2x24x32xf32>
    %81 = vector.shape_cast %80 : vector<2x24x32xf32> to vector<48x32xf32>
    %82 = arith.truncf %81 : vector<48x32xf32> to vector<48x32xbf16>
    %c0_25 = arith.constant 0 : index
    %c0_26 = arith.constant 0 : index
    %c0_27 = arith.constant 0 : index
    %83 = vector.load %arg13[%c0_25, %c0_26, %c0_27] : memref<1x32x32xbf16, #tpu.memory_space<vmem>>, vector<1x32x32xbf16>
    %84 = vector.shape_cast %83 : vector<1x32x32xbf16> to vector<32x32xbf16>
    %cst_28 = arith.constant dense<0.000000e+00> : vector<48x32xf32>
    %85 = tpu.matmul %82, %84, %cst_28 {dimension_numbers = #tpu.dot_dimension_numbers<[1], [0], [0], [1], [0, 0, 1, 1], [], []>} : vector<48x32xbf16>, vector<32x32xbf16>, vector<48x32xf32> -> vector<48x32xf32>
    %c0_29 = arith.constant 0 : index
    %c0_30 = arith.constant 0 : index
    %c0_31 = arith.constant 0 : index
    %86 = vector.load %arg14[%c0_29, %c0_30, %c0_31] : memref<1x1x32xf32, #tpu.memory_space<vmem>>, vector<1x1x32xf32>
    %87 = vector.shape_cast %86 : vector<1x1x32xf32> to vector<1x32xf32>
    %88 = vector.broadcast %87 : vector<1x32xf32> to vector<48x32xf32>
    %89 = arith.addf %85, %88 : vector<48x32xf32>
    %90 = arith.addf %3, %89 : vector<48x32xf32>
    %c0_32 = arith.constant 0 : index
    %c0_33 = arith.constant 0 : index
    %c0_34 = arith.constant 0 : index
    %91 = vector.load %arg15[%c0_32, %c0_33, %c0_34] : memref<1x1x32xf32, #tpu.memory_space<vmem>>, vector<1x1x32xf32>
    %92 = vector.shape_cast %91 : vector<1x1x32xf32> to vector<1x32xf32>
    %c0_35 = arith.constant 0 : index
    %c0_36 = arith.constant 0 : index
    %c0_37 = arith.constant 0 : index
    %93 = vector.load %arg16[%c0_35, %c0_36, %c0_37] : memref<1x1x32xf32, #tpu.memory_space<vmem>>, vector<1x1x32xf32>
    %94 = vector.shape_cast %93 : vector<1x1x32xf32> to vector<1x32xf32>
    %cst_38 = arith.constant dense<0.000000e+00> : vector<48xf32>
    %95 = vector.multi_reduction <add>, %90, %cst_38 [1] : vector<48x32xf32> to vector<48xf32>
    %96 = vector.shape_cast %95 : vector<48xf32> to vector<48x1xf32>
    %cst_39 = arith.constant 3.200000e+01 : f32
    %97 = vector.broadcast %cst_39 : f32 to vector<48x1xf32>
    %98 = arith.divf %96, %97 : vector<48x1xf32>
    %99 = vector.broadcast %98 : vector<48x1xf32> to vector<48x32xf32>
    %100 = arith.subf %90, %99 : vector<48x32xf32>
    %101 = arith.mulf %100, %100 : vector<48x32xf32>
    %cst_40 = arith.constant dense<0.000000e+00> : vector<48xf32>
    %102 = vector.multi_reduction <add>, %101, %cst_40 [1] : vector<48x32xf32> to vector<48xf32>
    %103 = vector.shape_cast %102 : vector<48xf32> to vector<48x1xf32>
    %cst_41 = arith.constant 3.200000e+01 : f32
    %104 = vector.broadcast %cst_41 : f32 to vector<48x1xf32>
    %105 = arith.divf %103, %104 : vector<48x1xf32>
    %106 = vector.broadcast %98 : vector<48x1xf32> to vector<48x32xf32>
    %107 = arith.subf %90, %106 : vector<48x32xf32>
    %cst_42 = arith.constant 9.99999997E-7 : f32
    %108 = vector.broadcast %cst_42 : f32 to vector<48x1xf32>
    %109 = arith.addf %105, %108 : vector<48x1xf32>
    %110 = math.rsqrt %109 : vector<48x1xf32>
    %111 = vector.broadcast %110 : vector<48x1xf32> to vector<48x32xf32>
    %112 = arith.mulf %107, %111 : vector<48x32xf32>
    %113 = vector.broadcast %92 : vector<1x32xf32> to vector<48x32xf32>
    %114 = arith.mulf %112, %113 : vector<48x32xf32>
    %115 = vector.broadcast %94 : vector<1x32xf32> to vector<48x32xf32>
    %116 = arith.addf %114, %115 : vector<48x32xf32>
    %117 = arith.truncf %116 : vector<48x32xf32> to vector<48x32xbf16>
    %c0_43 = arith.constant 0 : index
    %c0_44 = arith.constant 0 : index
    %c0_45 = arith.constant 0 : index
    %118 = vector.load %arg17[%c0_43, %c0_44, %c0_45] : memref<1x32x128xbf16, #tpu.memory_space<vmem>>, vector<1x32x128xbf16>
    %119 = vector.shape_cast %118 : vector<1x32x128xbf16> to vector<32x128xbf16>
    %cst_46 = arith.constant dense<0.000000e+00> : vector<48x128xf32>
    %120 = tpu.matmul %117, %119, %cst_46 {dimension_numbers = #tpu.dot_dimension_numbers<[1], [0], [0], [1], [0, 0, 1, 1], [], []>} : vector<48x32xbf16>, vector<32x128xbf16>, vector<48x128xf32> -> vector<48x128xf32>
    %c0_47 = arith.constant 0 : index
    %c0_48 = arith.constant 0 : index
    %c0_49 = arith.constant 0 : index
    %121 = vector.load %arg18[%c0_47, %c0_48, %c0_49] : memref<1x1x128xf32, #tpu.memory_space<vmem>>, vector<1x1x128xf32>
    %122 = vector.shape_cast %121 : vector<1x1x128xf32> to vector<1x128xf32>
    %123 = vector.broadcast %122 : vector<1x128xf32> to vector<48x128xf32>
    %124 = arith.addf %120, %123 : vector<48x128xf32>
    %cst_50 = arith.constant 5.000000e-01 : f32
    %125 = vector.broadcast %cst_50 : f32 to vector<48x128xf32>
    %126 = arith.mulf %125, %124 : vector<48x128xf32>
    %cst_51 = arith.constant 0.707106769 : f32
    %127 = vector.broadcast %cst_51 : f32 to vector<48x128xf32>
    %128 = arith.mulf %124, %127 : vector<48x128xf32>
    %129 = math.absf %128 : vector<48x128xf32>
    %cst_52 = arith.constant 0.327591091 : f32
    %130 = vector.broadcast %cst_52 : f32 to vector<48x128xf32>
    %131 = arith.mulf %130, %129 : vector<48x128xf32>
    %cst_53 = arith.constant 1.000000e+00 : f32
    %132 = vector.broadcast %cst_53 : f32 to vector<48x128xf32>
    %133 = arith.addf %132, %131 : vector<48x128xf32>
    %cst_54 = arith.constant 1.000000e+00 : f32
    %134 = vector.broadcast %cst_54 : f32 to vector<48x128xf32>
    %135 = arith.divf %134, %133 : vector<48x128xf32>
    %cst_55 = arith.constant 1.06140542 : f32
    %136 = vector.broadcast %cst_55 : f32 to vector<48x128xf32>
    %137 = arith.mulf %136, %135 : vector<48x128xf32>
    %cst_56 = arith.constant -1.45315206 : f32
    %138 = vector.broadcast %cst_56 : f32 to vector<48x128xf32>
    %139 = arith.addf %137, %138 : vector<48x128xf32>
    %140 = arith.mulf %139, %135 : vector<48x128xf32>
    %cst_57 = arith.constant 1.42141378 : f32
    %141 = vector.broadcast %cst_57 : f32 to vector<48x128xf32>
    %142 = arith.addf %140, %141 : vector<48x128xf32>
    %143 = arith.mulf %142, %135 : vector<48x128xf32>
    %cst_58 = arith.constant -0.284496725 : f32
    %144 = vector.broadcast %cst_58 : f32 to vector<48x128xf32>
    %145 = arith.addf %143, %144 : vector<48x128xf32>
    %146 = arith.mulf %145, %135 : vector<48x128xf32>
    %cst_59 = arith.constant 0.254829586 : f32
    %147 = vector.broadcast %cst_59 : f32 to vector<48x128xf32>
    %148 = arith.addf %146, %147 : vector<48x128xf32>
    %149 = arith.mulf %148, %135 : vector<48x128xf32>
    %cst_60 = arith.constant 0.000000e+00 : f32
    %150 = vector.broadcast %cst_60 : f32 to vector<48x128xf32>
    %151 = arith.subf %150, %129 : vector<48x128xf32>
    %152 = arith.mulf %151, %129 : vector<48x128xf32>
    %153 = math.exp %152 : vector<48x128xf32>
    %154 = arith.mulf %149, %153 : vector<48x128xf32>
    %cst_61 = arith.constant 1.000000e+00 : f32
    %155 = vector.broadcast %cst_61 : f32 to vector<48x128xf32>
    %156 = arith.subf %155, %154 : vector<48x128xf32>
    %cst_62 = arith.constant 0.000000e+00 : f32
    %157 = vector.broadcast %cst_62 : f32 to vector<48x128xf32>
    %158 = arith.cmpf oge, %128, %157 : vector<48x128xf32>
    %cst_63 = arith.constant 0.000000e+00 : f32
    %159 = vector.broadcast %cst_63 : f32 to vector<48x128xf32>
    %160 = arith.subf %159, %156 : vector<48x128xf32>
    %161 = arith.select %158, %156, %160 : vector<48x128xi1>, vector<48x128xf32>
    %cst_64 = arith.constant 1.000000e+00 : f32
    %162 = vector.broadcast %cst_64 : f32 to vector<48x128xf32>
    %163 = arith.addf %162, %161 : vector<48x128xf32>
    %164 = arith.mulf %126, %163 : vector<48x128xf32>
    %165 = arith.truncf %164 : vector<48x128xf32> to vector<48x128xbf16>
    %c0_65 = arith.constant 0 : index
    %c0_66 = arith.constant 0 : index
    %c0_67 = arith.constant 0 : index
    %166 = vector.load %arg19[%c0_65, %c0_66, %c0_67] : memref<1x128x32xbf16, #tpu.memory_space<vmem>>, vector<1x128x32xbf16>
    %167 = vector.shape_cast %166 : vector<1x128x32xbf16> to vector<128x32xbf16>
    %cst_68 = arith.constant dense<0.000000e+00> : vector<48x32xf32>
    %168 = tpu.matmul %165, %167, %cst_68 {dimension_numbers = #tpu.dot_dimension_numbers<[1], [0], [0], [1], [0, 0, 1, 1], [], []>} : vector<48x128xbf16>, vector<128x32xbf16>, vector<48x32xf32> -> vector<48x32xf32>
    %c0_69 = arith.constant 0 : index
    %c0_70 = arith.constant 0 : index
    %c0_71 = arith.constant 0 : index
    %169 = vector.load %arg20[%c0_69, %c0_70, %c0_71] : memref<1x1x32xf32, #tpu.memory_space<vmem>>, vector<1x1x32xf32>
    %170 = vector.shape_cast %169 : vector<1x1x32xf32> to vector<1x32xf32>
    %171 = vector.broadcast %170 : vector<1x32xf32> to vector<48x32xf32>
    %172 = arith.addf %168, %171 : vector<48x32xf32>
    %173 = arith.addf %90, %172 : vector<48x32xf32>
    %c0_72 = arith.constant 0 : index
    %c0_73 = arith.constant 0 : index
    %174 = vector.load %arg22[%c0_72, %c0_73] : memref<48x32xf32, #tpu.memory_space<vmem>>, vector<48x32xf32>
    tpu.vector_store %arg22[%c0_72, %c0_73], %173 {strides = array<i32>} : memref<48x32xf32, #tpu.memory_space<vmem>>, vector<48x32xf32>,
    %c1_i32 = arith.constant 1 : i32
    %175 = arith.cmpi eq, %arg1, %c1_i32 : i32
    %176 = arith.extui %175 : i1 to i32
    %c0_i32_74 = arith.constant 0 : i32
    %177 = arith.cmpi ne, %176, %c0_i32_74 : i32
    scf.if %177 {
      %178 = vector.shape_cast %173 : vector<48x32xf32> to vector<2x24x32xf32>
      %179 = vector.extract_strided_slice %178 {offsets = [0, 0, 0], sizes = [2, 1, 32], strides = [1, 1, 1]} : vector<2x24x32xf32> to vector<2x1x32xf32>
      %180 = vector.shape_cast %179 : vector<2x1x32xf32> to vector<2x32xf32>
      %c0_75 = arith.constant 0 : index
      %c0_76 = arith.constant 0 : index
      %181 = vector.load %arg5[%c0_75, %c0_76] : memref<1x32xf32, #tpu.memory_space<vmem>>, vector<1x32xf32>
      %c0_77 = arith.constant 0 : index
      %c0_78 = arith.constant 0 : index
      %182 = vector.load %arg6[%c0_77, %c0_78] : memref<1x32xf32, #tpu.memory_space<vmem>>, vector<1x32xf32>
      %cst_79 = arith.constant dense<0.000000e+00> : vector<2xf32>
      %183 = vector.multi_reduction <add>, %180, %cst_79 [1] : vector<2x32xf32> to vector<2xf32>
      %184 = vector.shape_cast %183 : vector<2xf32> to vector<2x1xf32>
      %cst_80 = arith.constant 3.200000e+01 : f32
      %185 = vector.broadcast %cst_80 : f32 to vector<2x1xf32>
      %186 = arith.divf %184, %185 : vector<2x1xf32>
      %187 = vector.broadcast %186 : vector<2x1xf32> to vector<2x32xf32>
      %188 = arith.subf %180, %187 : vector<2x32xf32>
      %189 = arith.mulf %188, %188 : vector<2x32xf32>
      %cst_81 = arith.constant dense<0.000000e+00> : vector<2xf32>
      %190 = vector.multi_reduction <add>, %189, %cst_81 [1] : vector<2x32xf32> to vector<2xf32>
      %191 = vector.shape_cast %190 : vector<2xf32> to vector<2x1xf32>
      %cst_82 = arith.constant 3.200000e+01 : f32
      %192 = vector.broadcast %cst_82 : f32 to vector<2x1xf32>
      %193 = arith.divf %191, %192 : vector<2x1xf32>
      %194 = vector.broadcast %186 : vector<2x1xf32> to vector<2x32xf32>
      %195 = arith.subf %180, %194 : vector<2x32xf32>
      %cst_83 = arith.constant 9.99999997E-7 : f32
      %196 = vector.broadcast %cst_83 : f32 to vector<2x1xf32>
      %197 = arith.addf %193, %196 : vector<2x1xf32>
      %198 = math.rsqrt %197 : vector<2x1xf32>
      %199 = vector.broadcast %198 : vector<2x1xf32> to vector<2x32xf32>
      %200 = arith.mulf %195, %199 : vector<2x32xf32>
      %201 = vector.broadcast %181 : vector<1x32xf32> to vector<2x32xf32>
      %202 = arith.mulf %200, %201 : vector<2x32xf32>
      %203 = vector.broadcast %182 : vector<1x32xf32> to vector<2x32xf32>
      %204 = arith.addf %202, %203 : vector<2x32xf32>
      %205 = arith.truncf %204 : vector<2x32xf32> to vector<2x32xbf16>
      %c0_84 = arith.constant 0 : index
      %c0_85 = arith.constant 0 : index
      %206 = vector.load %arg7[%c0_84, %c0_85] : memref<32x128xbf16, #tpu.memory_space<vmem>>, vector<32x128xbf16>
      %cst_86 = arith.constant dense<0.000000e+00> : vector<2x128xf32>
      %207 = tpu.matmul %205, %206, %cst_86 {dimension_numbers = #tpu.dot_dimension_numbers<[1], [0], [0], [1], [0, 0, 1, 1], [], []>} : vector<2x32xbf16>, vector<32x128xbf16>, vector<2x128xf32> -> vector<2x128xf32>
      %c0_87 = arith.constant 0 : index
      %c0_88 = arith.constant 0 : index
      %208 = vector.load %arg8[%c0_87, %c0_88] : memref<1x128xf32, #tpu.memory_space<vmem>>, vector<1x128xf32>
      %209 = vector.broadcast %208 : vector<1x128xf32> to vector<2x128xf32>
      %210 = arith.addf %207, %209 : vector<2x128xf32>
      %c0_89 = arith.constant 0 : index
      %c0_90 = arith.constant 0 : index
      %211 = vector.load %arg21[%c0_89, %c0_90] : memref<2x128xf32, #tpu.memory_space<vmem>>, vector<2x128xf32>
      tpu.vector_store %arg21[%c0_89, %c0_90], %210 {strides = array<i32>} : memref<2x128xf32, #tpu.memory_space<vmem>>, vector<2x128xf32>,
    } else {
    }
    return
  }
  func.func @transform_0(%arg0: i32, %arg1: i32) -> (i32, i32) {
    %c0_i32 = arith.constant 0 : i32
    %c0_i32_0 = arith.constant 0 : i32
    return %arg0, %c0_i32 : i32, i32
  }
  func.func @transform_1(%arg0: i32, %arg1: i32) -> (i32, i32) {
    %c0_i32 = arith.constant 0 : i32
    %c0_i32_0 = arith.constant 0 : i32
    %c0_i32_1 = arith.constant 0 : i32
    return %c0_i32, %c0_i32_0 : i32, i32
  }
  func.func @transform_2(%arg0: i32, %arg1: i32) -> (i32, i32) {
    %c0_i32 = arith.constant 0 : i32
    %c0_i32_0 = arith.constant 0 : i32
    %c0_i32_1 = arith.constant 0 : i32
    return %c0_i32, %c0_i32_0 : i32, i32
  }
  func.func @transform_3(%arg0: i32, %arg1: i32) -> (i32, i32) {
    %c0_i32 = arith.constant 0 : i32
    %c0_i32_0 = arith.constant 0 : i32
    %c0_i32_1 = arith.constant 0 : i32
    return %c0_i32, %c0_i32_0 : i32, i32
  }
  func.func @transform_4(%arg0: i32, %arg1: i32) -> (i32, i32) {
    %c0_i32 = arith.constant 0 : i32
    %c0_i32_0 = arith.constant 0 : i32
    %c0_i32_1 = arith.constant 0 : i32
    return %c0_i32, %c0_i32_0 : i32, i32
  }
  func.func @transform_5(%arg0: i32, %arg1: i32) -> (i32, i32) {
    %c0_i32 = arith.constant 0 : i32
    %c0_i32_0 = arith.constant 0 : i32
    %c0_i32_1 = arith.constant 0 : i32
    return %c0_i32, %c0_i32_0 : i32, i32
  }
  func.func @transform_6(%arg0: i32, %arg1: i32) -> (i32, i32) {
    %c0_i32 = arith.constant 0 : i32
    %c0_i32_0 = arith.constant 0 : i32
    %c0_i32_1 = arith.constant 0 : i32
    return %c0_i32, %c0_i32_0 : i32, i32
  }
  func.func @transform_7(%arg0: i32, %arg1: i32) -> (i32, i32, i32) {
    %c0_i32 = arith.constant 0 : i32
    %c0_i32_0 = arith.constant 0 : i32
    %c0_i32_1 = arith.constant 0 : i32
    return %arg1, %c0_i32, %c0_i32_0 : i32, i32, i32
  }
  func.func @transform_8(%arg0: i32, %arg1: i32) -> (i32, i32, i32) {
    %c0_i32 = arith.constant 0 : i32
    %c0_i32_0 = arith.constant 0 : i32
    %c0_i32_1 = arith.constant 0 : i32
    return %arg1, %c0_i32, %c0_i32_0 : i32, i32, i32
  }
  func.func @transform_9(%arg0: i32, %arg1: i32) -> (i32, i32, i32) {
    %c0_i32 = arith.constant 0 : i32
    %c0_i32_0 = arith.constant 0 : i32
    %c0_i32_1 = arith.constant 0 : i32
    return %arg1, %c0_i32, %c0_i32_0 : i32, i32, i32
  }
  func.func @transform_10(%arg0: i32, %arg1: i32) -> (i32, i32, i32) {
    %c0_i32 = arith.constant 0 : i32
    %c0_i32_0 = arith.constant 0 : i32
    %c0_i32_1 = arith.constant 0 : i32
    return %arg1, %c0_i32, %c0_i32_0 : i32, i32, i32
  }
  func.func @transform_11(%arg0: i32, %arg1: i32) -> (i32, i32, i32) {
    %c0_i32 = arith.constant 0 : i32
    %c0_i32_0 = arith.constant 0 : i32
    %c0_i32_1 = arith.constant 0 : i32
    return %arg1, %c0_i32, %c0_i32_0 : i32, i32, i32
  }
  func.func @transform_12(%arg0: i32, %arg1: i32) -> (i32, i32, i32) {
    %c0_i32 = arith.constant 0 : i32
    %c0_i32_0 = arith.constant 0 : i32
    %c0_i32_1 = arith.constant 0 : i32
    return %arg1, %c0_i32, %c0_i32_0 : i32, i32, i32
  }
  func.func @transform_13(%arg0: i32, %arg1: i32) -> (i32, i32, i32) {
    %c0_i32 = arith.constant 0 : i32
    %c0_i32_0 = arith.constant 0 : i32
    %c0_i32_1 = arith.constant 0 : i32
    return %arg1, %c0_i32, %c0_i32_0 : i32, i32, i32
  }
  func.func @transform_14(%arg0: i32, %arg1: i32) -> (i32, i32, i32) {
    %c0_i32 = arith.constant 0 : i32
    %c0_i32_0 = arith.constant 0 : i32
    %c0_i32_1 = arith.constant 0 : i32
    return %arg1, %c0_i32, %c0_i32_0 : i32, i32, i32
  }
  func.func @transform_15(%arg0: i32, %arg1: i32) -> (i32, i32, i32) {
    %c0_i32 = arith.constant 0 : i32
    %c0_i32_0 = arith.constant 0 : i32
    %c0_i32_1 = arith.constant 0 : i32
    return %arg1, %c0_i32, %c0_i32_0 : i32, i32, i32
  }
  func.func @transform_16(%arg0: i32, %arg1: i32) -> (i32, i32, i32) {
    %c0_i32 = arith.constant 0 : i32
    %c0_i32_0 = arith.constant 0 : i32
    %c0_i32_1 = arith.constant 0 : i32
    return %arg1, %c0_i32, %c0_i32_0 : i32, i32, i32
  }
  func.func @transform_17(%arg0: i32, %arg1: i32) -> (i32, i32, i32) {
    %c0_i32 = arith.constant 0 : i32
    %c0_i32_0 = arith.constant 0 : i32
    %c0_i32_1 = arith.constant 0 : i32
    return %arg1, %c0_i32, %c0_i32_0 : i32, i32, i32
  }
  func.func @transform_18(%arg0: i32, %arg1: i32) -> (i32, i32, i32) {
    %c0_i32 = arith.constant 0 : i32
    %c0_i32_0 = arith.constant 0 : i32
    %c0_i32_1 = arith.constant 0 : i32
    return %arg1, %c0_i32, %c0_i32_0 : i32, i32, i32
  }
  func.func @transform_19(%arg0: i32, %arg1: i32) -> (i32, i32) {
    %c0_i32 = arith.constant 0 : i32
    %c0_i32_0 = arith.constant 0 : i32
    return %arg0, %c0_i32 : i32, i32
  }
}

</mosaic_0001>

<bundles_post_ra>
// kernel: deit_forward.1
= control target key start
LH: loop header
LB: loop body
LE: loop exit
PB: predicated region body
PF: predicated region fallthrough
CT: control target
= control target key end

     0   :  { %s5398_s0 = inlined_call_operand.vmem [shape: bf16[48,48], index: 0, kind: input, shape index: {}]   ;;  %s5399_s1 = inlined_call_operand.vmem [shape: f32[48,32], index: 1, kind: input, shape index: {}]   ;;  %s5400_s2 = inlined_call_operand.vmem [shape: bf16[48,32], index: 2, kind: input, shape index: {}]   ;;  %s5401_s3 = inlined_call_operand.vmem [shape: f32[1,32], index: 3, kind: input, shape index: {}]   ;;  %s5402_s4 = inlined_call_operand.vmem [shape: f32[1,32], index: 4, kind: input, shape index: {}]   ;;  %s5403_s5 = inlined_call_operand.vmem [shape: bf16[32,128], index: 5, kind: input, shape index: {}]   ;;  %s5404_s6 = inlined_call_operand.vmem [shape: f32[1,128], index: 6, kind: input, shape index: {}]   ;;  %s5405_s7 = inlined_call_operand.vmem [shape: f32[2,1,32], index: 7, kind: input, shape index: {}]   ;;  %s5406_s8 = inlined_call_operand.vmem [shape: f32[2,1,32], index: 8, kind: input, shape index: {}]   ;;  %s5407_s9 = inlined_call_operand.vmem [shape: bf16[2,32,96], index: 9, kind: input, shape index: {}]   ;;  %s5408_s10 = inlined_call_operand.vmem [shape: f32[2,1,96], index: 10, kind: input, shape index: {}]   ;;  %s5409_s11 = inlined_call_operand.vmem [shape: bf16[2,32,32], index: 11, kind: input, shape index: {}]   ;;  %s5410_s12 = inlined_call_operand.vmem [shape: f32[2,1,32], index: 12, kind: input, shape index: {}]   ;;  %s5411_s13 = inlined_call_operand.vmem [shape: f32[2,1,32], index: 13, kind: input, shape index: {}]   ;;  %s5412_s14 = inlined_call_operand.vmem [shape: f32[2,1,32], index: 14, kind: input, shape index: {}]   ;;  %s5413_s15 = inlined_call_operand.vmem [shape: bf16[2,32,128], index: 15, kind: input, shape index: {}]   ;;  %s5414_s16 = inlined_call_operand.vmem [shape: f32[2,1,128], index: 16, kind: input, shape index: {}]   ;;  %s5415_s17 = inlined_call_operand.vmem [shape: bf16[2,128,32], index: 17, kind: input, shape index: {}]   ;;  %s5416_s18 = inlined_call_operand.vmem [shape: f32[2,1,32], index: 18, kind: input, shape index: {}]   ;;  %s5417_s19 = inlined_call_operand.hbm [shape: f32[2,128], index: 19, kind: output, shape index: {}]  }
   0x1   :  { %5428 = sst [smem:[#allocation9_spill]] %s5398_s0 }
   0x2   :  { %5429 = sst [smem:[#allocation10_spill]] %s5399_s1 }
   0x3   :  { %5430 = sst [smem:[#allocation11_spill]] %s5400_s2 }
   0x4   :  { %5431 = sst [smem:[#allocation12_spill]] %s5401_s3 }
   0x5   :  { %5432 = sst [smem:[#allocation13_spill]] %s5402_s4 }
   0x6   :  { %5433 = sst [smem:[#allocation14_spill]] %s5403_s5 }
   0x7   :  { %5434 = sst [smem:[#allocation15_spill]] %s5404_s6 }
   0x8   :  { %5435 = sst [smem:[#allocation16_spill]] %s5407_s9 }
   0x9   :  { %5436 = sst [smem:[#allocation17_spill]] %s5409_s11 }
   0xa   :  { %5437 = sst [smem:[#allocation18_spill]] %s5417_s19 }
   0xb   :  { %24 = vsyncpa [#allocation4], 0  ;;  %s4056_s0 = smov 0   ;;  %s4058_s30 = smov 0  }
   0xc   :  { %s4060_s20 = smov 0  }
   0xd LB: > { %5438 = sst [smem:[#allocation6_spill]] %s3940_s30  ;;  %s39_s1 = sadd.s32 1, %s3940_s30  ;;  %s3944_s20 = sphi %s4060_s20, %s30_s20   ;;  %s3940_s30 = sphi %s4058_s30, %s5535_s30   ;;  %s3936_s0 = sphi %s4056_s0, %s5534_s0  }
   0xe   : > { %5439 = sst [smem:[#allocation7_spill]] %s3944_s20  ;;  %p40_p0 = scmp.ge.s32.totalorder %s39_s1, 2 }
   0xf   : > { %p3458_p1 = scmp.ge.s32.totalorder %s3944_s20, 1  ;;  %p655_p2 = scmp.lt.s32.totalorder %s3944_s20, 3 }
  0x10   : > { %s5537_s1 = smov (%p40_p0, %s39_s1), 0 }
  0x11   : > { %5440 = sst [smem:[#allocation8_spill]] %s5537_s1  ;;  %p656_p3 = pnand %p3458_p1, %p655_p2 }
  0x12   : > { %p756_p4 = scmp.lt.s32.totalorder (!%p656_p3), %s3936_s0, 1  ;;  %s5441_s9 = sld [smem:[#allocation16_spill]] (!%p656_p3) }
  0x13   : > { %659 = sbr.rel (%p656_p3) target bundleno = 2884 (0xb44), region = 96  ;;  %s5442_s11 = sld [smem:[#allocation17_spill]] (!%p656_p3) }
  0x14   : > { %p3467_p5 = scmp.ne.s32.totalorder (!%p656_p3), %s3936_s0, 0 }
  0x18   : > { %s4079_s22 = scalar_select %p756_p4, %s3936_s0, 1 }
  0x19   : > { %s5443_s2 = sld [smem:[#allocation11_spill]] (!%p3467_p5) }
  0x1a   : > { %s3606_s27 = sshll.u32 %s4079_s22, 4  ;;  %s780_s4 = scalar_lea.vmem %s5411_s13, %s4079_s22 }
  0x1b   : > { %s4097_s1 = scalar_lea.vmem %s5441_s9, %s3606_s27  ;;  %s4102_s20 = scalar_lea.vmem %s5442_s11, %s3606_s27 }
  0x1c   : > { %s783_s21 = scalar_lea.vmem %s5412_s14, %s4079_s22  ;;  %s4119_s9 = scalar_lea.vmem %s5413_s15, %s3606_s27 }
  0x1d   : > { %s791_s11 = scalar_lea.vmem %s5414_s16, %s4079_s22  ;;  %s3609_s5 = sshll.u32 %s4079_s22, 6 }
  0x1e   : > { %s4129_s25 = scalar_lea.vmem %s5415_s17, %s3609_s5  ;;  %804 = sbr.rel (%p3467_p5) target bundleno = 191 (0xbf), region = 100 }
  0x1f   : > { %s5444_s26 = sld [smem:[#allocation9_spill]] (!%p3467_p5) }
  0x20   : > { %s5445_s30 = sld [smem:[#allocation10_spill]] (!%p3467_p5) }
  0x23   : > { %v3615_v0 = vld [vmem:[%s5443_s2 + $0x10] sm:$0xff]  ;;  %v3614_v1 = vld [vmem:[%s5443_s2 + $0x8] sm:$0xff]  ;;  %v3613_v2 = vld [vmem:[%s5443_s2] sm:$0xff]  ;;  %vm856_vm0 = vcmask 392192   ;;  %vm890_vm1 = vcmask 261120  }
  0x24   : > { %871 = vmatpush.bf16.msra.mxu0 %v3615_v0  ;;  %3632 = vmatpush.bf16.msra.mxu1 %v3615_v0 }
  0x25   : > { %3633 = vmatpush.bf16.msra.mxu2 %v3615_v0  ;;  %v3610_v3 = vld [vmem:[%s5444_s26] sm:$0xff]  ;;  %v3611_v4 = vld [vmem:[%s5444_s26 + $0x8] sm:$0xff]  ;;  %v3612_v5 = vld [vmem:[%s5444_s26 + $0x10] sm:$0xff] }
  0x26   : > { %s5446_s28 = smov %s5445_s30  ;;  %v817_v6 = vld [vmem:[%s5445_s30] sm:$0xff] }
  0x27   : > { %v819_v7 = vld [vmem:[%s5446_s28 + $0x10] sm:$0xff]  ;;  %v821_v12 = vld [vmem:[%s5446_s28 + $0x20] sm:$0xff]  ;;  %v818_v13 = vld [vmem:[%s5446_s28 + $0x8] sm:$0xff] }
  0x28   : > { %872 = vmatpush.bf16.msra.mxu0 %v3614_v1  ;;  %3634 = vmatpush.bf16.msra.mxu1 %v3614_v1  ;;  %v820_v14 = vld [vmem:[%s5446_s28 + $0x18] sm:$0xff]  ;;  %v822_v21 = vld [vmem:[%s5446_s28 + $0x28] sm:$0xff] }
  0x29   : > { %3635 = vmatpush.bf16.msra.mxu2 %v3614_v1 }
  0x2c   : > { %873 = vmatpush.bf16.msra.mxu0 %v3613_v2  ;;  %3636 = vmatpush.bf16.msra.mxu1 %v3613_v2 }
  0x2d   : > { %3637 = vmatpush.bf16.msra.mxu2 %v3613_v2 }
  0x2f   : > { %3492 = vmatmul.msk.bf16.vlgmr.msra.gmra.mxu0 %vm856_vm0, %v3610_v3  ;;  %3493 = vmatmul.msk.bf16.vlgmr.msra.gmra.mxu1 %vm856_vm0, %v3611_v4 }
  0x30   : > { %3494 = vmatmul.msk.bf16.vlgmr.msra.gmra.mxu2 %vm856_vm0, %v3612_v5 }
  0xac   : > { %v875_v8 = vpop.f32.mrf.mxu0  ;;  %v880_v9 = vpop.f32.mrf.mxu1 }
  0xad   : > { %v876_v10 = vadd.f32 %v875_v8, %v817_v6  ;;  %v881_v11 = vadd.f32 %v880_v9, %v819_v7 }
  0xaf   : > { %891 = vst.msk [vmem:[#allocation2] sm:$0xff] %vm890_vm1, %v876_v10 }
  0xb0   : > { %893 = vst.msk [vmem:[#allocation2 + $0x10] sm:$0xff] %vm890_vm1, %v881_v11 }
  0xb3   : > { %v885_v15 = vpop.f32.mrf.mxu2 }
  0xb4   : > { %v886_v16 = vadd.f32 %v885_v15, %v821_v12  ;;  %v877_v17 = vpop.f32.mrf.mxu0  ;;  %v882_v18 = vpop.f32.mrf.mxu1 }
  0xb5   : > { %v878_v19 = vadd.f32 %v877_v17, %v818_v13  ;;  %v883_v20 = vadd.f32 %v882_v18, %v820_v14 }
  0xb6   : > { %895 = vst.msk [vmem:[#allocation2 + $0x20] sm:$0xff] %vm890_vm1, %v886_v16 }
  0xb7   : > { %892 = vst.msk [vmem:[#allocation2 + $0x8] sm:$0xff] %vm890_vm1, %v878_v19 }
  0xb8   : > { %894 = vst.msk [vmem:[#allocation2 + $0x18] sm:$0xff] %vm890_vm1, %v883_v20 }
  0xbb   : > { %v887_v22 = vpop.f32.mrf.mxu2 }
  0xbc   : > { %v888_v23 = vadd.f32 %v887_v22, %v822_v21 }
  0xbe   : > { %896 = vst.msk [vmem:[#allocation2 + $0x28] sm:$0xff] %vm890_vm1, %v888_v23 }
  0xbf PF: > { %v901_v24 = vld [vmem:[#allocation2 + $0x20] sm:$0xff]  ;;  %vm5424_vm2 = vcmask 261120   ;;  %v899_v25 = vld [vmem:[#allocation2 + $0x10] sm:$0xff]  ;;  %v900_v31 = vld [vmem:[#allocation2 + $0x18] sm:$0xff]  ;;  %v3946_v36 = vmov 32.0   ;;  %s5447_s3 = scalar_lea.vmem %s5405_s7, %s4079_s22  ;;  %s5448_s23 = scalar_lea.vmem %s5406_s8, %s4079_s22 }
  0xc0   : > { %v897_v26 = vld [vmem:[#allocation2] sm:$0xff]  ;;  %v918_v27 = vsel %vm5424_vm2, %v901_v24, 0.0  ;;  %v912_v28 = vsel %vm5424_vm2, %v899_v25, 0.0  ;;  %v898_v32 = vld [vmem:[#allocation2 + $0x8] sm:$0xff]  ;;  %v915_v34 = vsel %vm5424_vm2, %v900_v31, 0.0  ;;  %3733 = vrcp.f32 %v3946_v36  ;;  %s5449_s30 = scalar_lea.vmem %s5408_s10, %s4079_s22  ;;  %s3947_s6 = smov 120  }
  0xc1   : > { %v906_v29 = vsel %vm5424_vm2, %v897_v26, 0.0  ;;  %919 = vadd.xlane.f32.xlu2 %v918_v27  ;;  %913 = vadd.xlane.f32.xlu1 %v912_v28  ;;  %v909_v35 = vsel %vm5424_vm2, %v898_v32, 0.0  ;;  %v3617_v9 = vld [vmem:[%s4097_s1 + $0x8] sm:$0xff]  ;;  %v3616_v15 = vld [vmem:[%s4097_s1] sm:$0xff]  ;;  %s3948_s1 = smov 96   ;;  %s3949_s24 = smov 112  }
  0xc2   : > { %907 = vadd.xlane.f32.xlu0 %v906_v29  ;;  %1101 = vmatpush.bf16.msra.mxu0 %v3617_v9  ;;  %s3951_s29 = smov 64   ;;  %s3952_s27 = smov 8  }
  0xc3   : > { %s3954_s19 = smov 24   ;;  %p3592_p6 = scmp.ne.s32.totalorder %s3936_s0, 1 }
  0xc4   : > { %s5526_s5 = sld [smem:[#allocation12_spill]] (!%p3592_p6) }
  0xc5   : > { %v902_v30 = vld [vmem:[#allocation2 + $0x28] sm:$0xff] }
  0xc6   : > { %v921_v33 = vsel %vm5424_vm2, %v902_v30, 0.0  ;;  %v3734_v37 = vpop.eup %3733  ;;  %1102 = vmatpush.bf16.msra.mxu0 %v3616_v15 }
  0xc7   : > { %v925_v38 = vmul.f32 32.0, %v3734_v37  ;;  %vm929_vm3 = vweird.f32 %v3734_v37 }
  0xc9   : > { %922 = vadd.xlane.f32.xlu2 %v921_v33  ;;  %916 = vadd.xlane.f32.xlu1 %v915_v34  ;;  %v926_v39 = vsub.f32 1.0, %v925_v38 }
  0xca   : > { %910 = vadd.xlane.f32.xlu0 %v909_v35 }
  0xcb   : > { %v927_v40 = vmul.f32 %v3734_v37, %v926_v39 }
  0xcd   : > { %v928_v41 = vadd.f32 %v3734_v37, %v927_v40 }
  0xcf   : > { %v4184_v42 = vsel %vm929_vm3, %v3734_v37, %v928_v41 }
 0x134   : > { %v920_v43 = vpop.xlane.xlu2 %919  ;;  %v914_v44 = vpop.xlane.xlu1 %913 }
 0x135   : > { %v933_v45 = vmul.f32 %v4184_v42, %v914_v44  ;;  %v908_v46 = vpop.xlane.xlu0 %907  ;;  %v935_v59 = vmul.f32 %v4184_v42, %v920_v43 }
 0x136   : > { %v931_v47 = vmul.f32 %v4184_v42, %v908_v46 }
 0x137   : > { %v4188_v48 = vsub.f32 %v899_v25, %v933_v45  ;;  %v4212_v2 = vsub.f32 %v901_v24, %v935_v59 }
 0x138   : > { %v4190_v49 = vsub.f32 %v897_v26, %v931_v47 }
 0x139   : > { %v945_v50 = vmul.f32 %v4188_v48, %v4188_v48  ;;  %v947_v7 = vmul.f32 %v4212_v2, %v4212_v2 }
 0x13a   : > { %v943_v51 = vmul.f32 %v4190_v49, %v4190_v49 }
 0x13b   : > { %v955_v52 = vsel %vm5424_vm2, %v945_v50, 0.0  ;;  %v961_v8 = vsel %vm5424_vm2, %v947_v7, 0.0 }
 0x13c   : > { %v923_v53 = vpop.xlane.xlu2 %922  ;;  %956 = vadd.xlane.f32.xlu2 %v955_v52  ;;  %v917_v54 = vpop.xlane.xlu1 %916  ;;  %v949_v55 = vsel %vm5424_vm2, %v943_v51, 0.0  ;;  %v3725_v52 = vld [vmem:[%s5447_s3] ss:$0 sm:$0xff]  ;;  %s3950_s3 = smov 104  }
 0x13d   : > { %v936_v56 = vmul.f32 %v4184_v42, %v923_v53  ;;  %v934_v57 = vmul.f32 %v4184_v42, %v917_v54  ;;  %950 = vadd.xlane.f32.xlu0 %v949_v55  ;;  %v911_v58 = vpop.xlane.xlu0 %910 }
 0x13e   : > { %v932_v60 = vmul.f32 %v4184_v42, %v911_v58 }
 0x13f   : > { %v4202_v61 = vsub.f32 %v902_v30, %v936_v56  ;;  %v4204_v62 = vsub.f32 %v900_v31, %v934_v57 }
 0x140   : > { %v4206_v63 = vsub.f32 %v898_v32, %v932_v60 }
 0x141   : > { %v948_v0 = vmul.f32 %v4202_v61, %v4202_v61  ;;  %v946_v1 = vmul.f32 %v4204_v62, %v4204_v62 }
 0x142   : > { %v944_v3 = vmul.f32 %v4206_v63, %v4206_v63 }
 0x143   : > { %v964_v4 = vsel %vm5424_vm2, %v948_v0, 0.0  ;;  %v958_v5 = vsel %vm5424_vm2, %v946_v1, 0.0 }
 0x144   : > { %965 = vadd.xlane.f32.xlu2 %v964_v4  ;;  %v952_v6 = vsel %vm5424_vm2, %v944_v3, 0.0 }
 0x145   : > { %959 = vadd.xlane.f32.xlu0 %v958_v5  ;;  %953 = vadd.xlane.f32.xlu1 %v952_v6 }
 0x14d   : > { %962 = vadd.xlane.f32.xlu1 %v961_v8 }
 0x1af   : > { %v957_v10 = vpop.xlane.xlu2 %956 }
 0x1b0   : > { %v951_v11 = vpop.xlane.xlu0 %950  ;;  %v969_v13 = vmul.f32 %v957_v10, %v4184_v42 }
 0x1b1   : > { %v967_v12 = vmul.f32 %v951_v11, %v4184_v42 }
 0x1b2   : > { %v4226_v16 = vadd.f32 1e-06, %v969_v13 }
 0x1b3   : > { %v973_v14 = vadd.f32 1e-06, %v967_v12 }
 0x1b4   : > { %vm1005_vm12 = vweird.f32 %v4226_v16 }
 0x1b5   : > { %3735 = vrsqrt.f32 %v973_v14  ;;  %vm985_vm5 = vweird.f32 %v973_v14 }
 0x1b6   : > { %3737 = vrsqrt.f32 %v4226_v16 }
 0x1b7   : > { %v966_v27 = vpop.xlane.xlu2 %965 }
 0x1b8   : > { %v954_v17 = vpop.xlane.xlu1 %953  ;;  %v960_v18 = vpop.xlane.xlu0 %959  ;;  %v972_v33 = vmul.f32 %v966_v27, %v4184_v42 }
 0x1b9   : > { %v968_v19 = vmul.f32 %v954_v17, %v4184_v42  ;;  %v970_v20 = vmul.f32 %v960_v18, %v4184_v42 }
 0x1ba   : > { %v978_v41 = vadd.f32 1e-06, %v972_v33  ;;  %v3727_v33 = vld [vmem:[%s5449_s30] ss:$0 sm:$0xff]  ;;  %s5502_s30 = scalar_lea.vmem %s5410_s12, %s4079_s22 }
 0x1bb   : > { %v3736_v21 = vpop.eup %3735  ;;  %v974_v22 = vadd.f32 1e-06, %v968_v19  ;;  %v976_v23 = vadd.f32 1e-06, %v970_v20 }
 0x1bc   : > { %v980_v24 = vmul.f32 %v3736_v21, %v973_v14  ;;  %v3738_v29 = vpop.eup %3737  ;;  %vm986_vm4 = vweird.f32 %v3736_v21  ;;  %vm1035_vm3 = vweird.f32 %v978_v41 }
 0x1bd   : > { %3739 = vrsqrt.f32 %v974_v22  ;;  %v1000_v35 = vmul.f32 %v3738_v29, %v4226_v16  ;;  %vm987_vm6 = vmor %vm985_vm5, %vm986_vm4  ;;  %vm995_vm8 = vweird.f32 %v974_v22  ;;  %vm1015_vm10 = vweird.f32 %v976_v23 }
 0x1be   : > { %v981_v25 = vmul.f32 %v3736_v21, %v980_v24  ;;  %3741 = vrsqrt.f32 %v976_v23  ;;  %vm1006_vm13 = vweird.f32 %v3738_v29 }
 0x1bf   : > { %v1001_v44 = vmul.f32 %v3738_v29, %v1000_v35  ;;  %vm1007_vm15 = vmor %vm1005_vm12, %vm1006_vm13 }
 0x1c0   : > { %v982_v26 = vmul.f32 0.5, %v981_v25  ;;  %v963_v28 = vpop.xlane.xlu1 %962 }
 0x1c1   : > { %v971_v30 = vmul.f32 %v963_v28, %v4184_v42  ;;  %v1002_v53 = vmul.f32 0.5, %v1001_v44 }
 0x1c2   : > { %v983_v31 = vsub.f32 1.5, %v982_v26 }
 0x1c3   : > { %v3740_v32 = vpop.eup %3739  ;;  %v977_v39 = vadd.f32 1e-06, %v971_v30  ;;  %v1003_v60 = vsub.f32 1.5, %v1002_v53 }
 0x1c4   : > { %v3742_v34 = vpop.eup %3741  ;;  %v984_v36 = vmul.f32 %v3736_v21, %v983_v31  ;;  %v990_v37 = vmul.f32 %v3740_v32, %v974_v22  ;;  %vm996_vm7 = vweird.f32 %v3740_v32 }
 0x1c5   : > { %v1010_v38 = vmul.f32 %v3742_v34, %v976_v23  ;;  %3743 = vrsqrt.f32 %v977_v39  ;;  %vm997_vm9 = vmor %vm995_vm8, %vm996_vm7  ;;  %vm1016_vm11 = vweird.f32 %v3742_v34  ;;  %vm1025_vm0 = vweird.f32 %v977_v39 }
 0x1c6   : > { %v991_v40 = vmul.f32 %v3740_v32, %v990_v37  ;;  %v988_v45 = vsel %vm987_vm6, %v3736_v21, %v984_v36  ;;  %3745 = vrsqrt.f32 %v978_v41  ;;  %vm1017_vm14 = vmor %vm1015_vm10, %vm1016_vm11  ;;  %vm5425_vm7 = vcmask 64512  }
 0x1c7   : > { %v1011_v43 = vmul.f32 %v3742_v34, %v1010_v38  ;;  %v1039_v51 = vmul.f32 %v988_v45, %v4190_v49  ;;  %v3726_v49 = vld [vmem:[%s5448_s23] ss:$0 sm:$0xff]  ;;  %vm5426_vm10 = vcmask 1043456   ;;  %s3953_s23 = smov 16  }
 0x1c8   : > { %v992_v46 = vmul.f32 0.5, %v991_v40 }
 0x1c9   : > { %v1012_v50 = vmul.f32 0.5, %v1011_v43  ;;  %v1048_v59 = vmul.f32 %v3725_v52, %v1039_v51 }
 0x1ca   : > { %v993_v47 = vsub.f32 1.5, %v992_v46 }
 0x1cb   : > { %v1013_v56 = vsub.f32 1.5, %v1012_v50  ;;  %v3744_v57 = vpop.eup %3743  ;;  %v1057_v5 = vadd.f32 %v3726_v49, %v1048_v59 }
 0x1cc   : > { %v994_v54 = vmul.f32 %v3740_v32, %v993_v47  ;;  %v3746_v0 = vpop.eup %3745  ;;  %v1020_v4 = vmul.f32 %v3744_v57, %v977_v39  ;;  %vm1026_vm1 = vweird.f32 %v3744_v57 }
 0x1cd   : > { %v1014_v3 = vmul.f32 %v3742_v34, %v1013_v56  ;;  %v1030_v7 = vmul.f32 %v3746_v0, %v978_v41  ;;  %vm1036_vm4 = vweird.f32 %v3746_v0  ;;  %vm1027_vm5 = vmor %vm1025_vm0, %vm1026_vm1 }
 0x1ce   : > { %v998_v55 = vsel %vm997_vm9, %v3740_v32, %v994_v54  ;;  %v1021_v10 = vmul.f32 %v3744_v57, %v1020_v4  ;;  %vm1037_vm6 = vmor %vm1035_vm3, %vm1036_vm4  ;;  %vm5427_vm9 = vcmask 195584  }
 0x1cf   : > { %v1040_v58 = vmul.f32 %v998_v55, %v4206_v63  ;;  %v1004_v63 = vmul.f32 %v3738_v29, %v1003_v60  ;;  %v1018_v9 = vsel %vm1017_vm14, %v3742_v34, %v1014_v3  ;;  %v1031_v12 = vmul.f32 %v3746_v0, %v1030_v7 }
 0x1d0   : > { %v1042_v13 = vmul.f32 %v1018_v9, %v4204_v62  ;;  %v1022_v14 = vmul.f32 0.5, %v1021_v10 }
 0x1d1   : > { %v1049_v1 = vmul.f32 %v3725_v52, %v1040_v58  ;;  %v1008_v11 = vsel %vm1007_vm15, %v3738_v29, %v1004_v63  ;;  %v1032_v16 = vmul.f32 0.5, %v1031_v12 }
 0x1d2   : > { %v1041_v15 = vmul.f32 %v1008_v11, %v4188_v48  ;;  %v1051_v17 = vmul.f32 %v3725_v52, %v1042_v13  ;;  %v1023_v18 = vsub.f32 1.5, %v1022_v14 }
 0x1d3   : > { %v1058_v6 = vadd.f32 %v3726_v49, %v1049_v1  ;;  %v1033_v20 = vsub.f32 1.5, %v1032_v16 }
 0x1d4   : > { %v1050_v19 = vmul.f32 %v3725_v52, %v1041_v15  ;;  %v1060_v21 = vadd.f32 %v3726_v49, %v1051_v17  ;;  %v1024_v22 = vmul.f32 %v3744_v57, %v1023_v18 }
 0x1d5   : > { %v1063_v8 = vpack.c.bf16 %v1058_v6, %v1057_v5  ;;  %v1034_v24 = vmul.f32 %v3746_v0, %v1033_v20 }
 0x1d6   : > { %v1059_v23 = vadd.f32 %v3726_v49, %v1050_v19  ;;  %v1028_v25 = vsel %vm1027_vm5, %v3744_v57, %v1024_v22 }
 0x1d7   : > { %3503 = vmatmul.msk.bf16.vlgmr.msra.gmra.mxu0 %vm5424_vm2, %v1063_v8  ;;  %v1038_v48 = vsel %vm1037_vm6, %v3746_v0, %v1034_v24  ;;  %v1043_v26 = vmul.f32 %v1028_v25, %v4212_v2 }
 0x1d8   : > { %v1064_v62 = vpack.c.bf16 %v1060_v21, %v1059_v23  ;;  %v1044_v27 = vmul.f32 %v1038_v48, %v4202_v61 }
 0x1d9   : > { %v1052_v28 = vmul.f32 %v3725_v52, %v1043_v26 }
 0x1da   : > { %v1053_v29 = vmul.f32 %v3725_v52, %v1044_v27 }
 0x1db   : > { %v1061_v30 = vadd.f32 %v3726_v49, %v1052_v28 }
 0x1dc   : > { %v1062_v31 = vadd.f32 %v3726_v49, %v1053_v29 }
 0x1de   : > { %v1065_v32 = vpack.c.bf16 %v1062_v31, %v1061_v30 }
 0x1e7   : > { %3504 = vmatmul.msk.bf16.gmra.mxu0 %vm5424_vm2, %v1064_v62 }
 0x1f7   : > { %3505 = vmatmul.msk.bf16.gmra.mxu0 %vm5424_vm2, %v1065_v32 }
 0x254   : > { %v1104_v34 = vpop.f32.mrf.mxu0 }
 0x255   : > { %v1105_v35 = vadd.f32 %v3727_v33, %v1104_v34 }
 0x257   : > { %v1119_v36 = vpack.c.bf16 %v1105_v35, %v1105_v35 }
 0x259   : > { %1131 = vrot.lane.b32.xlu1 %v1119_v36, %s3947_s6  ;;  %v1167_v55 = vunpack.c.l.b16 %v1119_v36 }
 0x25c   : > { %v1106_v2 = vpop.f32.mrf.mxu0 }
 0x25d   : > { %v1107_v61 = vadd.f32 %v3727_v33, %v1106_v2 }
 0x25f   : > { %v1120_v37 = vpack.c.bf16 %v1107_v61, %v1107_v61 }
 0x261   : > { %1133 = vrot.lane.b32.xlu2 %v1120_v37, %s3947_s6  ;;  %v1168_v53 = vunpack.c.l.b16 %v1120_v37 }
 0x263   : > { %v4271_v57 = vpack.c.b16 %v1168_v53, %v1167_v55 }
 0x264   : > { %v1109_v38 = vpop.f32.mrf.mxu0 }
 0x265   : > { %v1110_v39 = vadd.f32 %v3727_v33, %v1109_v38 }
 0x267   : > { %v1121_v40 = vpack.c.bf16 %v1110_v39, %v1110_v39 }
 0x269   : > { %1135 = vrot.lane.b32.xlu0 %v1121_v40, %s3947_s6  ;;  %v1169_v45 = vunpack.c.l.b16 %v1121_v40 }
 0x26b   : > { %v4266_v51 = vpack.c.b16 %v1169_v45, %v1169_v45 }
 0x26c   : > { %v1111_v41 = vpop.f32.mrf.mxu0 }
 0x26d   : > { %v1112_v43 = vadd.f32 %v3727_v33, %v1111_v41 }
 0x26f   : > { %v4262_v44 = vpack.c.bf16 %v1112_v43, %v1112_v43 }
 0x271   : > { %1137 = vrot.lane.b32.xlu2 %v4262_v44, %s3947_s6  ;;  %v1207_v60 = vunpack.c.l.b16 %v4262_v44 }
 0x274   : > { %v1114_v46 = vpop.f32.mrf.mxu0 }
 0x275   : > { %v1115_v47 = vadd.f32 %v3727_v33, %v1114_v46 }
 0x277   : > { %v1123_v50 = vpack.c.bf16 %v1115_v47, %v1115_v47 }
 0x279   : > { %1139 = vrot.lane.b32.xlu1 %v1123_v50, %s3947_s6  ;;  %1174 = vrot.lane.b32.xlu2 %v4266_v51, %s3948_s1  ;;  %v1208_v49 = vunpack.c.l.b16 %v1123_v50 }
 0x27b   : > { %v4283_v0 = vpack.c.b16 %v1208_v49, %v1207_v60 }
 0x27c   : > { %v1116_v52 = vpop.f32.mrf.mxu0 }
 0x27d   : > { %v1117_v54 = vadd.f32 %v3727_v33, %v1116_v52 }
 0x27f   : > { %v1124_v56 = vpack.c.bf16 %v1117_v54, %v1117_v54 }
 0x281   : > { %1143 = vrot.lane.b32.xlu1 %v1119_v36, %s3949_s24  ;;  %1141 = vrot.lane.b32.xlu0 %v1124_v56, %s3947_s6  ;;  %v1209_v58 = vunpack.c.l.b16 %v1124_v56  ;;  %s5527_s6 = sld [smem:[#allocation13_spill]] (!%p3592_p6) }
 0x282   : > { %1172 = vrot.lane.b32.xlu2 %v4271_v57, %s3948_s1 }
 0x283   : > { %v4277_v59 = vpack.c.b16 %v1209_v58, %v1209_v58 }
 0x289   : > { %1214 = vrot.lane.b32.xlu1 %v4277_v59, %s3948_s1  ;;  %1147 = vrot.lane.b32.xlu0 %v1121_v40, %s3949_s24 }
 0x291   : > { %1212 = vrot.lane.b32.xlu1 %v4283_v0, %s3948_s1  ;;  %1145 = vrot.lane.b32.xlu0 %v1120_v37, %s3949_s24 }
 0x299   : > { %1153 = vrot.lane.b32.xlu1 %v1124_v56, %s3949_s24  ;;  %1159 = vrot.lane.b32.xlu0 %v1121_v40, %s3950_s3 }
 0x2a1   : > { %1151 = vrot.lane.b32.xlu1 %v1123_v50, %s3949_s24  ;;  %1155 = vrot.lane.b32.xlu0 %v1119_v36, %s3950_s3 }
 0x2bb   : > { %v1134_v1 = vpop.permute.xlu2 %1133 }
 0x2bc   : > { %v1247_v5 = vunpack.c.l.b16 %v1134_v1 }
 0x2cb   : > { %v1132_v3 = vpop.permute.xlu1 %1131  ;;  %v1138_v4 = vpop.permute.xlu2 %1137 }
 0x2cc   : > { %v1246_v6 = vunpack.c.l.b16 %v1132_v3  ;;  %v1285_v15 = vunpack.c.l.b16 %v1138_v4 }
 0x2ce   : > { %v4292_v63 = vpack.c.b16 %v1247_v5, %v1246_v6 }
 0x2d0   : > { %1251 = vrot.lane.b32.xlu0 %v4292_v63, %s3948_s1 }
 0x2d3   : > { %v1175_v7 = vpop.permute.xlu2 %1174 }
 0x2d4   : > { %v1187_v8 = vsel %vm5425_vm7, %v1175_v7, 0 }
 0x2d5   : > { %1195 = vmatpush.bf16.xpose.msra.mxu1 %v1187_v8 }
 0x2db   : > { %v1136_v9 = vpop.permute.xlu0 %1135 }
 0x2dc   : > { %v1248_v10 = vunpack.c.l.b16 %v1136_v9  ;;  %v1173_v11 = vpop.permute.xlu2 %1172 }
 0x2dd   : > { %v1184_v12 = vsel %vm5425_vm7, %v1173_v11, 0 }
 0x2de   : > { %v4298_v13 = vpack.c.b16 %v1248_v10, %v1248_v10  ;;  %1196 = vmatpush.bf16.xpose.msra.mxu1 %v1184_v12 }
 0x2e0   : > { %1253 = vrot.lane.b32.xlu2 %v4298_v13, %s3948_s1 }
 0x2e5   : > { %3506 = vmatmul.msk.bf16.vlgmr.msra.gmra.mxu1 %vm5425_vm7, %v4271_v57 }
 0x2e8   : > { %1157 = vrot.lane.b32.xlu2 %v1120_v37, %s3950_s3 }
 0x2eb   : > { %v1140_v14 = vpop.permute.xlu1 %1139 }
 0x2ec   : > { %v1286_v16 = vunpack.c.l.b16 %v1140_v14 }
 0x2ee   : > { %v4305_v17 = vpack.c.b16 %v1286_v16, %v1285_v15  ;;  %v1504_v15 = vlaneseq }
 0x2f0   : > { %1290 = vrot.lane.b32.xlu1 %v4305_v17, %s3948_s1  ;;  %1149 = vrot.lane.b32.xlu2 %v4262_v44, %s3949_s24 }
 0x2f3   : > { %v1144_v18 = vpop.permute.xlu1 %1143  ;;  %v1142_v19 = vpop.permute.xlu0 %1141 }
 0x2f4   : > { %v1287_v20 = vunpack.c.l.b16 %v1142_v19  ;;  %v1324_v27 = vunpack.c.l.b16 %v1144_v18 }
 0x2f5   : > { %3507 = vmatmul.msk.bf16.gmra.mxu1 %vm5425_vm7, %v4266_v51 }
 0x2f6   : > { %v4313_v21 = vpack.c.b16 %v1287_v20, %v1287_v20 }
 0x2f8   : > { %1163 = vrot.lane.b32.xlu1 %v1123_v50, %s3950_s3  ;;  %1292 = vrot.lane.b32.xlu0 %v4313_v21, %s3948_s1 }
 0x2f9   : > { %1165 = vrot.lane.b32.xlu2 %v1124_v56, %s3950_s3 }
 0x2fb   : > { %v1215_v22 = vpop.permute.xlu1 %1214  ;;  %v1148_v23 = vpop.permute.xlu0 %1147 }
 0x2fc   : > { %v1326_v24 = vunpack.c.l.b16 %v1148_v23  ;;  %v1226_v62 = vsel %vm5425_vm7, %v1215_v22, 0 }
 0x2fd   : > { %1234 = vmatpush.bf16.xpose.msra.mxu2 %v1226_v62 }
 0x2fe   : > { %v4320_v25 = vpack.c.b16 %v1326_v24, %v1326_v24 }
 0x300   : > { %1331 = vrot.lane.b32.xlu0 %v4320_v25, %s3948_s1 }
 0x301   : > { %1161 = vrot.lane.b32.xlu2 %v4262_v44, %s3950_s3  ;;  %s5518_s3 = scalar_lea.vmem %s5416_s18, %s4079_s22 }
 0x303   : > { %v1213_v48 = vpop.permute.xlu1 %1212  ;;  %v1146_v26 = vpop.permute.xlu0 %1145 }
 0x304   : > { %v1325_v28 = vunpack.c.l.b16 %v1146_v26  ;;  %v1223_v29 = vsel %vm5425_vm7, %v1213_v48, 0 }
 0x305   : > { %1235 = vmatpush.bf16.xpose.msra.mxu2 %v1223_v29 }
 0x306   : > { %v4327_v30 = vpack.c.b16 %v1325_v28, %v1324_v27 }
 0x308   : > { %1329 = vrot.lane.b32.xlu0 %v4327_v30, %s3948_s1 }
 0x30b   : > { %v1154_v31 = vpop.permute.xlu1 %1153  ;;  %v1160_v32 = vpop.permute.xlu0 %1159 }
 0x30c   : > { %v1365_v33 = vunpack.c.l.b16 %v1154_v31  ;;  %v1404_v34 = vunpack.c.l.b16 %v1160_v32  ;;  %3508 = vmatmul.msk.bf16.vlgmr.msra.gmra.mxu2 %vm5425_vm7, %v4283_v0 }
 0x30e   : > { %v4333_v35 = vpack.c.b16 %v1365_v33, %v1365_v33  ;;  %v4335_v36 = vpack.c.b16 %v1404_v34, %v1404_v34 }
 0x310   : > { %1370 = vrot.lane.b32.xlu0 %v4333_v35, %s3948_s1  ;;  %1409 = vrot.lane.b32.xlu2 %v4335_v36, %s3948_s1 }
 0x313   : > { %v1156_v2 = vpop.permute.xlu0 %1155  ;;  %v1152_v45 = vpop.permute.xlu1 %1151 }
 0x314   : > { %v1402_v40 = vunpack.c.l.b16 %v1156_v2  ;;  %v1364_v47 = vunpack.c.l.b16 %v1152_v45 }
 0x31c   : > { %3509 = vmatmul.msk.bf16.gmra.mxu2 %vm5425_vm7, %v4277_v59 }
 0x33a   : > { %v1254_v61 = vpop.permute.xlu2 %1253 }
 0x33b   : > { %v1265_v37 = vsel %vm5425_vm7, %v1254_v61, 0 }
 0x33c   : > { %1273 = vmatpush.bf16.xpose.msra.mxu3 %v1265_v37 }
 0x342   : > { %v1252_v38 = vpop.permute.xlu0 %1251  ;;  %v1158_v39 = vpop.permute.xlu2 %1157 }
 0x343   : > { %v1403_v41 = vunpack.c.l.b16 %v1158_v39  ;;  %v1262_v43 = vsel %vm5425_vm7, %v1252_v38, 0 }
 0x344   : > { %1274 = vmatpush.bf16.xpose.msra.mxu3 %v1262_v43 }
 0x345   : > { %v4345_v44 = vpack.c.b16 %v1403_v41, %v1402_v40 }
 0x347   : > { %1407 = vrot.lane.b32.xlu1 %v4345_v44, %s3948_s1 }
 0x34a   : > { %v1150_v46 = vpop.permute.xlu2 %1149 }
 0x34b   : > { %v1363_v50 = vunpack.c.l.b16 %v1150_v46  ;;  %3510 = vmatmul.msk.bf16.vlgmr.msra.gmra.mxu3 %vm5425_vm7, %v4292_v63 }
 0x34d   : > { %v4351_v52 = vpack.c.b16 %v1364_v47, %v1363_v50 }
 0x34f   : > { %1368 = vrot.lane.b32.xlu2 %v4351_v52, %s3948_s1 }
 0x353   : > { %v1166_v53 = vpop.permute.xlu2 %1165 }
 0x354   : > { %v1443_v54 = vunpack.c.l.b16 %v1166_v53 }
 0x356   : > { %v4355_v55 = vpack.c.b16 %v1443_v54, %v1443_v54 }
 0x357   : > { %2144 = vrot.lane.b32.xlu2 %v4266_v51, %s3951_s29 }
 0x358   : > { %1448 = vrot.lane.b32.xlu1 %v4355_v55, %s3948_s1 }
 0x35b   : > { %3511 = vmatmul.msk.bf16.gmra.mxu3 %vm5425_vm7, %v4298_v13  ;;  %v1162_v49 = vpop.permute.xlu2 %1161 }
 0x35c   : > { %v1441_v1 = vunpack.c.l.b16 %v1162_v49 }
 0x35f   : > { %2225 = vrot.lane.b32.xlu2 %v4298_v13, %s3951_s29 }
 0x360   : > { %2142 = vrot.lane.b32.xlu1 %v4271_v57, %s3951_s29 }
 0x362   : > { %v1198_v56 = vpop.f32.mrf.mxu1  ;;  %v1291_v58 = vpop.permute.xlu1 %1290 }
 0x363   : > { %v1301_v9 = vsel %vm5425_vm7, %v1291_v58, 0  ;;  %v1480_v23 = vmul.f32 0.35355338, %v1198_v56 }
 0x367   : > { %2223 = vrot.lane.b32.xlu2 %v4292_v63, %s3951_s29 }
 0x368   : > { %2265 = vrot.lane.b32.xlu1 %v4313_v21, %s3951_s29 }
 0x36a   : > { %v1200_v51 = vpop.f32.mrf.mxu1  ;;  %v1164_v60 = vpop.permute.xlu1 %1163 }
 0x36b   : > { %v1442_v3 = vunpack.c.l.b16 %v1164_v60  ;;  %v1293_v4 = vpop.permute.xlu0 %1292  ;;  %v1410_v5 = vpop.permute.xlu2 %1409  ;;  %v1481_v16 = vmul.f32 0.35355338, %v1200_v51 }
 0x36c   : > { %v1304_v6 = vsel %vm5425_vm7, %v1293_v4, 0  ;;  %v1421_v7 = vsel %vm5425_vm7, %v1410_v5, 0 }
 0x36d   : > { %v4373_v57 = vpack.c.b16 %v1442_v3, %v1441_v1  ;;  %1312 = vmatpush.bf16.xpose.msrb.mxu1 %v1304_v6  ;;  %1429 = vmatpush.bf16.xpose.msrb.mxu0 %v1421_v7 }
 0x36f   : > { %2183 = vrot.lane.b32.xlu2 %v4283_v0, %s3951_s29  ;;  %1446 = vrot.lane.b32.xlu0 %v4373_v57, %s3948_s1 }
 0x372   : > { %v1203_v63 = vpop.f32.mrf.mxu1 }
 0x373   : > { %v1332_v8 = vpop.permute.xlu0 %1331  ;;  %v1482_v22 = vmul.f32 0.35355338, %v1203_v63 }
 0x374   : > { %v1343_v10 = vsel %vm5425_vm7, %v1332_v8, 0 }
 0x375   : > { %1313 = vmatpush.bf16.xpose.msrb.mxu1 %v1301_v9  ;;  %1351 = vmatpush.bf16.xpose.msrb.mxu2 %v1343_v10 }
 0x377   : > { %2303 = vrot.lane.b32.xlu2 %v4327_v30, %s3951_s29  ;;  %2185 = vrot.lane.b32.xlu0 %v4277_v59, %s3951_s29  ;;  %v4395_v59 = vand.u32 127, %v1504_v15 }
 0x379   : > { %vm1506_vm8 = vcmp.lt.s32.totalorder %v4395_v59, 17 }
 0x37a   : > { %v1205_v11 = vpop.f32.mrf.mxu1  ;;  %v4402_v18 = vsel %vm1506_vm8, %v1481_v16, -1e+30  ;;  %v4416_v48 = vsel %vm1506_vm8, %v1480_v23, -1e+30 }
 0x37b   : > { %v1330_v0 = vpop.permute.xlu0 %1329  ;;  %v1537_v20 = vsel %vm5427_vm9, %v4402_v18, -inf  ;;  %v1534_v27 = vsel %vm5427_vm9, %v4416_v48, -inf }
 0x37c   : > { %3512 = vmatmul.msk.bf16.vlgmr.msrb.gmra.mxu1 %vm5425_vm7, %v4305_v17  ;;  %v1340_v12 = vsel %vm5425_vm7, %v1330_v0, 0 }
 0x37d   : > { %3638 = vmatpush.bf16.xpose.msra.mxu1 %v1421_v7  ;;  %1352 = vmatpush.bf16.xpose.msrb.mxu2 %v1340_v12 }
 0x37f   : > { %2305 = vrot.lane.b32.xlu0 %v4320_v25, %s3951_s29 }
 0x383   : > { %v1371_v13 = vpop.permute.xlu0 %1370 }
 0x384   : > { %3514 = vmatmul.msk.bf16.vlgmr.msrb.gmra.mxu2 %vm5425_vm7, %v4327_v30  ;;  %v1382_v14 = vsel %vm5425_vm7, %v1371_v13, 0 }
 0x385   : > { %1390 = vmatpush.bf16.xpose.msrb.mxu3 %v1382_v14 }
 0x387   : > { %2263 = vrot.lane.b32.xlu0 %v4305_v17, %s3951_s29  ;;  %v4410_v17 = vsel %vm1506_vm8, %v1482_v22, -1e+30 }
 0x388   : > { %v1540_v24 = vsel %vm5427_vm9, %v4410_v17, -inf }
 0x38c   : > { %3513 = vmatmul.msk.bf16.gmra.mxu1 %vm5425_vm7, %v4313_v21 }
 0x38f   : > { %v1237_v19 = vpop.f32.mrf.mxu2 }
 0x390   : > { %v1483_v28 = vmul.f32 0.35355338, %v1237_v19 }
 0x392   : > { %1538 = vmax.xlane.f32.xlu1 %v1537_v20  ;;  %v4428_v30 = vsel %vm1506_vm8, %v1483_v28, -1e+30 }
 0x393   : > { %v1543_v32 = vsel %vm5427_vm9, %v4428_v30, -inf }
 0x394   : > { %3515 = vmatmul.msk.bf16.gmra.mxu2 %vm5425_vm7, %v4320_v25 }
 0x397   : > { %v1239_v21 = vpop.f32.mrf.mxu2 }
 0x398   : > { %v1484_v62 = vmul.f32 0.35355338, %v1239_v21 }
 0x39a   : > { %1541 = vmax.xlane.f32.xlu1 %v1540_v24  ;;  %v4420_v26 = vsel %vm1506_vm8, %v1484_v62, -1e+30 }
 0x39b   : > { %v1546_v29 = vsel %vm5427_vm9, %v4420_v26, -inf }
 0x39f   : > { %v1242_v25 = vpop.f32.mrf.mxu2 }
 0x3a0   : > { %1535 = vmax.xlane.f32.xlu2 %v1534_v27  ;;  %v1485_v33 = vmul.f32 0.35355338, %v1242_v25 }
 0x3a2   : > { %1547 = vmax.xlane.f32.xlu1 %v1546_v29  ;;  %v4435_v61 = vsel %vm1506_vm8, %v1485_v33, -1e+30 }
 0x3a3   : > { %v1549_v37 = vsel %vm5427_vm9, %v4435_v61, -inf }
 0x3a7   : > { %v1244_v31 = vpop.f32.mrf.mxu2 }
 0x3a8   : > { %1544 = vmax.xlane.f32.xlu2 %v1543_v32 }
 0x3a9   : > { %v1369_v34 = vpop.permute.xlu2 %1368 }
 0x3aa   : > { %v1379_v2 = vsel %vm5425_vm7, %v1369_v34, 0 }
 0x3ab   : > { %1391 = vmatpush.bf16.xpose.msrb.mxu3 %v1379_v2 }
 0x3b1   : > { %1550 = vmax.xlane.f32.xlu0 %v1549_v37  ;;  %v2145_v38 = vpop.permute.xlu2 %2144 }
 0x3b2   : > { %v2155_v39 = vsel %vm5426_vm10, %v2145_v38, 0  ;;  %3516 = vmatmul.msk.bf16.vlgmr.msrb.gmra.mxu3 %vm5425_vm7, %v4351_v52 }
 0x3b3   : > { %2163 = vmatpush.bf16.msra.mxu2 %v2155_v39 }
 0x3b9   : > { %v1408_v40 = vpop.permute.xlu1 %1407  ;;  %v2226_v41 = vpop.permute.xlu2 %2225 }
 0x3ba   : > { %v2235_v43 = vsel %vm5426_vm10, %v2226_v41, 0  ;;  %v1418_v45 = vsel %vm5425_vm7, %v1408_v40, 0 }
 0x3bb   : > { %1430 = vmatpush.bf16.xpose.msrb.mxu0 %v1418_v45  ;;  %3639 = vmatpush.bf16.xpose.msra.mxu1 %v1418_v45 }
 0x3c1   : > { %v2224_v46 = vpop.permute.xlu2 %2223 }
 0x3c2   : > { %3517 = vmatmul.msk.bf16.gmra.mxu3 %vm5425_vm7, %v4333_v35  ;;  %3518 = vmatmul.msk.bf16.vlgmr.msrb.gmra.mxu0 %vm5425_vm7, %v4345_v44 }
 0x3c3   : > { %2243 = vmatpush.bf16.msra.mxu0 %v2235_v43  ;;  %3519 = vmatmul.msk.bf16.vlgmr.msra.gmra.mxu1 %vm5425_vm7, %v4335_v36 }
 0x3c7   : > { %2244 = vmatpush.bf16.msra.mxu0 %v2224_v46 }
 0x3c9   : > { %v2184_v8 = vpop.permute.xlu2 %2183 }
 0x3ca   : > { %v1449_v47 = vpop.permute.xlu1 %1448 }
 0x3cb   : > { %v1460_v50 = vsel %vm5425_vm7, %v1449_v47, 0 }
 0x3cc   : > { %1468 = vmatpush.bf16.xpose.msrb.mxu1 %v1460_v50 }
 0x3ce   : > { %v1276_v53 = vpop.f32.mrf.mxu3 }
 0x3cf   : > { %v1486_v54 = vmul.f32 0.35355338, %v1276_v53 }
 0x3d1   : > { %v4453_v56 = vsel %vm1506_vm8, %v1486_v54, -1e+30  ;;  %v2304_v11 = vpop.permute.xlu2 %2303 }
 0x3d2   : > { %v2143_v58 = vpop.permute.xlu1 %2142  ;;  %v1552_v49 = vsel %vm5427_vm9, %v4453_v56, -inf }
 0x3d3   : > { %2164 = vmatpush.bf16.msra.mxu2 %v2143_v58  ;;  %1553 = vmax.xlane.f32.xlu0 %v1552_v49 }
 0x3d6   : > { %v4457_v51 = vpop.f32.mrf.mxu3 }
 0x3da   : > { %v2266_v1 = vpop.permute.xlu1 %2265 }
 0x3db   : > { %v2275_v5 = vsel %vm5426_vm10, %v2266_v1, 0 }
 0x3de   : > { %v1281_v60 = vpop.f32.mrf.mxu3 }
 0x3df   : > { %v1488_v32 = vmul.f32 0.35355338, %v1281_v60 }
 0x3e1   : > { %v1447_v3 = vpop.permute.xlu0 %1446  ;;  %v4490_v37 = vsel %vm1506_vm8, %v1488_v32, -1e+30 }
 0x3e2   : > { %v1457_v4 = vsel %vm5425_vm7, %v1447_v3, 0  ;;  %v1558_v39 = vsel %vm5427_vm9, %v4490_v37, -inf }
 0x3e3   : > { %1469 = vmatpush.bf16.xpose.msrb.mxu1 %v1457_v4 }
 0x3e6   : > { %v1283_v6 = vpop.f32.mrf.mxu3 }
 0x3e9   : > { %v2186_v7 = vpop.permute.xlu0 %2185 }
 0x3ea   : > { %v2195_v63 = vsel %vm5426_vm10, %v2186_v7, 0  ;;  %3520 = vmatmul.msk.bf16.vlgmr.msrb.gmra.mxu1 %vm5425_vm7, %v4373_v57 }
 0x3eb   : > { %2283 = vmatpush.bf16.msra.mxu1 %v2275_v5  ;;  %2203 = vmatpush.bf16.msra.mxu3 %v2195_v63 }
 0x3ef   : > { %2204 = vmatpush.bf16.msra.mxu3 %v2184_v8 }
 0x3f1   : > { %v2306_v9 = vpop.permute.xlu0 %2305 }
 0x3f2   : > { %v2315_v10 = vsel %vm5426_vm10, %v2306_v9, 0 }
 0x3f3   : > { %2323 = vmatpush.bf16.msrb.mxu2 %v2315_v10 }
 0x3f7   : > { %2324 = vmatpush.bf16.msrb.mxu2 %v2304_v11  ;;  %v1487_v11 = vmul.f32 0.35355338, %v4457_v51 }
 0x3f9   : > { %v1315_v0 = vpop.f32.mrf.mxu1  ;;  %v2264_v12 = vpop.permute.xlu0 %2263 }
 0x3fa   : > { %3521 = vmatmul.msk.bf16.gmra.mxu1 %vm5425_vm7, %v4355_v55  ;;  %v1489_v40 = vmul.f32 0.35355338, %v1315_v0 }
 0x3fb   : > { %2284 = vmatpush.bf16.msra.mxu1 %v2264_v12 }
 0x3fc   : > { %v4497_v45 = vsel %vm1506_vm8, %v1489_v40, -1e+30 }
 0x3fd   : > { %v1561_v47 = vsel %vm5427_vm9, %v4497_v45, -inf }
 0x401   : > { %v4467_v13 = vpop.f32.mrf.mxu1 }
 0x405   : > { %v1539_v14 = vpop.xlane.xlu1 %1538 }
 0x406   : > { %v1607_v20 = vsub.f32 %v4402_v18, %v1539_v14 }
 0x407   : > { %v1354_v15 = vpop.f32.mrf.mxu2 }
 0x408   : > { %v1492_v16 = vmul.f32 0.35355338, %v1354_v15  ;;  %v1632_v23 = vmul.f32 1.442695, %v1607_v20 }
 0x409   : > { %v4469_v19 = vpop.f32.mrf.mxu1 }
 0x40a   : > { %v4474_v22 = vsel %vm1506_vm8, %v1492_v16, -1e+30  ;;  %3747 = vpow2.f32 %v1632_v23  ;;  %v4529_v23 = vsel %vm1506_vm8, %v1487_v11, -1e+30 }
 0x40b   : > { %v1570_v21 = vsel %vm5427_vm9, %v4474_v22, -inf }
 0x40c   : > { %1571 = vmax.xlane.f32.xlu1 %v1570_v21 }
 0x40d   : > { %v1542_v34 = vpop.xlane.xlu1 %1541 }
 0x40e   : > { %v1608_v38 = vsub.f32 %v4410_v17, %v1542_v34 }
 0x40f   : > { %v1356_v24 = vpop.f32.mrf.mxu2 }
 0x410   : > { %v1493_v62 = vmul.f32 0.35355338, %v1356_v24  ;;  %v4484_v29 = vpop.eup %3747  ;;  %v1634_v41 = vmul.f32 1.442695, %v1608_v38 }
 0x411   : > { %v1322_v25 = vpop.f32.mrf.mxu1  ;;  %v1681_v31 = vsel %vm5427_vm9, %v4484_v29, 0.0 }
 0x412   : > { %v4480_v27 = vsel %vm1506_vm8, %v1493_v62, -1e+30  ;;  %3749 = vpow2.f32 %v1634_v41  ;;  %v1555_v62 = vsel %vm5427_vm9, %v4529_v23, -inf }
 0x413   : > { %v1573_v18 = vsel %vm5427_vm9, %v4480_v27, -inf  ;;  %v1536_v33 = vpop.xlane.xlu2 %1535 }
 0x414   : > { %1574 = vmax.xlane.f32.xlu0 %v1573_v18  ;;  %v1606_v9 = vsub.f32 %v4416_v48, %v1536_v33 }
 0x415   : > { %v1548_v58 = vpop.xlane.xlu1 %1547 }
 0x416   : > { %v1610_v60 = vsub.f32 %v4420_v26, %v1548_v58  ;;  %v1630_v12 = vmul.f32 1.442695, %v1606_v9 }
 0x417   : > { %v1359_v28 = vpop.f32.mrf.mxu2 }
 0x418   : > { %v4502_v17 = vpop.eup %3749  ;;  %v1638_v3 = vmul.f32 1.442695, %v1610_v60  ;;  %v1494_v18 = vmul.f32 0.35355338, %v1359_v28 }
 0x419   : > { %v1684_v53 = vsel %vm5427_vm9, %v4502_v17, 0.0 }
 0x41a   : > { %v4548_v34 = vsel %vm1506_vm8, %v1494_v18, -1e+30 }
 0x41b   : > { %v1545_v43 = vpop.xlane.xlu2 %1544  ;;  %v1576_v38 = vsel %vm5427_vm9, %v4548_v34, -inf }
 0x41c   : > { %1682 = vadd.xlane.f32.xlu0 %v1681_v31  ;;  %v1609_v46 = vsub.f32 %v4428_v30, %v1545_v43 }
 0x41e   : > { %v1636_v50 = vmul.f32 1.442695, %v1609_v46 }
 0x41f   : > { %v1361_v2 = vpop.f32.mrf.mxu2 }
 0x420   : > { %3751 = vpow2.f32 %v1636_v50 }
 0x421   : > { %3753 = vpow2.f32 %v1638_v3 }
 0x422   : > { %3755 = vpow2.f32 %v1630_v12 }
 0x424   : > { %1559 = vmax.xlane.f32.xlu0 %v1558_v39  ;;  %v1551_v14 = vpop.xlane.xlu0 %1550  ;;  %v1490_v39 = vmul.f32 0.35355338, %v4467_v13 }
 0x425   : > { %v1611_v48 = vsub.f32 %v4435_v61, %v1551_v14 }
 0x426   : > { %v4506_v49 = vpop.eup %3751  ;;  %v4563_v46 = vsel %vm1506_vm8, %v1490_v39, -1e+30 }
 0x427   : > { %v1687_v30 = vsel %vm5427_vm9, %v4506_v49, 0.0  ;;  %v4525_v16 = vpop.eup %3753  ;;  %v1640_v32 = vmul.f32 1.442695, %v1611_v48  ;;  %v1564_v50 = vsel %vm5427_vm9, %v4563_v46, -inf }
 0x428   : > { %v1690_v51 = vsel %vm5427_vm9, %v4525_v16, 0.0  ;;  %v4550_v2 = vpop.eup %3755 }
 0x429   : > { %3757 = vpow2.f32 %v1640_v32  ;;  %v1678_v40 = vsel %vm5427_vm9, %v4550_v2, 0.0 }
 0x42c   : > { %1562 = vmax.xlane.f32.xlu0 %v1561_v47 }
 0x42f   : > { %v4559_v43 = vpop.eup %3757 }
 0x430   : > { %v1693_v13 = vsel %vm5427_vm9, %v4559_v43, 0.0 }
 0x434   : > { %1685 = vadd.xlane.f32.xlu0 %v1684_v53  ;;  %v1491_v53 = vmul.f32 0.35355338, %v4469_v19 }
 0x435   : > { %v1393_v54 = vpop.f32.mrf.mxu3 }
 0x436   : > { %v1495_v41 = vmul.f32 0.35355338, %v1393_v54 }
 0x438   : > { %v4567_v47 = vsel %vm1506_vm8, %v1495_v41, -1e+30 }
 0x439   : > { %v1579_v54 = vsel %vm5427_vm9, %v4567_v47, -inf }
 0x43c   : > { %1688 = vadd.xlane.f32.xlu0 %v1687_v30  ;;  %v4578_v30 = vsel %vm1506_vm8, %v1491_v53, -1e+30 }
 0x43d   : > { %v1395_v1 = vpop.f32.mrf.mxu3  ;;  %v1567_v19 = vsel %vm5427_vm9, %v4578_v30, -inf }
 0x43e   : > { %v1496_v4 = vmul.f32 0.35355338, %v1395_v1 }
 0x43f   : > { %v1432_v5 = vpop.f32.mrf.mxu0 }
 0x440   : > { %v1498_v6 = vmul.f32 0.35355338, %v1432_v5  ;;  %v1437_v7 = vpop.f32.mrf.mxu1  ;;  %v4513_v63 = vsel %vm1506_vm8, %v1496_v4, -1e+30 }
 0x441   : > { %v1582_v8 = vsel %vm5427_vm9, %v4513_v63, -inf  ;;  %v1500_v31 = vmul.f32 0.35355338, %v1437_v7 }
 0x442   : > { %v4519_v26 = vsel %vm1506_vm8, %v1498_v6, -1e+30 }
 0x443   : > { %v1588_v10 = vsel %vm5427_vm9, %v4519_v26, -inf  ;;  %v4544_v33 = vsel %vm1506_vm8, %v1500_v31, -1e+30 }
 0x444   : > { %1583 = vmax.xlane.f32.xlu0 %v1582_v8  ;;  %1589 = vmax.xlane.f32.xlu2 %v1588_v10  ;;  %v1594_v28 = vsel %vm5427_vm9, %v4544_v33, -inf }
 0x445   : > { %v1398_v0 = vpop.f32.mrf.mxu3 }
 0x446   : > { %v1497_v58 = vmul.f32 0.35355338, %v1398_v0  ;;  %v1554_v60 = vpop.xlane.xlu0 %1553 }
 0x447   : > { %v1434_v15 = vpop.f32.mrf.mxu0  ;;  %v1612_v3 = vsub.f32 %v4453_v56, %v1554_v60 }
 0x448   : > { %v1499_v20 = vmul.f32 0.35355338, %v1434_v15  ;;  %v1439_v21 = vpop.f32.mrf.mxu1  ;;  %v4582_v1 = vsel %vm1506_vm8, %v1497_v58, -1e+30 }
 0x449   : > { %v1585_v4 = vsel %vm5427_vm9, %v4582_v1, -inf  ;;  %v1642_v5 = vmul.f32 1.442695, %v1612_v3 }
 0x44a   : > { %v4534_v24 = vsel %vm1506_vm8, %v1499_v20, -1e+30 }
 0x44b   : > { %v1591_v25 = vsel %vm5427_vm9, %v4534_v24, -inf  ;;  %3759 = vpow2.f32 %v1642_v5 }
 0x44c   : > { %1691 = vadd.xlane.f32.xlu0 %v1690_v51  ;;  %1556 = vmax.xlane.f32.xlu2 %v1555_v62 }
 0x44d   : > { %1592 = vmax.xlane.f32.xlu1 %v1591_v25  ;;  %v1400_v61 = vpop.f32.mrf.mxu3 }
 0x451   : > { %v4595_v10 = vpop.eup %3759 }
 0x452   : > { %v1696_v12 = vsel %vm5427_vm9, %v4595_v10, 0.0 }
 0x454   : > { %1595 = vmax.xlane.f32.xlu0 %v1594_v28  ;;  %1577 = vmax.xlane.f32.xlu2 %v1576_v38 }
 0x455   : > { %1679 = vadd.xlane.f32.xlu1 %v1678_v40 }
 0x45c   : > { %1694 = vadd.xlane.f32.xlu0 %v1693_v13  ;;  %1565 = vmax.xlane.f32.xlu2 %v1564_v50 }
 0x45d   : > { %1580 = vmax.xlane.f32.xlu1 %v1579_v54 }
 0x464   : > { %1568 = vmax.xlane.f32.xlu2 %v1567_v19 }
 0x465   : > { %1586 = vmax.xlane.f32.xlu1 %v1585_v4 }
 0x467   : > { %v1471_v6 = vpop.f32.mrf.mxu1 }
 0x468   : > { %v1501_v7 = vmul.f32 0.35355338, %v1471_v6 }
 0x46a   : > { %v4591_v8 = vsel %vm1506_vm8, %v1501_v7, -1e+30 }
 0x46b   : > { %v1597_v9 = vsel %vm5427_vm9, %v4591_v8, -inf }
 0x46c   : > { %1598 = vmax.xlane.f32.xlu2 %v1597_v9 }
 0x46f   : > { %v1473_v56 = vpop.f32.mrf.mxu1 }
 0x470   : > { %v1502_v11 = vmul.f32 0.35355338, %v1473_v56 }
 0x472   : > { %v4599_v0 = vsel %vm1506_vm8, %v1502_v11, -1e+30 }
 0x473   : > { %v1600_v14 = vsel %vm5427_vm9, %v4599_v0, -inf }
 0x474   : > { %1697 = vadd.xlane.f32.xlu2 %v1696_v12  ;;  %1601 = vmax.xlane.f32.xlu1 %v1600_v14 }
 0x477   : > { %v1476_v15 = vpop.f32.mrf.mxu1 }
 0x478   : > { %v1503_v20 = vmul.f32 0.35355338, %v1476_v15 }
 0x47a   : > { %v4607_v21 = vsel %vm1506_vm8, %v1503_v20, -1e+30 }
 0x47b   : > { %v1603_v48 = vsel %vm5427_vm9, %v4607_v21, -inf }
 0x47c   : > { %1604 = vmax.xlane.f32.xlu0 %v1603_v48 }
 0x47f   : > { %v1572_v51 = vpop.xlane.xlu1 %1571  ;;  %v1478_v62 = vpop.f32.mrf.mxu1 }
 0x480   : > { %v1618_v25 = vsub.f32 %v4474_v22, %v1572_v51 }
 0x482   : > { %v1654_v18 = vmul.f32 1.442695, %v1618_v25 }
 0x484   : > { %3761 = vpow2.f32 %v1654_v18 }
 0x487   : > { %v1575_v31 = vpop.xlane.xlu0 %1574 }
 0x488   : > { %v1619_v19 = vsub.f32 %v4480_v27, %v1575_v31 }
 0x48a   : > { %v4612_v61 = vpop.eup %3761 }
 0x48b   : > { %v1714_v32 = vsel %vm5427_vm9, %v4612_v61, 0.0 }
 0x48c   : > { %1715 = vadd.xlane.f32.xlu2 %v1714_v32 }
 0x48f   : > { %v4616_v59 = vpop.xlane.xlu0 %1682 }
 0x490   : > { %vm1770_vm15 = vweird.f32 %v4616_v59 }
 0x497   : > { %v1560_v28 = vpop.xlane.xlu0 %1559 }
 0x498   : > { %v1614_v56 = vsub.f32 %v4490_v37, %v1560_v28 }
 0x49a   : > { %v1646_v48 = vmul.f32 1.442695, %v1614_v56 }
 0x49f   : > { %v4618_v38 = vpop.xlane.xlu0 %1562 }
 0x4a4   : > { %2383 = vrot.lane.b32.xlu2 %v4345_v44, %s3951_s29 }
 0x4a7   : > { %v4622_v39 = vpop.xlane.xlu0 %1685 }
 0x4af   : > { %v1689_v22 = vpop.xlane.xlu0 %1688 }
 0x4b0   : > { %3763 = vrcp.f32 %v1689_v22  ;;  %v1806_v51 = vand.u32 2147483648, %v1689_v22  ;;  %vm1800_vm12 = vweird.f32 %v1689_v22  ;;  %v1804_v62 = vand.u32 2147483647, %v1689_v22 }
 0x4b1   : > { %3765 = vrcp.f32 %v4616_v59 }
 0x4b2   : > { %vm1805_vm1 = vcmp.eq.f32.partialorder %v1804_v62, 8.507059e+37 }
 0x4b6   : > { %v4625_v40 = vpop.eup %3763 }
 0x4b7   : > { %v4627_v41 = vpop.eup %3765  ;;  %v1796_v13 = vmul.f32 %v4625_v40, %v1689_v22  ;;  %v1584_v50 = vpop.xlane.xlu0 %1583  ;;  %vm1801_vm11 = vweird.f32 %v4625_v40 }
 0x4b8   : > { %v1590_v53 = vpop.xlane.xlu2 %1589  ;;  %v1766_v58 = vmul.f32 %v4627_v41, %v4616_v59  ;;  %v1622_v3 = vsub.f32 %v4513_v63, %v1584_v50  ;;  %v1656_v63 = vmul.f32 1.442695, %v1619_v19  ;;  %vm1771_vm13 = vweird.f32 %v4627_v41  ;;  %vm4655_vm14 = vmor %vm1800_vm12, %vm1801_vm11 }
 0x4b9   : > { %v1624_v54 = vsub.f32 %v4519_v26, %v1590_v53  ;;  %v1797_v60 = vsub.f32 1.0, %v1796_v13  ;;  %v1774_v53 = vand.u32 2147483647, %v4616_v59  ;;  %vm4676_vm0 = vmor %vm1770_vm15, %vm1771_vm13 }
 0x4ba   : > { %v1767_v4 = vsub.f32 1.0, %v1766_v58  ;;  %v1662_v6 = vmul.f32 1.442695, %v1622_v3 }
 0x4bb   : > { %v1666_v44 = vmul.f32 1.442695, %v1624_v54  ;;  %v1798_v5 = vmul.f32 %v4625_v40, %v1797_v60  ;;  %v1807_v54 = vor.u32 1.1754944e-38, %v1806_v51  ;;  %vm1775_vm5 = vcmp.eq.f32.partialorder %v1774_v53, 8.507059e+37 }
 0x4bc   : > { %v1768_v14 = vmul.f32 %v4627_v41, %v1767_v4 }
 0x4bd   : > { %3767 = vpow2.f32 %v1666_v44  ;;  %v1799_v15 = vadd.f32 %v4625_v40, %v1798_v5 }
 0x4be   : > { %v1769_v18 = vadd.f32 %v4627_v41, %v1768_v14 }
 0x4bf   : > { %v4636_v7 = vpop.xlane.xlu0 %1691  ;;  %v1803_v32 = vsel %vm4655_vm14, %v4625_v40, %v1799_v15 }
 0x4c0   : > { %v1557_v9 = vpop.xlane.xlu2 %1556  ;;  %3769 = vrcp.f32 %v4636_v7  ;;  %v1593_v26 = vpop.xlane.xlu1 %1592  ;;  %v1808_v4 = vsel %vm1805_vm1, %v1807_v54, %v1803_v32  ;;  %vm1815_vm4 = vweird.f32 %v4636_v7  ;;  %vm1785_vm1 = vweird.f32 %v4622_v39 }
 0x4c1   : > { %v1625_v11 = vsub.f32 %v4534_v24, %v1593_v26  ;;  %v1613_v12 = vsub.f32 %v4529_v23, %v1557_v9  ;;  %3771 = vrcp.f32 %v4622_v39  ;;  %v1776_v23 = vand.u32 2147483648, %v4616_v59 }
 0x4c2   : > { %3773 = vpow2.f32 %v1662_v6  ;;  %v1773_v59 = vsel %vm4676_vm0, %v4627_v41, %v1769_v18  ;;  %v1615_v9 = vsub.f32 %v4497_v45, %v4618_v38  ;;  %v1819_v26 = vand.u32 2147483647, %v4636_v7 }
 0x4c3   : > { %v4645_v27 = vpop.eup %3767  ;;  %v1668_v37 = vmul.f32 1.442695, %v1625_v11  ;;  %v1644_v20 = vmul.f32 1.442695, %v1613_v12  ;;  %v1777_v3 = vor.u32 1.1754944e-38, %v1776_v23  ;;  %v1809_v45 = vmul.f32 %v4506_v49, %v1808_v4 }
 0x4c4   : > { %v1732_v24 = vsel %vm5427_vm9, %v4645_v27, 0.0  ;;  %v1648_v51 = vmul.f32 1.442695, %v1615_v9  ;;  %vm1820_vm8 = vcmp.eq.f32.partialorder %v1819_v26, 8.507059e+37 }
 0x4c5   : > { %3775 = vpow2.f32 %v1668_v37  ;;  %1733 = vadd.xlane.f32.xlu0 %v1732_v24  ;;  %v2113_v32 = vpack.c.bf16 %v1809_v45, %v1809_v45 }
 0x4c6   : > { %v3770_v25 = vpop.eup %3769  ;;  %3777 = vpow2.f32 %v1644_v20 }
 0x4c7   : > { %3779 = vpow2.f32 %v1656_v63  ;;  %v1811_v28 = vmul.f32 %v3770_v25, %v4636_v7  ;;  %v4664_v22 = vpop.xlane.xlu0 %1595  ;;  %v4666_v50 = vpop.eup %3771  ;;  %vm1816_vm3 = vweird.f32 %v3770_v25  ;;  %v2178_v4 = vunpack.c.l.b16 %v2113_v32 }
 0x4c8   : > { %v1578_v13 = vpop.xlane.xlu2 %1577  ;;  %3781 = vpow2.f32 %v1646_v48  ;;  %v4669_v58 = vpop.xlane.xlu1 %1679  ;;  %v1781_v12 = vmul.f32 %v4666_v50, %v4622_v39  ;;  %vm1817_vm6 = vmor %vm1815_vm4, %vm1816_vm3  ;;  %v1778_v48 = vsel %vm1775_vm5, %v1777_v3, %v1773_v59  ;;  %vm1786_vm15 = vweird.f32 %v4666_v50 }
 0x4c9   : > { %v1620_v44 = vsub.f32 %v4548_v34, %v1578_v13  ;;  %v4672_v60 = vpop.eup %3773  ;;  %v1812_v19 = vsub.f32 1.0, %v1811_v28  ;;  %3783 = vrcp.f32 %v4669_v58  ;;  %v1821_v34 = vand.u32 2147483648, %v4636_v7  ;;  %vm4742_vm3 = vmor %vm1785_vm1, %vm1786_vm15 }
 0x4ca   : > { %v1726_v41 = vsel %vm5427_vm9, %v4672_v60, 0.0  ;;  %v1782_v31 = vsub.f32 1.0, %v1781_v12  ;;  %v1779_v13 = vmul.f32 %v4484_v29, %v1778_v48  ;;  %v1761_v40 = vand.u32 2147483648, %v4669_v58 }
 0x4cb   : > { %v1658_v5 = vmul.f32 1.442695, %v1620_v44  ;;  %v4685_v6 = vpop.eup %3775  ;;  %v1813_v56 = vmul.f32 %v3770_v25, %v1812_v19  ;;  %v1822_v7 = vor.u32 1.1754944e-38, %v1821_v34  ;;  %v1759_v59 = vand.u32 2147483647, %v4669_v58 }
 0x4cc   : > { %v4690_v11 = vpop.eup %3777  ;;  %v1735_v63 = vsel %vm5427_vm9, %v4685_v6, 0.0  ;;  %v1783_v29 = vmul.f32 %v4666_v50, %v1782_v31  ;;  %v2111_v9 = vpack.c.bf16 %v1779_v13, %v1779_v13  ;;  %vm1755_vm12 = vweird.f32 %v4669_v58 }
 0x4cd   : > { %v4699_v14 = vpop.eup %3779  ;;  %v1814_v38 = vadd.f32 %v3770_v25, %v1813_v56  ;;  %3785 = vpow2.f32 %v1658_v5  ;;  %1727 = vadd.xlane.f32.xlu2 %v1726_v41  ;;  %1736 = vadd.xlane.f32.xlu0 %v1735_v63  ;;  %v1699_v15 = vsel %vm5427_vm9, %v4690_v11, 0.0  ;;  %v1762_v26 = vor.u32 1.1754944e-38, %v1761_v40 }
 0x4ce   : > { %v4704_v37 = vpop.eup %3781  ;;  %1700 = vadd.xlane.f32.xlu1 %v1699_v15  ;;  %v1717_v54 = vsel %vm5427_vm9, %v4699_v14, 0.0  ;;  %vm1760_vm14 = vcmp.eq.f32.partialorder %v1759_v59, 8.507059e+37 }
 0x4cf   : > { %v3784_v20 = vpop.eup %3783  ;;  %v1818_v24 = vsel %vm1817_vm6, %v3770_v25, %v1814_v38  ;;  %v4707_v49 = vpop.xlane.xlu0 %1694  ;;  %v1791_v38 = vand.u32 2147483648, %v4622_v39 }
 0x4d0   : > { %v1566_v23 = vpop.xlane.xlu2 %1565  ;;  %v1823_v62 = vsel %vm1820_vm8, %v1822_v7, %v1818_v24  ;;  %v1751_v18 = vmul.f32 %v3784_v20, %v4669_v58  ;;  %3787 = vrcp.f32 %v4707_v49  ;;  %vm1756_vm11 = vweird.f32 %v3784_v20  ;;  %v1581_v7 = vpop.xlane.xlu1 %1580 }
 0x4d1   : > { %v1824_v28 = vmul.f32 %v4525_v16, %v1823_v62  ;;  %3789 = vpow2.f32 %v1648_v51  ;;  %v1616_v3 = vsub.f32 %v4563_v46, %v1566_v23  ;;  %v1702_v46 = vsel %vm5427_vm9, %v4704_v37, 0.0  ;;  %vm1757_vm13 = vmor %vm1755_vm12, %vm1756_vm11 }
 0x4d2   : > { %v1752_v53 = vsub.f32 1.0, %v1751_v18  ;;  %v1784_v58 = vadd.f32 %v4666_v50, %v1783_v29  ;;  %v1834_v18 = vand.u32 2147483647, %v4707_v49  ;;  %vm1830_vm4 = vweird.f32 %v4707_v49 }
 0x4d3   : > { %v4715_v25 = vpop.eup %3785  ;;  %v2114_v44 = vpack.c.bf16 %v1824_v28, %v1824_v28  ;;  %v1650_v41 = vmul.f32 1.442695, %v1616_v3  ;;  %v1789_v28 = vand.u32 2147483647, %v4622_v39  ;;  %v1792_v3 = vor.u32 1.1754944e-38, %v1791_v38 }
 0x4d4   : > { %v1753_v19 = vmul.f32 %v3784_v20, %v1752_v53  ;;  %v1720_v16 = vsel %vm5427_vm9, %v4715_v25, 0.0  ;;  %v1788_v39 = vsel %vm4742_vm3, %v4666_v50, %v1784_v58  ;;  %vm1835_vm6 = vcmp.eq.f32.partialorder %v1834_v18, 8.507059e+37 }
 0x4d5   : > { %v2179_v34 = vunpack.c.l.b16 %v2114_v44  ;;  %1718 = vadd.xlane.f32.xlu0 %v1717_v54  ;;  %3791 = vpow2.f32 %v1650_v41  ;;  %v2138_v54 = vunpack.c.l.b16 %v2111_v9  ;;  %vm1790_vm8 = vcmp.eq.f32.partialorder %v1789_v28, 8.507059e+37 }
 0x4d6   : > { %v3788_v5 = vpop.eup %3787  ;;  %v1754_v56 = vadd.f32 %v3784_v20, %v1753_v19  ;;  %1721 = vadd.xlane.f32.xlu1 %v1720_v16 }
 0x4d7   : > { %v1826_v12 = vmul.f32 %v3788_v5, %v4707_v49  ;;  %v2181_v45 = vpack.c.b16 %v2179_v34, %v2178_v4  ;;  %v4729_v51 = vpop.eup %3789  ;;  %vm1831_vm0 = vweird.f32 %v3788_v5  ;;  %v1793_v34 = vsel %vm1790_vm8, %v1792_v3, %v1788_v39 }
 0x4d8   : > { %v1569_v63 = vpop.xlane.xlu2 %1568  ;;  %v1758_v15 = vsel %vm1757_vm13, %v3784_v20, %v1754_v56  ;;  %v1836_v20 = vand.u32 2147483648, %v4707_v49  ;;  %vm1832_vm5 = vmor %vm1830_vm4, %vm1831_vm0  ;;  %v1626_v56 = vsub.f32 %v4544_v33, %v4664_v22 }
 0x4d9   : > { %v1617_v48 = vsub.f32 %v4578_v30, %v1569_v63  ;;  %v1763_v24 = vsel %vm1760_vm14, %v1762_v26, %v1758_v15  ;;  %v1827_v23 = vsub.f32 1.0, %v1826_v12  ;;  %3524 = vmatmul.msk.bf16.vlgmr.msra.gmra.mxu3 %vm5427_vm9, %v2181_v45  ;;  %v1621_v30 = vsub.f32 %v4567_v47, %v1581_v7  ;;  %v1587_v63 = vpop.xlane.xlu1 %1586 }
 0x4da   : > { %v1764_v62 = vmul.f32 %v4550_v2, %v1763_v24  ;;  %v1705_v47 = vsel %vm5427_vm9, %v4729_v51, 0.0  ;;  %v1837_v40 = vor.u32 1.1754944e-38, %v1836_v20  ;;  %v1794_v26 = vmul.f32 %v4502_v17, %v1793_v34 }
 0x4db   : > { %v1652_v31 = vmul.f32 1.442695, %v1617_v48  ;;  %v1828_v32 = vmul.f32 %v3788_v5, %v1827_v23  ;;  %v1660_v19 = vmul.f32 1.442695, %v1621_v30  ;;  %v4752_v49 = vpop.eup %3791  ;;  %v1670_v12 = vmul.f32 1.442695, %v1626_v56 }
 0x4dc   : > { %v2110_v13 = vpack.c.bf16 %v1764_v62, %v1764_v62  ;;  %v2112_v22 = vpack.c.bf16 %v1794_v26, %v1794_v26  ;;  %v1623_v30 = vsub.f32 %v4582_v1, %v1587_v63 }
 0x4dd   : > { %3793 = vpow2.f32 %v1652_v31  ;;  %v1829_v53 = vadd.f32 %v3788_v5, %v1828_v32  ;;  %1703 = vadd.xlane.f32.xlu0 %v1702_v46  ;;  %v1708_v46 = vsel %vm5427_vm9, %v4752_v49, 0.0 }
 0x4de   : > { %v2137_v44 = vunpack.c.l.b16 %v2110_v13  ;;  %1706 = vadd.xlane.f32.xlu1 %v1705_v47  ;;  %3795 = vpow2.f32 %v1660_v19  ;;  %v2139_v15 = vunpack.c.l.b16 %v2112_v22  ;;  %v1664_v28 = vmul.f32 1.442695, %v1623_v30 }
 0x4df   : > { %v1833_v59 = vsel %vm1832_vm5, %v3788_v5, %v1829_v53  ;;  %3797 = vpow2.f32 %v1670_v12 }
 0x4e0   : > { %v2140_v16 = vpack.c.b16 %v2138_v54, %v2137_v44  ;;  %v1838_v29 = vsel %vm1835_vm6, %v1837_v40, %v1833_v59  ;;  %v1599_v33 = vpop.xlane.xlu2 %1598  ;;  %v2141_v48 = vpack.c.b16 %v2139_v15, %v2139_v15 }
 0x4e1   : > { %v1839_v4 = vmul.f32 %v4559_v43, %v1838_v29  ;;  %v1627_v38 = vsub.f32 %v4591_v8, %v1599_v33 }
 0x4e2   : > { %3522 = vmatmul.msk.bf16.vlgmr.msra.gmra.mxu2 %vm5427_vm9, %v2140_v16 }
 0x4e3   : > { %v4755_v9 = vpop.eup %3793  ;;  %v2115_v5 = vpack.c.bf16 %v1839_v4, %v1839_v4 }
 0x4e4   : > { %v1711_v50 = vsel %vm5427_vm9, %v4755_v9, 0.0  ;;  %v4767_v45 = vpop.eup %3795 }
 0x4e5   : > { %2345 = vrot.lane.b32.xlu2 %v4333_v35, %s3951_s29  ;;  %1709 = vadd.xlane.f32.xlu0 %v1708_v46  ;;  %v2180_v43 = vunpack.c.l.b16 %v2115_v5  ;;  %v1723_v17 = vsel %vm5427_vm9, %v4767_v45, 0.0  ;;  %v1672_v35 = vmul.f32 1.442695, %v1627_v38  ;;  %v4775_v58 = vpop.eup %3797 }
 0x4e6   : > { %1712 = vadd.xlane.f32.xlu1 %v1711_v50  ;;  %v1738_v8 = vsel %vm5427_vm9, %v4775_v58, 0.0 }
 0x4e7   : > { %v2182_v41 = vpack.c.b16 %v2180_v43, %v2180_v43  ;;  %v1602_v7 = vpop.xlane.xlu1 %1601  ;;  %3799 = vpow2.f32 %v1672_v35 }
 0x4e8   : > { %v1628_v24 = vsub.f32 %v4599_v0, %v1602_v7  ;;  %v1698_v13 = vpop.xlane.xlu2 %1697 }
 0x4e9   : > { %3525 = vmatmul.msk.bf16.gmra.mxu3 %vm5427_vm9, %v2182_v41  ;;  %v1851_v29 = vand.u32 2147483648, %v1698_v13  ;;  %vm1845_vm12 = vweird.f32 %v1698_v13  ;;  %v1849_v4 = vand.u32 2147483647, %v1698_v13 }
 0x4ea   : > { %v1674_v23 = vmul.f32 1.442695, %v1628_v24 }
 0x4eb   : > { %v1852_v46 = vor.u32 1.1754944e-38, %v1851_v29  ;;  %vm1850_vm1 = vcmp.eq.f32.partialorder %v1849_v4, 8.507059e+37 }
 0x4ec   : > { %3801 = vpow2.f32 %v1674_v23 }
 0x4ed   : > { %2343 = vrot.lane.b32.xlu2 %v4351_v52, %s3951_s29  ;;  %1724 = vadd.xlane.f32.xlu0 %v1723_v17  ;;  %v4783_v62 = vpop.eup %3799 }
 0x4ee   : > { %v1741_v20 = vsel %vm5427_vm9, %v4783_v62, 0.0 }
 0x4ef   : > { %v1605_v52 = vpop.xlane.xlu0 %1604 }
 0x4f0   : > { %v1629_v18 = vsub.f32 %v4607_v21, %v1605_v52 }
 0x4f2   : > { %3523 = vmatmul.msk.bf16.gmra.mxu2 %vm5427_vm9, %v2141_v48  ;;  %v1676_v31 = vmul.f32 1.442695, %v1629_v18  ;;  %v4790_v0 = vpop.eup %3801 }
 0x4f4   : > { %3803 = vpow2.f32 %v1676_v31 }
 0x4f5   : > { %2423 = vrot.lane.b32.xlu2 %v4373_v57, %s3951_s29  ;;  %1739 = vadd.xlane.f32.xlu0 %v1738_v8  ;;  %v1744_v57 = vsel %vm5427_vm9, %v4790_v0, 0.0  ;;  %3805 = vpow2.f32 %v1664_v28 }
 0x4f6   : > { %3807 = vrcp.f32 %v1698_v13 }
 0x4fa   : > { %v4794_v32 = vpop.eup %3803 }
 0x4fb   : > { %v1747_v21 = vsel %vm5427_vm9, %v4794_v32, 0.0  ;;  %v4801_v2 = vpop.eup %3805 }
 0x4fc   : > { %v1729_v53 = vsel %vm5427_vm9, %v4801_v2, 0.0  ;;  %v3808_v47 = vpop.eup %3807 }
 0x4fd   : > { %1742 = vadd.xlane.f32.xlu0 %v1741_v20  ;;  %v1841_v44 = vmul.f32 %v3808_v47, %v1698_v13  ;;  %vm1846_vm11 = vweird.f32 %v3808_v47 }
 0x4fe   : > { %vm1847_vm14 = vmor %vm1845_vm12, %vm1846_vm11 }
 0x4ff   : > { %2385 = vrot.lane.b32.xlu1 %v4335_v36, %s3951_s29  ;;  %v1716_v36 = vpop.xlane.xlu2 %1715  ;;  %v1842_v1 = vsub.f32 1.0, %v1841_v44 }
 0x500   : > { %3809 = vrcp.f32 %v1716_v36  ;;  %v1941_v56 = vand.u32 2147483648, %v1716_v36  ;;  %vm1935_vm15 = vweird.f32 %v1716_v36  ;;  %v1939_v5 = vand.u32 2147483647, %v1716_v36 }
 0x501   : > { %v1843_v3 = vmul.f32 %v3808_v47, %v1842_v1 }
 0x502   : > { %v1942_v12 = vor.u32 1.1754944e-38, %v1941_v56  ;;  %vm1940_vm3 = vcmp.eq.f32.partialorder %v1939_v5, 8.507059e+37 }
 0x503   : > { %v1844_v16 = vadd.f32 %v3808_v47, %v1843_v3 }
 0x505   : > { %1745 = vadd.xlane.f32.xlu0 %v1744_v57  ;;  %v1848_v50 = vsel %vm1847_vm14, %v3808_v47, %v1844_v16 }
 0x506   : > { %v3810_v54 = vpop.eup %3809  ;;  %v1853_v43 = vsel %vm1850_vm1, %v1852_v46, %v1848_v50 }
 0x507   : > { %v1931_v40 = vmul.f32 %v3810_v54, %v1716_v36  ;;  %v4805_v59 = vpop.permute.xlu2 %2383  ;;  %vm1936_vm13 = vweird.f32 %v3810_v54  ;;  %v1854_v38 = vmul.f32 %v4595_v10, %v1853_v43 }
 0x508   : > { %vm1937_vm0 = vmor %vm1935_vm15, %vm1936_vm13 }
 0x509   : > { %v1932_v39 = vsub.f32 1.0, %v1931_v40  ;;  %v2116_v35 = vpack.c.bf16 %v1854_v38, %v1854_v38 }
 0x50b   : > { %v1933_v19 = vmul.f32 %v3810_v54, %v1932_v39  ;;  %v4832_v31 = vunpack.c.l.b16 %v2116_v35 }
 0x50d   : > { %1748 = vadd.xlane.f32.xlu0 %v1747_v21  ;;  %v1934_v34 = vadd.f32 %v3810_v54, %v1933_v19 }
 0x50f   : > { %v1938_v26 = vsel %vm1937_vm0, %v3810_v54, %v1934_v34 }
 0x510   : > { %v1943_v22 = vsel %vm1940_vm3, %v1942_v12, %v1938_v26 }
 0x511   : > { %v1944_v15 = vmul.f32 %v4612_v61, %v1943_v22 }
 0x513   : > { %v2122_v52 = vpack.c.bf16 %v1944_v15, %v1944_v15 }
 0x515   : > { %v4837_v36 = vunpack.c.l.b16 %v2122_v52 }
 0x521   : > { %2425 = vrot.lane.b32.xlu0 %v4355_v55, %s3951_s29  ;;  %s5525_s29 = sld [smem:[#allocation14_spill]] (!%p3592_p6) }
 0x529   : > { %1730 = vadd.xlane.f32.xlu1 %v1729_v53 }
 0x538   : > { %v4807_v55 = vpop.xlane.xlu0 %1733 }
 0x539   : > { %3811 = vrcp.f32 %v4807_v55  ;;  %v2031_v61 = vand.u32 2147483648, %v4807_v55  ;;  %v2029_v54 = vand.u32 2147483647, %v4807_v55 }
 0x53b   : > { %v4842_v44 = vor.u32 1.1754944e-38, %v2031_v61 }
 0x53f   : > { %v4817_v17 = vpop.eup %3811 }
 0x540   : > { %v4810_v41 = vpop.xlane.xlu0 %1736  ;;  %v4812_v63 = vpop.xlane.xlu2 %1727  ;;  %v2021_v48 = vmul.f32 %v4817_v17, %v4807_v55  ;;  %vm2026_vm0 = vweird.f32 %v4817_v17 }
 0x541   : > { %v1701_v33 = vpop.xlane.xlu1 %1700  ;;  %v2044_v40 = vand.u32 2147483647, %v4810_v41  ;;  %v2046_v1 = vand.u32 2147483648, %v4810_v41  ;;  %v2001_v46 = vand.u32 2147483648, %v4812_v63  ;;  %vm1995_vm11 = vweird.f32 %v4812_v63 }
 0x542   : > { %3813 = vrcp.f32 %v1701_v33  ;;  %v2022_v30 = vsub.f32 1.0, %v2021_v48  ;;  %v1864_v28 = vand.u32 2147483647, %v1701_v33  ;;  %v1866_v13 = vand.u32 2147483648, %v1701_v33 }
 0x543   : > { %3815 = vrcp.f32 %v4812_v63  ;;  %vm1860_vm5 = vweird.f32 %v1701_v33 }
 0x544   : > { %3817 = vrcp.f32 %v4810_v41  ;;  %v2023_v29 = vmul.f32 %v4817_v17, %v2022_v30  ;;  %vm1865_vm8 = vcmp.eq.f32.partialorder %v1864_v28, 8.507059e+37  ;;  %v1867_v4 = vor.u32 1.1754944e-38, %v1866_v13 }
 0x546   : > { %v4868_v61 = vadd.f32 %v4817_v17, %v2023_v29 }
 0x548   : > { %v3814_v7 = vpop.eup %3813  ;;  %v4822_v24 = vpop.xlane.xlu0 %1718 }
 0x549   : > { %v2346_v8 = vpop.permute.xlu2 %2345  ;;  %v4824_v23 = vpop.eup %3815  ;;  %v1856_v10 = vmul.f32 %v3814_v7, %v1701_v33  ;;  %3819 = vrcp.f32 %v4822_v24  ;;  %vm1861_vm4 = vweird.f32 %v3814_v7  ;;  %v4857_v33 = vor.u32 1.1754944e-38, %v2046_v1 }
 0x54a   : > { %v4827_v18 = vpop.xlane.xlu1 %1721  ;;  %v4829_v20 = vpop.eup %3817  ;;  %v1991_v21 = vmul.f32 %v4824_v23, %v4812_v63  ;;  %v2355_v16 = vsel %vm5426_vm10, %v2346_v8, 0  ;;  %vm1862_vm6 = vmor %vm1860_vm5, %vm1861_vm4  ;;  %v1999_v8 = vand.u32 2147483647, %v4812_v63  ;;  %vm1950_vm13 = vweird.f32 %v4822_v24 }
 0x54b   : > { %v1857_v57 = vsub.f32 1.0, %v1856_v10  ;;  %3821 = vrcp.f32 %v4827_v18  ;;  %v2036_v53 = vmul.f32 %v4829_v20, %v4810_v41  ;;  %2363 = vmatpush.bf16.msrb.mxu3 %v2355_v16  ;;  %v1954_v10 = vand.u32 2147483647, %v4822_v24 }
 0x54c   : > { %v1992_v19 = vsub.f32 1.0, %v1991_v21  ;;  %v1971_v28 = vand.u32 2147483648, %v4827_v18  ;;  %vm1996_vm14 = vweird.f32 %v4824_v23  ;;  %vm1965_vm3 = vweird.f32 %v4827_v18 }
 0x54d   : > { %v1858_v47 = vmul.f32 %v3814_v7, %v1857_v57  ;;  %v2037_v50 = vsub.f32 1.0, %v2036_v53  ;;  %vm1955_vm1 = vcmp.eq.f32.partialorder %v1954_v10, 8.507059e+37  ;;  %vm2025_vm4 = vweird.f32 %v4807_v55 }
 0x54e   : > { %v1993_v35 = vmul.f32 %v4824_v23, %v1992_v19  ;;  %vm2041_vm5 = vweird.f32 %v4829_v20 }
 0x54f   : > { %v3820_v39 = vpop.eup %3819  ;;  %v1859_v3 = vadd.f32 %v3814_v7, %v1858_v47  ;;  %v2038_v57 = vmul.f32 %v4829_v20, %v2037_v50 }
 0x550   : > { %v1946_v34 = vmul.f32 %v3820_v39, %v4822_v24  ;;  %v4849_v56 = vpop.xlane.xlu0 %1703  ;;  %vm1951_vm12 = vweird.f32 %v3820_v39  ;;  %v4879_v47 = vadd.f32 %v4824_v23, %v1993_v35 }
 0x551   : > { %v1863_v5 = vsel %vm1862_vm6, %v3814_v7, %v1859_v3  ;;  %3823 = vrcp.f32 %v4849_v56  ;;  %v2344_v43 = vpop.permute.xlu2 %2343  ;;  %v4855_v12 = vpop.eup %3821  ;;  %v1956_v7 = vand.u32 2147483648, %v4822_v24  ;;  %vm1952_vm15 = vmor %vm1950_vm13, %vm1951_vm12  ;;  %v4890_v16 = vadd.f32 %v4829_v20, %v2038_v57 }
 0x552   : > { %v4853_v26 = vpop.xlane.xlu1 %1706  ;;  %v1868_v22 = vsel %vm1865_vm8, %v1867_v4, %v1863_v5  ;;  %v1947_v38 = vsub.f32 1.0, %v1946_v34  ;;  %v1961_v48 = vmul.f32 %v4855_v12, %v4827_v18  ;;  %2364 = vmatpush.bf16.msrb.mxu3 %v2344_v43  ;;  %v1969_v34 = vand.u32 2147483647, %v4827_v18  ;;  %vm4902_vm6 = vmor %vm1995_vm11, %vm1996_vm14 }
 0x553   : > { %v1869_v15 = vmul.f32 %v4690_v11, %v1868_v22  ;;  %v4871_v11 = vor.u32 1.1754944e-38, %v2001_v46  ;;  %3825 = vrcp.f32 %v4853_v26  ;;  %v1957_v1 = vor.u32 1.1754944e-38, %v1956_v7 }
 0x554   : > { %v1948_v52 = vmul.f32 %v3820_v39, %v1947_v38  ;;  %v1962_v21 = vsub.f32 1.0, %v1961_v48  ;;  %v1972_v46 = vor.u32 1.1754944e-38, %v1971_v28  ;;  %v1998_v38 = vsel %vm4902_vm6, %v4824_v23, %v4879_v47 }
 0x555   : > { %v2117_v53 = vpack.c.bf16 %v1869_v15, %v1869_v15  ;;  %v1879_v15 = vand.u32 2147483647, %v4849_v56  ;;  %v1881_v63 = vand.u32 2147483648, %v4849_v56  ;;  %vm2040_vm8 = vweird.f32 %v4810_v41 }
 0x556   : > { %v1949_v30 = vadd.f32 %v3820_v39, %v1948_v52  ;;  %v1963_v4 = vmul.f32 %v4855_v12, %v1962_v21  ;;  %vm1966_vm12 = vweird.f32 %v4855_v12  ;;  %vm1875_vm13 = vweird.f32 %v4849_v56 }
 0x557   : > { %v4876_v13 = vpop.eup %3823  ;;  %v2219_v22 = vunpack.c.l.b16 %v2117_v53  ;;  %vm4924_vm14 = vcmp.eq.f32.partialorder %v1999_v8, 8.507059e+37  ;;  %v1894_v28 = vand.u32 2147483647, %v4853_v26  ;;  %v1896_v53 = vand.u32 2147483648, %v4853_v26  ;;  %vm4939_vm2 = vmor %vm1965_vm3, %vm1966_vm12 }
 0x558   : > { %v1953_v3 = vsel %vm1952_vm15, %v3820_v39, %v1949_v30  ;;  %v1871_v24 = vmul.f32 %v4876_v13, %v4849_v56  ;;  %v4887_v19 = vpop.xlane.xlu0 %1709  ;;  %vm1876_vm11 = vweird.f32 %v4876_v13  ;;  %v1964_v52 = vadd.f32 %v4855_v12, %v1963_v4 }
 0x559   : > { %v1958_v29 = vsel %vm1955_vm1, %v1957_v1, %v1953_v3  ;;  %3827 = vrcp.f32 %v4887_v19  ;;  %v3826_v35 = vpop.eup %3825  ;;  %vm4931_vm15 = vmor %vm1875_vm13, %vm1876_vm11  ;;  %v1882_v3 = vor.u32 1.1754944e-38, %v1881_v63  ;;  %vm1890_vm1 = vweird.f32 %v4853_v26 }
 0x55a   : > { %v4894_v50 = vpop.xlane.xlu1 %1712  ;;  %v1959_v5 = vmul.f32 %v4699_v14, %v1958_v29  ;;  %v1872_v43 = vsub.f32 1.0, %v1871_v24  ;;  %v1886_v10 = vmul.f32 %v3826_v35, %v4853_v26  ;;  %v2221_v56 = vpack.c.b16 %v2219_v22, %v4832_v31 }
 0x55b   : > { %3829 = vrcp.f32 %v4894_v50  ;;  %vm1891_vm7 = vweird.f32 %v3826_v35  ;;  %vm1880_vm11 = vcmp.eq.f32.partialorder %v1879_v15, 8.507059e+37  ;;  %vm4951_vm13 = vcmp.eq.f32.partialorder %v2029_v54, 8.507059e+37 }
 0x55c   : > { %v2123_v7 = vpack.c.bf16 %v1959_v5, %v1959_v5  ;;  %v1873_v14 = vmul.f32 %v4876_v13, %v1872_v43  ;;  %v4918_v48 = vpop.f32.mrf.mxu3  ;;  %v1887_v24 = vsub.f32 1.0, %v1886_v10  ;;  %3526 = vmatmul.msk.bf16.vlgmr.msra.gmra.mxu0 %vm5427_vm9, %v2221_v56  ;;  %vm4965_vm3 = vcmp.eq.f32.partialorder %v2044_v40, 8.507059e+37  ;;  %vm1892_vm10 = vmor %vm1890_vm1, %vm1891_vm7 }
 0x55d   : > { %vm4969_vm12 = vcmp.eq.f32.partialorder %v1894_v28, 8.507059e+37  ;;  %v1897_v15 = vor.u32 1.1754944e-38, %v1896_v53  ;;  %vm1905_vm7 = vweird.f32 %v4887_v19 }
 0x55e   : > { %v2299_v21 = vunpack.c.l.b16 %v2123_v7  ;;  %v1874_v30 = vadd.f32 %v4876_v13, %v1873_v14  ;;  %v1888_v18 = vmul.f32 %v3826_v35, %v1887_v24  ;;  %v1909_v7 = vand.u32 2147483647, %v4887_v19 }
 0x55f   : > { %v3828_v8 = vpop.eup %3827 }
 0x560   : > { %v4943_v4 = vpop.xlane.xlu0 %1724  ;;  %v2301_v5 = vpack.c.b16 %v2299_v21, %v4837_v36  ;;  %v1878_v43 = vsel %vm4931_vm15, %v4876_v13, %v1874_v30  ;;  %v1901_v22 = vmul.f32 %v3828_v8, %v4887_v19  ;;  %v1968_v36 = vsel %vm4939_vm2, %v4855_v12, %v1964_v52  ;;  %vm4979_vm2 = vmor %vm2025_vm4, %vm2026_vm0 }
 0x561   : > { %3831 = vrcp.f32 %v4943_v4  ;;  %v4961_v63 = vpop.eup %3829  ;;  %v1883_v14 = vsel %vm1880_vm11, %v1882_v3, %v1878_v43  ;;  %v1889_v40 = vadd.f32 %v3826_v35, %v1888_v18  ;;  %vm1970_vm15 = vcmp.eq.f32.partialorder %v1969_v34, 8.507059e+37  ;;  %vm4996_vm0 = vmor %vm2040_vm8, %vm2041_vm5 }
 0x562   : > { %3530 = vmatmul.msk.bf16.vlgmr.msrb.gmra.mxu2 %vm5427_vm9, %v2301_v5  ;;  %v1902_v52 = vsub.f32 1.0, %v1901_v22  ;;  %v1916_v10 = vmul.f32 %v4961_v63, %v4894_v50  ;;  %vm1906_vm9 = vweird.f32 %v3828_v8  ;;  %v1911_v21 = vand.u32 2147483648, %v4887_v19 }
 0x563   : > { %v1884_v55 = vmul.f32 %v4704_v37, %v1883_v14  ;;  %v1973_v28 = vsel %vm1970_vm15, %v1972_v46, %v1968_v36  ;;  %v1893_v34 = vsel %vm1892_vm10, %v3826_v35, %v1889_v40  ;;  %v2028_v37 = vsel %vm4979_vm2, %v4817_v17, %v4868_v61  ;;  %vm1907_vm4 = vmor %vm1905_vm7, %vm1906_vm9 }
 0x564   : > { %v4989_v30 = vpop.f32.mrf.mxu3  ;;  %v1903_v1 = vmul.f32 %v3828_v8, %v1902_v52  ;;  %v1917_v26 = vsub.f32 1.0, %v1916_v10  ;;  %v1974_v24 = vmul.f32 %v4715_v25, %v1973_v28  ;;  %v2043_v41 = vsel %vm4996_vm0, %v4829_v20, %v4890_v16 }
 0x565   : > { %v5000_v3 = vpop.f32.mrf.mxu2  ;;  %v1898_v46 = vsel %vm4969_vm12, %v1897_v15, %v1893_v34  ;;  %v2118_v35 = vpack.c.bf16 %v1884_v55, %v1884_v55  ;;  %v2003_v25 = vsel %vm4924_vm14, %v4871_v11, %v1998_v38  ;;  %vm1910_vm10 = vcmp.eq.f32.partialorder %v1909_v7, 8.507059e+37 }
 0x566   : > { %v1904_v17 = vadd.f32 %v3828_v8, %v1903_v1  ;;  %v1899_v20 = vmul.f32 %v4729_v51, %v1898_v46  ;;  %v1912_v61 = vor.u32 1.1754944e-38, %v1911_v21  ;;  %v2124_v39 = vpack.c.bf16 %v1974_v24, %v1974_v24 }
 0x567   : > { %v3832_v56 = vpop.eup %3831  ;;  %v1918_v23 = vmul.f32 %v4961_v63, %v1917_v26  ;;  %v2220_v11 = vunpack.c.l.b16 %v2118_v35  ;;  %v2033_v47 = vsel %vm4951_vm13, %v4842_v44, %v2028_v37  ;;  %v2004_v51 = vmul.f32 %v4672_v60, %v2003_v25 }
 0x568   : > { %v1976_v16 = vmul.f32 %v3832_v56, %v4943_v4  ;;  %v5025_v29 = vpop.xlane.xlu0 %1739  ;;  %v1908_v5 = vsel %vm1907_vm4, %v3828_v8, %v1904_v17  ;;  %v2048_v57 = vsel %vm4965_vm3, %v4857_v33, %v2043_v41  ;;  %v1984_v8 = vand.u32 2147483647, %v4943_v4 }
 0x569   : > { %3833 = vrcp.f32 %v5025_v29  ;;  %v1913_v19 = vsel %vm1910_vm10, %v1912_v61, %v1908_v5  ;;  %v1986_v18 = vand.u32 2147483648, %v4943_v4  ;;  %vm1921_vm9 = vweird.f32 %v4961_v63 }
 0x56a   : > { %v1977_v38 = vsub.f32 1.0, %v1976_v16  ;;  %v1914_v43 = vmul.f32 %v4752_v49, %v1913_v19  ;;  %vm1981_vm5 = vweird.f32 %v3832_v56  ;;  %v2300_v44 = vunpack.c.l.b16 %v2124_v39 }
 0x56b   : > { %v2119_v60 = vpack.c.bf16 %v1899_v20, %v1899_v20  ;;  %v1919_v13 = vadd.f32 %v4961_v63, %v1918_v23  ;;  %v2222_v15 = vpack.c.b16 %v2220_v11, %v2220_v11  ;;  %v2126_v33 = vpack.c.bf16 %v2004_v51, %v2004_v51 }
 0x56c   : > { %v1978_v22 = vmul.f32 %v3832_v56, %v1977_v38  ;;  %v5040_v31 = vpop.f32.mrf.mxu3  ;;  %v2120_v36 = vpack.c.bf16 %v1914_v43, %v1914_v43  ;;  %v1926_v49 = vand.u32 2147483648, %v4894_v50  ;;  %vm1980_vm6 = vweird.f32 %v4943_v4 }
 0x56d   : > { %v5043_v54 = vpop.f32.mrf.mxu2  ;;  %vm1920_vm8 = vweird.f32 %v4894_v50  ;;  %v1924_v40 = vand.u32 2147483647, %v4894_v50  ;;  %vm1982_vm14 = vmor %vm1980_vm6, %vm1981_vm5  ;;  %v1987_v52 = vor.u32 1.1754944e-38, %v1986_v18  ;;  %vm1985_vm11 = vcmp.eq.f32.partialorder %v1984_v8, 8.507059e+37 }
 0x56e   : > { %v1979_v7 = vadd.f32 %v3832_v56, %v1978_v22  ;;  %v2259_v12 = vunpack.c.l.b16 %v2120_v36  ;;  %vm5054_vm1 = vmor %vm1920_vm8, %vm1921_vm9  ;;  %v2302_v28 = vpack.c.b16 %v2300_v44, %v2300_v44  ;;  %v2258_v53 = vunpack.c.l.b16 %v2119_v60 }
 0x56f   : > { %v5047_v14 = vpop.eup %3833  ;;  %vm5476_vm13 = vcmask 195584   ;;  %v1923_v1 = vsel %vm5054_vm1, %v4961_v63, %v1919_v13  ;;  %v1927_v26 = vor.u32 1.1754944e-38, %v1926_v49  ;;  %vm5477_vm3 = vcmask 1043456  }
 0x570   : > { %v1983_v21 = vsel %vm1982_vm14, %v3832_v56, %v1979_v7  ;;  %v2051_v4 = vmul.f32 %v5047_v14, %v5025_v29  ;;  %v5060_v55 = vpop.xlane.xlu0 %1742  ;;  %3527 = vmatmul.msk.bf16.gmra.mxu0 %vm5476_vm13, %v2222_v15  ;;  %vm5478_vm12 = vmmov %vm5476_vm13  ;;  %v2049_v46 = vmul.f32 %v4685_v6, %v2048_v57  ;;  %v2261_v35 = vpack.c.b16 %v2259_v12, %v2258_v53 }
 0x571   : > { %v1988_v34 = vsel %vm1985_vm11, %v1987_v52, %v1983_v21  ;;  %v2386_v50 = vpop.permute.xlu1 %2385  ;;  %3835 = vrcp.f32 %v5060_v55  ;;  %vm1925_vm2 = vcmp.eq.f32.partialorder %v1924_v40, 8.507059e+37  ;;  %v2034_v20 = vmul.f32 %v4645_v27, %v2033_v47  ;;  %vm5479_vm15 = vmmov %vm5478_vm12 }
 0x572   : > { %v1989_v24 = vmul.f32 %v4767_v45, %v1988_v34  ;;  %v2052_v37 = vsub.f32 1.0, %v2051_v4  ;;  %v2395_v41 = vsel %vm5477_vm3, %v2386_v50, 0  ;;  %3531 = vmatmul.msk.bf16.gmra.mxu2 %vm5478_vm12, %v2302_v28  ;;  %v1928_v17 = vsel %vm1925_vm2, %v1927_v26, %v1923_v1  ;;  %3528 = vmatmul.msk.bf16.vlgmr.msra.gmra.mxu1 %vm5479_vm15, %v2261_v35  ;;  %vm5480_vm7 = vmmov %vm5478_vm12 }
 0x573   : > { %2403 = vmatpush.bf16.msrb.mxu0 %v2395_v41  ;;  %v2339_v61 = vunpack.c.l.b16 %v2126_v33  ;;  %v2129_v5 = vpack.c.bf16 %v2049_v46, %v2049_v46  ;;  %v1929_v6 = vmul.f32 %v4755_v9, %v1928_v17  ;;  %v2128_v51 = vpack.c.bf16 %v2034_v20, %v2034_v20  ;;  %vm5481_vm5 = vmmov %vm5480_vm7 }
 0x574   : > { %v2125_v56 = vpack.c.bf16 %v1989_v24, %v1989_v24  ;;  %v2213_v25 = vpop.f32.mrf.mxu3  ;;  %v2053_v63 = vmul.f32 %v5047_v14, %v2052_v37  ;;  %vm2056_vm0 = vweird.f32 %v5047_v14  ;;  %v2061_v47 = vand.u32 2147483648, %v5025_v29  ;;  %vm5482_vm14 = vmmov %vm5481_vm5 }
 0x575   : > { %v5074_v45 = vpop.f32.mrf.mxu2  ;;  %v2379_v38 = vunpack.c.l.b16 %v2129_v5  ;;  %vm2055_vm10 = vweird.f32 %v5025_v29  ;;  %v2059_v9 = vand.u32 2147483647, %v5025_v29  ;;  %v2378_v57 = vunpack.c.l.b16 %v2128_v51  ;;  %vm5483_vm15 = vmmov %vm5481_vm5 }
 0x576   : > { %v2338_v16 = vunpack.c.l.b16 %v2125_v56  ;;  %v2054_v27 = vadd.f32 %v5047_v14, %v2053_v63  ;;  %vm2057_vm4 = vmor %vm2055_vm10, %vm2056_vm0  ;;  %v2062_v18 = vor.u32 1.1754944e-38, %v2061_v47  ;;  %v2076_v28 = vand.u32 2147483648, %v5060_v55 }
 0x577   : > { %v5076_v39 = vpop.eup %3835  ;;  %2404 = vmatpush.bf16.msrb.mxu0 %v4805_v59  ;;  %v2121_v59 = vpack.c.bf16 %v1929_v6, %v1929_v6  ;;  %v2381_v60 = vpack.c.b16 %v2379_v38, %v2378_v57  ;;  %vm2060_vm9 = vcmp.eq.f32.partialorder %v2059_v9, 8.507059e+37  ;;  %vm2070_vm13 = vweird.f32 %v5060_v55 }
 0x578   : > { %v1746_v23 = vpop.xlane.xlu0 %1745  ;;  %v2341_v11 = vpack.c.b16 %v2339_v61, %v2338_v16  ;;  %v2066_v19 = vmul.f32 %v5076_v39, %v5060_v55  ;;  %v2058_v8 = vsel %vm2057_vm4, %v5047_v14, %v2054_v27  ;;  %vm2071_vm8 = vweird.f32 %v5076_v39 }
 0x579   : > { %3837 = vrcp.f32 %v1746_v23  ;;  %v2260_v36 = vunpack.c.l.b16 %v2121_v59  ;;  %v2063_v33 = vsel %vm2060_vm9, %v2062_v18, %v2058_v8  ;;  %v2091_v14 = vand.u32 2147483648, %v1746_v23  ;;  %vm2072_vm3 = vmor %vm2070_vm13, %vm2071_vm8 }
 0x57a   : > { %3532 = vmatmul.msk.bf16.vlgmr.msrb.gmra.mxu3 %vm5480_vm7, %v2341_v11  ;;  %v2067_v22 = vsub.f32 1.0, %v2066_v19  ;;  %v2064_v12 = vmul.f32 %v4775_v58, %v2063_v33  ;;  %vm2085_vm1 = vweird.f32 %v1746_v23  ;;  %v2089_v21 = vand.u32 2147483647, %v1746_v23 }
 0x57b   : > { %v2262_v7 = vpack.c.b16 %v2260_v36, %v2260_v36  ;;  %v2074_v58 = vand.u32 2147483647, %v5060_v55  ;;  %v2092_v1 = vor.u32 1.1754944e-38, %v2091_v14  ;;  %v2077_v24 = vor.u32 1.1754944e-38, %v2076_v28 }
 0x57c   : > { %v2068_v29 = vmul.f32 %v5076_v39, %v2067_v22  ;;  %v2130_v53 = vpack.c.bf16 %v2064_v12, %v2064_v12  ;;  %vm2090_vm12 = vcmp.eq.f32.partialorder %v2089_v21, 8.507059e+37  ;;  %vm5484_vm7 = vcmask 1043456  }
 0x57d   : > { %v2173_v43 = vpop.f32.mrf.mxu2  ;;  %vm2075_vm2 = vcmp.eq.f32.partialorder %v2074_v58, 8.507059e+37 }
 0x57e   : > { %v2069_v52 = vadd.f32 %v5076_v39, %v2068_v29  ;;  %v2380_v41 = vunpack.c.l.b16 %v2130_v53 }
 0x57f   : > { %v3838_v44 = vpop.eup %3837 }
 0x580   : > { %v2081_v13 = vmul.f32 %v3838_v44, %v1746_v23  ;;  %v1749_v15 = vpop.xlane.xlu0 %1748  ;;  %3534 = vmatmul.msk.bf16.vlgmr.msrb.gmra.mxu0 %vm5481_vm5, %v2381_v60  ;;  %vm2086_vm6 = vweird.f32 %v3838_v44  ;;  %v2073_v26 = vsel %vm2072_vm3, %v5076_v39, %v2069_v52  ;;  %v2382_v25 = vpack.c.b16 %v2380_v41, %v2380_v41 }
 0x581   : > { %3839 = vrcp.f32 %v1749_v15  ;;  %vm2087_vm11 = vmor %vm2085_vm1, %vm2086_vm6  ;;  %v2078_v35 = vsel %vm2075_vm2, %v2077_v24, %v2073_v26  ;;  %v2106_v5 = vand.u32 2147483648, %v1749_v15  ;;  %vm2100_vm10 = vweird.f32 %v1749_v15 }
 0x582   : > { %v2082_v49 = vsub.f32 1.0, %v2081_v13  ;;  %3529 = vmatmul.msk.bf16.gmra.mxu1 %vm5482_vm14, %v2262_v7  ;;  %v2079_v55 = vmul.f32 %v4783_v62, %v2078_v35  ;;  %v2104_v23 = vand.u32 2147483647, %v1749_v15  ;;  %vm5485_vm1 = vmmov %vm5481_vm5  ;;  %vm2533_vm3 = vcmask 130048  }
 0x583   : > { %v2107_v62 = vor.u32 1.1754944e-38, %v2106_v5  ;;  %vm5486_vm13 = vmmov %vm5485_vm1 }
 0x584   : > { %v2083_v40 = vmul.f32 %v3838_v44, %v2082_v49  ;;  %v2131_v61 = vpack.c.bf16 %v2079_v55, %v2079_v55  ;;  %vm2105_vm9 = vcmp.eq.f32.partialorder %v2104_v23, 8.507059e+37 }
 0x586   : > { %v2084_v10 = vadd.f32 %v3838_v44, %v2083_v40  ;;  %v2418_v11 = vunpack.c.l.b16 %v2131_v61 }
 0x587   : > { %v3840_v4 = vpop.eup %3839 }
 0x588   : > { %v2088_v34 = vsel %vm2087_vm11, %v3838_v44, %v2084_v10  ;;  %v2096_v50 = vmul.f32 %v3840_v4, %v1749_v15  ;;  %vm2101_vm0 = vweird.f32 %v3840_v4 }
 0x589   : > { %v2093_v37 = vsel %vm2090_vm12, %v2092_v1, %v2088_v34  ;;  %vm2102_vm4 = vmor %vm2100_vm10, %vm2101_vm0  ;;  %vm5487_vm12 = vcmask 64512  }
 0x58a   : > { %v2097_v46 = vsub.f32 1.0, %v2096_v50  ;;  %v2094_v56 = vmul.f32 %v4790_v0, %v2093_v37  ;;  %v2424_v0 = vpop.permute.xlu2 %2423  ;;  %vm5488_vm2 = vmmov %vm5487_vm12 }
 0x58b   : > { %vm5490_vm0 = vmmov %vm5485_vm1 }
 0x58c   : > { %v2098_v17 = vmul.f32 %v3840_v4, %v2097_v46  ;;  %v2132_v20 = vpack.c.bf16 %v2094_v56, %v2094_v56  ;;  %vm5492_vm10 = vmmov %vm5488_vm2 }
 0x58e   : > { %v2099_v16 = vadd.f32 %v3840_v4, %v2098_v17  ;;  %v2419_v6 = vunpack.c.l.b16 %v2132_v20 }
 0x590   : > { %3535 = vmatmul.msk.bf16.gmra.mxu0 %vm5483_vm15, %v2382_v25  ;;  %v2103_v51 = vsel %vm2102_vm4, %v3840_v4, %v2099_v16  ;;  %v2421_v27 = vpack.c.b16 %v2419_v6, %v2418_v11  ;;  %v3619_v11 = vld [vmem:[%s4102_s20 + $0x8] sm:$0xff]  ;;  %vm5489_vm15 = vmmov %vm5485_vm1 }
 0x591   : > { %v2108_v47 = vsel %vm2105_vm9, %v2107_v62, %v2103_v51  ;;  %2584 = vmatpush.bf16.msra.mxu2 %v3619_v11  ;;  %v3618_v51 = vld [vmem:[%s4102_s20] sm:$0xff]  ;;  %vm5493_vm4 = vmmov %vm5488_vm2  ;;  %v3881_v11 = vld [vmem:[#allocation2 + $0x10] sm:$0xff] }
 0x592   : > { %v2109_v38 = vmul.f32 %v4794_v32, %v2108_v47  ;;  %vm5494_vm9 = vmmov %vm5490_vm0 }
 0x593   : > { %v2426_v63 = vpop.permute.xlu0 %2425 }
 0x594   : > { %v2435_v39 = vsel %vm5484_vm7, %v2426_v63, 0  ;;  %v2133_v9 = vpack.c.bf16 %v2109_v38, %v2109_v38  ;;  %vm5491_vm7 = vcmask 261120  }
 0x595   : > { %2443 = vmatpush.bf16.msrb.mxu1 %v2435_v39  ;;  %2585 = vmatpush.bf16.msra.mxu2 %v3618_v51 }
 0x596   : > { %v2420_v8 = vunpack.c.l.b16 %v2133_v9 }
 0x598   : > { %v2422_v36 = vpack.c.b16 %v2420_v8, %v2420_v8 }
 0x599   : > { %2444 = vmatpush.bf16.msrb.mxu1 %v2424_v0 }
 0x59c   : > { %v1731_v19 = vpop.xlane.xlu1 %1730  ;;  %3536 = vmatmul.msk.bf16.vlgmr.msrb.gmra.mxu1 %vm5481_vm5, %v2421_v27  ;;  %vm5495_vm5 = vmmov %vm5490_vm0 }
 0x59d   : > { %3841 = vrcp.f32 %v1731_v19  ;;  %v2016_v18 = vand.u32 2147483648, %v1731_v19  ;;  %v2014_v44 = vand.u32 2147483647, %v1731_v19  ;;  %vm2010_vm8 = vweird.f32 %v1731_v19 }
 0x59f   : > { %v2017_v13 = vor.u32 1.1754944e-38, %v2016_v18  ;;  %vm2015_vm11 = vcmp.eq.f32.partialorder %v2014_v44, 8.507059e+37 }
 0x5a3   : > { %v3842_v59 = vpop.eup %3841 }
 0x5a4   : > { %v2006_v57 = vmul.f32 %v3842_v59, %v1731_v19  ;;  %vm2011_vm6 = vweird.f32 %v3842_v59 }
 0x5a5   : > { %vm2012_vm14 = vmor %vm2010_vm8, %vm2011_vm6 }
 0x5a6   : > { %v2007_v43 = vsub.f32 1.0, %v2006_v57  ;;  %vm5496_vm6 = vmmov %vm5491_vm7 }
 0x5a7   : > { %vm5497_vm8 = vmmov %vm5488_vm2 }
 0x5a8   : > { %v2008_v22 = vmul.f32 %v3842_v59, %v2007_v43 }
 0x5aa   : > { %v2009_v60 = vadd.f32 %v3842_v59, %v2008_v22 }
 0x5ac   : > { %3537 = vmatmul.msk.bf16.gmra.mxu1 %vm5485_vm1, %v2422_v36  ;;  %v2013_v15 = vsel %vm2012_vm14, %v3842_v59, %v2009_v60  ;;  %vm5498_vm14 = vmmov %vm5488_vm2 }
 0x5ad   : > { %v2018_v33 = vsel %vm2015_vm11, %v2017_v13, %v2013_v15  ;;  %vm5499_vm1 = vmmov %vm5490_vm0 }
 0x5ae   : > { %v2019_v32 = vmul.f32 %v4801_v2, %v2018_v33  ;;  %vm5500_vm11 = vmmov %vm5490_vm0 }
 0x5b0   : > { %v2127_v29 = vpack.c.bf16 %v2019_v32, %v2019_v32 }
 0x5b2   : > { %v2340_v49 = vunpack.c.l.b16 %v2127_v29 }
 0x5b4   : > { %v2342_v7 = vpack.c.b16 %v2340_v49, %v2340_v49 }
 0x5b6   : > { %3533 = vmatmul.msk.bf16.gmra.mxu3 %vm5486_vm13, %v2342_v7  ;;  %vm5501_vm13 = vmmov %vm5496_vm6 }
 0x5d9   : > { %v2246_v12 = vpop.f32.mrf.mxu0 }
 0x5e1   : > { %v2248_v14 = vpop.f32.mrf.mxu0 }
 0x5e2   : > { %v3680_v52 = vpack.i.bf16 %v2248_v14, %v2246_v12 }
 0x5e4   : > { %3681 = vrot.lane.b32.xlu2 %v3680_v52, %s3952_s27 }
 0x5e5   : > { %v2326_v40 = vpop.f32.mrf.mxu2 }
 0x5ed   : > { %v2328_v10 = vpop.f32.mrf.mxu2  ;;  %v2251_v21 = vpop.f32.mrf.mxu0 }
 0x5ee   : > { %v3685_v4 = vpack.i.bf16 %v2328_v10, %v2326_v40 }
 0x5ef   : > { %v2286_v28 = vpop.f32.mrf.mxu1 }
 0x5f0   : > { %3686 = vrot.lane.b32.xlu0 %v3685_v4, %s3953_s23  ;;  %v3695_v58 = vpack.i.bf16 %v2286_v28, %v2251_v21 }
 0x5f5   : > { %v2331_v53 = vpop.f32.mrf.mxu2  ;;  %v2253_v2 = vpop.f32.mrf.mxu0 }
 0x5f7   : > { %v2288_v34 = vpop.f32.mrf.mxu1 }
 0x5f8   : > { %3696 = vrot.lane.b32.xlu0 %v3695_v58, %s3952_s27 }
 0x5fd   : > { %v2333_v50 = vpop.f32.mrf.mxu2  ;;  %v2406_v1 = vpop.f32.mrf.mxu0 }
 0x5fe   : > { %v2366_v35 = vpop.f32.mrf.mxu3 }
 0x5ff   : > { %v2291_v26 = vpop.f32.mrf.mxu1  ;;  %v3700_v25 = vpack.i.bf16 %v2366_v35, %v2331_v53 }
 0x600   : > { %v3710_v24 = vpack.i.bf16 %v2291_v26, %v2288_v34 }
 0x602   : > { %3711 = vrot.lane.b32.xlu0 %v3710_v24, %s3952_s27 }
 0x605   : > { %v2408_v37 = vpop.f32.mrf.mxu0 }
 0x606   : > { %v3690_v41 = vpack.i.bf16 %v2408_v37, %v2406_v1  ;;  %v2368_v39 = vpop.f32.mrf.mxu3 }
 0x607   : > { %v2293_v46 = vpop.f32.mrf.mxu1 }
 0x608   : > { %3691 = vrot.lane.b32.xlu2 %v3690_v41, %s3954_s19 }
 0x60d   : > { %v2411_v56 = vpop.f32.mrf.mxu0 }
 0x610   : > { %3701 = vrot.lane.b32.xlu2 %v3700_v25, %s3953_s23 }
 0x615   : > { %v2413_v55 = vpop.f32.mrf.mxu0 }
 0x619   : > { %v2446_v17 = vpop.f32.mrf.mxu1 }
 0x61a   : > { %v3705_v20 = vpack.i.bf16 %v2446_v17, %v2411_v56  ;;  %v3879_v17 = vld [vmem:[#allocation2] sm:$0xff] }
 0x61c   : > { %3706 = vrot.lane.b32.xlu1 %v3705_v20, %s3954_s19 }
 0x621   : > { %v2448_v63 = vpop.f32.mrf.mxu1 }
 0x629   : > { %v2451_v61 = vpop.f32.mrf.mxu1 }
 0x62a   : > { %v3720_v16 = vpack.i.bf16 %v2451_v61, %v2448_v63 }
 0x62c   : > { %3721 = vrot.lane.b32.xlu0 %v3720_v16, %s3954_s19 }
 0x631   : > { %v2453_v5 = vpop.f32.mrf.mxu1 }
 0x639   : > { %v2371_v6 = vpop.f32.mrf.mxu3 }
 0x63a   : > { %v3715_v23 = vpack.i.bf16 %v2371_v6, %v2368_v39  ;;  %v3880_v39 = vld [vmem:[#allocation2 + $0x8] sm:$0xff] }
 0x63c   : > { %3716 = vrot.lane.b32.xlu2 %v3715_v23, %s3953_s23 }
 0x63e   : > { %v3682_v62 = vpop.permute.xlu2 %3681 }
 0x63f   : > { %v3684_v27 = vunpack.i.h.bf16 %v3682_v62  ;;  %v3683_v47 = vunpack.i.l.bf16 %v3682_v62 }
 0x641   : > { %v2373_v0 = vpop.f32.mrf.mxu3  ;;  %v2528_v57 = vsel %vm5487_vm12, %v5043_v54, %v3684_v27  ;;  %v2527_v43 = vsel %vm5488_vm2, %v5000_v3, %v3683_v47  ;;  %vm5503_vm12 = vmmov %vm5496_vm6 }
 0x662   : > { %v3687_v19 = vpop.permute.xlu0 %3686  ;;  %v3692_v38 = vpop.permute.xlu2 %3691 }
 0x663   : > { %v3689_v9 = vunpack.i.h.bf16 %v3687_v19  ;;  %v3688_v59 = vunpack.i.l.bf16 %v3687_v19  ;;  %v3694_v8 = vunpack.i.h.bf16 %v3692_v38  ;;  %v3693_v18 = vunpack.i.l.bf16 %v3692_v38  ;;  %v3882_v19 = vld [vmem:[#allocation2 + $0x18] sm:$0xff] }
 0x665   : > { %v2534_v22 = vsel %vm2533_vm3, %v2527_v43, %v3688_v59  ;;  %v2535_v44 = vsel %vm2533_vm3, %v2528_v57, %v3689_v9  ;;  %v3883_v43 = vld [vmem:[#allocation2 + $0x20] sm:$0xff] }
 0x666   : > { %v2540_v60 = vsel %vm5489_vm15, %v2534_v22, %v3693_v18  ;;  %v2541_v36 = vsel %vm5490_vm0, %v2535_v44, %v3694_v8 }
 0x667   : > { %v2546_v13 = vpack.c.bf16 %v2541_v36, %v2540_v60  ;;  %v3884_v60 = vld [vmem:[#allocation2 + $0x28] sm:$0xff] }
 0x669   : > { %3546 = vmatmul.msk.bf16.vlgmr.msra.gmra.mxu2 %vm5491_vm7, %v2546_v13 }
 0x66a   : > { %v3697_v15 = vpop.permute.xlu0 %3696  ;;  %v3702_v54 = vpop.permute.xlu2 %3701 }
 0x66b   : > { %v3699_v33 = vunpack.i.h.bf16 %v3697_v15  ;;  %v3698_v32 = vunpack.i.l.bf16 %v3697_v15  ;;  %v3704_v49 = vunpack.i.h.bf16 %v3702_v54  ;;  %v3703_v7 = vunpack.i.l.bf16 %v3702_v54 }
 0x66d   : > { %v2530_v3 = vsel %vm5492_vm10, %v4918_v48, %v3699_v33  ;;  %v2529_v29 = vsel %vm5493_vm4, %v5074_v45, %v3698_v32 }
 0x66e   : > { %v2536_v52 = vsel %vm2533_vm3, %v2529_v29, %v3703_v7  ;;  %v2537_v10 = vsel %vm2533_vm3, %v2530_v3, %v3704_v49 }
 0x674   : > { %v3712_v48 = vpop.permute.xlu0 %3711 }
 0x675   : > { %v3714_v45 = vunpack.i.h.bf16 %v3712_v48  ;;  %v3713_v2 = vunpack.i.l.bf16 %v3712_v48 }
 0x677   : > { %v2532_v1 = vsel %vm5497_vm8, %v5040_v31, %v3714_v45  ;;  %v2531_v26 = vsel %vm5498_vm14, %v4989_v30, %v3713_v2  ;;  %v3728_v31 = vld [vmem:[%s5502_s30] ss:$0 sm:$0xff] }
 0x68e   : > { %v3707_v12 = vpop.permute.xlu1 %3706 }
 0x68f   : > { %v3709_v40 = vunpack.i.h.bf16 %v3707_v12  ;;  %v3708_v14 = vunpack.i.l.bf16 %v3707_v12 }
 0x691   : > { %v2542_v21 = vsel %vm5494_vm9, %v2536_v52, %v3708_v14  ;;  %v2543_v4 = vsel %vm5495_vm5, %v2537_v10, %v3709_v40 }
 0x692   : > { %v2547_v28 = vpack.c.bf16 %v2543_v4, %v2542_v21 }
 0x694   : > { %3547 = vmatmul.msk.bf16.gmra.mxu2 %vm5496_vm6, %v2547_v28 }
 0x696   : > { %v3717_v53 = vpop.permute.xlu2 %3716 }
 0x697   : > { %v3719_v58 = vunpack.i.h.bf16 %v3717_v53  ;;  %v3718_v34 = vunpack.i.l.bf16 %v3717_v53 }
 0x699   : > { %v2539_v41 = vsel %vm2533_vm3, %v2532_v1, %v3719_v58  ;;  %v2538_v46 = vsel %vm2533_vm3, %v2531_v26, %v3718_v34  ;;  %vm5504_vm3 = vmmov %vm5496_vm6 }
 0x69a   : > { %vm5505_vm2 = vmmov %vm5504_vm3 }
 0x69b   : > { %vm5506_vm15 = vmmov %vm5505_vm2 }
 0x69c   : > { %vm5507_vm0 = vmmov %vm5505_vm2 }
 0x69d   : > { %vm5508_vm7 = vmmov %vm5507_vm0 }
 0x69e   : > { %v3722_v50 = vpop.permute.xlu0 %3721  ;;  %vm5509_vm10 = vmmov %vm5507_vm0 }
 0x69f   : > { %v3724_v24 = vunpack.i.h.bf16 %v3722_v50  ;;  %v3723_v37 = vunpack.i.l.bf16 %v3722_v50  ;;  %vm5510_vm4 = vmmov %vm5507_vm0 }
 0x6a0   : > { %vm5511_vm9 = vmmov %vm5507_vm0 }
 0x6a1   : > { %v2544_v35 = vsel %vm5499_vm1, %v2538_v46, %v3723_v37  ;;  %v2545_v56 = vsel %vm5500_vm11, %v2539_v41, %v3724_v24  ;;  %vm5512_vm5 = vmmov %vm5507_vm0 }
 0x6a2   : > { %v2548_v25 = vpack.c.bf16 %v2545_v56, %v2544_v35  ;;  %vm5513_vm6 = vmmov %vm5507_vm0 }
 0x6a3   : > { %vm5514_vm8 = vmmov %vm5507_vm0 }
 0x6a4   : > { %3548 = vmatmul.msk.bf16.gmra.mxu2 %vm5501_vm13, %v2548_v25 }
 0x6ec   : > { %v2587_v55 = vpop.f32.mrf.mxu2 }
 0x6ed   : > { %v2588_v30 = vadd.f32 %v3728_v31, %v2587_v55  ;;  %v3621_v55 = vld [vmem:[%s4119_s9 + $0x8] sm:$0xff] }
 0x6ee   : > { %2798 = vmatpush.bf16.msra.mxu3 %v3621_v55 }
 0x6ef   : > { %v5147_v20 = vadd.f32 %v3879_v17, %v2588_v30  ;;  %v3620_v30 = vld [vmem:[%s4119_s9] sm:$0xff] }
 0x6f1   : > { %v2610_v63 = vsel %vm5503_vm12, %v5147_v20, 0.0 }
 0x6f2   : > { %2611 = vadd.xlane.f32.xlu2 %v2610_v63  ;;  %2799 = vmatpush.bf16.msra.mxu3 %v3620_v30 }
 0x6f4   : > { %v2589_v61 = vpop.f32.mrf.mxu2 }
 0x6f5   : > { %v2590_v16 = vadd.f32 %v3728_v31, %v2589_v61 }
 0x6f7   : > { %v5151_v5 = vadd.f32 %v3880_v39, %v2590_v16 }
 0x6f9   : > { %v2613_v6 = vsel %vm5504_vm3, %v5151_v5, 0.0 }
 0x6fa   : > { %2614 = vadd.xlane.f32.xlu0 %v2613_v6 }
 0x717   : > { %v2592_v23 = vpop.f32.mrf.mxu2 }
 0x718   : > { %v2593_v0 = vadd.f32 %v3728_v31, %v2592_v23 }
 0x71a   : > { %v5155_v51 = vadd.f32 %v3881_v11, %v2593_v0 }
 0x71c   : > { %v2616_v62 = vsel %vm5505_vm2, %v5155_v51, 0.0  ;;  %vm5515_vm2 = vmmov %vm5507_vm0 }
 0x71d   : > { %2617 = vadd.xlane.f32.xlu1 %v2616_v62 }
 0x71f   : > { %v2594_v27 = vpop.f32.mrf.mxu2 }
 0x720   : > { %v2595_v47 = vadd.f32 %v3728_v31, %v2594_v27 }
 0x722   : > { %v5159_v38 = vadd.f32 %v3882_v19, %v2595_v47 }
 0x724   : > { %v2619_v9 = vsel %vm5506_vm15, %v5159_v38, 0.0 }
 0x725   : > { %2620 = vadd.xlane.f32.xlu2 %v2619_v9 }
 0x727   : > { %v2597_v59 = vpop.f32.mrf.mxu2 }
 0x728   : > { %v2598_v57 = vadd.f32 %v3728_v31, %v2597_v59 }
 0x72a   : > { %v5163_v8 = vadd.f32 %v3883_v43, %v2598_v57  ;;  %v5222_v57 = vld [vmem:[%s780_s4] ss:$0 sm:$0xff]  ;;  %s5529_s4 = sld [smem:[#allocation15_spill]] (!%p3592_p6) }
 0x72c   : > { %v2622_v18 = vsel %vm5507_vm0, %v5163_v8, 0.0 }
 0x72d   : > { %2623 = vadd.xlane.f32.xlu0 %v2622_v18 }
 0x72f   : > { %v2599_v22 = vpop.f32.mrf.mxu2 }
 0x730   : > { %v2600_v44 = vadd.f32 %v3728_v31, %v2599_v22 }
 0x732   : > { %v5167_v36 = vadd.f32 %v3884_v60, %v2600_v44  ;;  %v5230_v44 = vld [vmem:[%s783_s21] ss:$0 sm:$0xff] }
 0x734   : > { %v2625_v13 = vsel %vm5508_vm7, %v5167_v36, 0.0 }
 0x735   : > { %2626 = vadd.xlane.f32.xlu2 %v2625_v13 }
 0x765   : > { %v2612_v15 = vpop.xlane.xlu2 %2611 }
 0x766   : > { %v2628_v33 = vmul.f32 %v2612_v15, %v4184_v42 }
 0x768   : > { %v5173_v32 = vsub.f32 %v5147_v20, %v2628_v33 }
 0x76a   : > { %v2640_v54 = vmul.f32 %v5173_v32, %v5173_v32 }
 0x76c   : > { %v2646_v3 = vsel %vm5509_vm10, %v2640_v54, 0.0 }
 0x76d   : > { %v2615_v29 = vpop.xlane.xlu0 %2614  ;;  %2647 = vadd.xlane.f32.xlu1 %v2646_v3 }
 0x76e   : > { %v2629_v49 = vmul.f32 %v2615_v29, %v4184_v42 }
 0x770   : > { %v5180_v7 = vsub.f32 %v5151_v5, %v2629_v49 }
 0x772   : > { %v2641_v12 = vmul.f32 %v5180_v7, %v5180_v7 }
 0x774   : > { %v2649_v40 = vsel %vm5510_vm4, %v2641_v12, 0.0 }
 0x775   : > { %2650 = vadd.xlane.f32.xlu0 %v2649_v40 }
 0x790   : > { %v2618_v14 = vpop.xlane.xlu1 %2617 }
 0x791   : > { %v2630_v52 = vmul.f32 %v2618_v14, %v4184_v42 }
 0x793   : > { %v5187_v10 = vsub.f32 %v5155_v51, %v2630_v52 }
 0x795   : > { %v2642_v21 = vmul.f32 %v5187_v10, %v5187_v10 }
 0x797   : > { %v2652_v4 = vsel %vm5511_vm9, %v2642_v21, 0.0 }
 0x798   : > { %2653 = vadd.xlane.f32.xlu2 %v2652_v4  ;;  %v2621_v28 = vpop.xlane.xlu2 %2620 }
 0x799   : > { %v2631_v48 = vmul.f32 %v2621_v28, %v4184_v42 }
 0x79b   : > { %v5194_v53 = vsub.f32 %v5159_v38, %v2631_v48 }
 0x79d   : > { %v2643_v45 = vmul.f32 %v5194_v53, %v5194_v53 }
 0x79f   : > { %v2655_v2 = vsel %vm5512_vm5, %v2643_v45, 0.0 }
 0x7a0   : > { %v2624_v58 = vpop.xlane.xlu0 %2623  ;;  %2656 = vadd.xlane.f32.xlu1 %v2655_v2 }
 0x7a1   : > { %v2632_v34 = vmul.f32 %v2624_v58, %v4184_v42 }
 0x7a3   : > { %v5201_v50 = vsub.f32 %v5163_v8, %v2632_v34 }
 0x7a5   : > { %v2644_v1 = vmul.f32 %v5201_v50, %v5201_v50 }
 0x7a7   : > { %v2658_v26 = vsel %vm5513_vm6, %v2644_v1, 0.0 }
 0x7a8   : > { %2659 = vadd.xlane.f32.xlu0 %v2658_v26  ;;  %v2627_v24 = vpop.xlane.xlu2 %2626 }
 0x7a9   : > { %v2633_v37 = vmul.f32 %v2627_v24, %v4184_v42 }
 0x7ab   : > { %v5208_v41 = vsub.f32 %v5167_v36, %v2633_v37 }
 0x7ad   : > { %v2645_v46 = vmul.f32 %v5208_v41, %v5208_v41 }
 0x7af   : > { %v2661_v35 = vsel %vm5514_vm8, %v2645_v46, 0.0 }
 0x7b0   : > { %2662 = vadd.xlane.f32.xlu2 %v2661_v35 }
 0x7e0   : > { %v2648_v56 = vpop.xlane.xlu1 %2647 }
 0x7e1   : > { %v2664_v25 = vmul.f32 %v2648_v56, %v4184_v42 }
 0x7e3   : > { %v2670_v31 = vadd.f32 1e-06, %v2664_v25 }
 0x7e5   : > { %3843 = vrsqrt.f32 %v2670_v31  ;;  %vm2682_vm1 = vweird.f32 %v2670_v31 }
 0x7e8   : > { %v2651_v17 = vpop.xlane.xlu0 %2650 }
 0x7e9   : > { %v2665_v63 = vmul.f32 %v2651_v17, %v4184_v42 }
 0x7eb   : > { %v3844_v61 = vpop.eup %3843  ;;  %v2671_v16 = vadd.f32 1e-06, %v2665_v63 }
 0x7ec   : > { %v2677_v39 = vmul.f32 %v3844_v61, %v2670_v31  ;;  %vm2683_vm14 = vweird.f32 %v3844_v61 }
 0x7ed   : > { %3845 = vrsqrt.f32 %v2671_v16  ;;  %vm2684_vm11 = vmor %vm2682_vm1, %vm2683_vm14  ;;  %vm2692_vm12 = vweird.f32 %v2671_v16 }
 0x7ee   : > { %v2678_v6 = vmul.f32 %v3844_v61, %v2677_v39  ;;  %vm5516_vm14 = vmmov %vm5515_vm2 }
 0x7f0   : > { %v2679_v23 = vmul.f32 0.5, %v2678_v6 }
 0x7f2   : > { %v2680_v0 = vsub.f32 1.5, %v2679_v23 }
 0x7f3   : > { %v3846_v11 = vpop.eup %3845 }
 0x7f4   : > { %v2681_v62 = vmul.f32 %v3844_v61, %v2680_v0  ;;  %v2687_v27 = vmul.f32 %v3846_v11, %v2671_v16  ;;  %vm2693_vm13 = vweird.f32 %v3846_v11 }
 0x7f5   : > { %vm2694_vm3 = vmor %vm2692_vm12, %vm2693_vm13 }
 0x7f6   : > { %v2688_v47 = vmul.f32 %v3846_v11, %v2687_v27  ;;  %v2685_v19 = vsel %vm2684_vm11, %v3844_v61, %v2681_v62  ;;  %vm5517_vm12 = vmmov %vm5515_vm2 }
 0x7f7   : > { %v2736_v43 = vmul.f32 %v2685_v19, %v5173_v32 }
 0x7f8   : > { %v2689_v9 = vmul.f32 0.5, %v2688_v47 }
 0x7f9   : > { %v2745_v60 = vmul.f32 %v5222_v57, %v2736_v43 }
 0x7fa   : > { %v2690_v59 = vsub.f32 1.5, %v2689_v9 }
 0x7fb   : > { %v2754_v33 = vadd.f32 %v5230_v44, %v2745_v60 }
 0x7fc   : > { %v2691_v18 = vmul.f32 %v3846_v11, %v2690_v59 }
 0x7fe   : > { %v2695_v22 = vsel %vm2694_vm3, %v3846_v11, %v2691_v18 }
 0x7ff   : > { %v2737_v13 = vmul.f32 %v2695_v22, %v5180_v7 }
 0x801   : > { %v2746_v15 = vmul.f32 %v5222_v57, %v2737_v13 }
 0x803   : > { %v2755_v32 = vadd.f32 %v5230_v44, %v2746_v15 }
 0x805   : > { %v2760_v54 = vpack.c.bf16 %v2755_v32, %v2754_v33 }
 0x807   : > { %3557 = vmatmul.msk.bf16.vlgmr.msra.gmra.mxu3 %vm5515_vm2, %v2760_v54 }
 0x80b   : > { %v2654_v3 = vpop.xlane.xlu2 %2653 }
 0x80c   : > { %v2666_v29 = vmul.f32 %v2654_v3, %v4184_v42 }
 0x80e   : > { %v2672_v49 = vadd.f32 1e-06, %v2666_v29 }
 0x810   : > { %3847 = vrsqrt.f32 %v2672_v49  ;;  %vm2702_vm0 = vweird.f32 %v2672_v49 }
 0x813   : > { %v2657_v12 = vpop.xlane.xlu1 %2656 }
 0x814   : > { %v2667_v40 = vmul.f32 %v2657_v12, %v4184_v42 }
 0x816   : > { %v3848_v14 = vpop.eup %3847  ;;  %v2673_v52 = vadd.f32 1e-06, %v2667_v40 }
 0x817   : > { %v2697_v7 = vmul.f32 %v3848_v14, %v2672_v49  ;;  %vm2703_vm15 = vweird.f32 %v3848_v14 }
 0x818   : > { %3849 = vrsqrt.f32 %v2673_v52  ;;  %vm2704_vm7 = vmor %vm2702_vm0, %vm2703_vm15  ;;  %vm2712_vm4 = vweird.f32 %v2673_v52 }
 0x819   : > { %v2698_v21 = vmul.f32 %v3848_v14, %v2697_v7 }
 0x81b   : > { %v2699_v4 = vmul.f32 0.5, %v2698_v21  ;;  %v2660_v28 = vpop.xlane.xlu0 %2659 }
 0x81c   : > { %v2668_v48 = vmul.f32 %v2660_v28, %v4184_v42 }
 0x81d   : > { %v2700_v45 = vsub.f32 1.5, %v2699_v4 }
 0x81e   : > { %v3850_v2 = vpop.eup %3849  ;;  %v2674_v58 = vadd.f32 1e-06, %v2668_v48 }
 0x81f   : > { %v2701_v34 = vmul.f32 %v3848_v14, %v2700_v45  ;;  %v2707_v1 = vmul.f32 %v3850_v2, %v2673_v52  ;;  %vm2713_vm10 = vweird.f32 %v3850_v2 }
 0x820   : > { %3851 = vrsqrt.f32 %v2674_v58  ;;  %vm2714_vm9 = vmor %vm2712_vm4, %vm2713_vm10  ;;  %vm2722_vm6 = vweird.f32 %v2674_v58 }
 0x821   : > { %v2708_v26 = vmul.f32 %v3850_v2, %v2707_v1  ;;  %v2705_v24 = vsel %vm2704_vm7, %v3848_v14, %v2701_v34  ;;  %v3629_v1 = vld [vmem:[%s4129_s25 + $0x38] sm:$0xff] }
 0x822   : > { %v2738_v31 = vmul.f32 %v2705_v24, %v5187_v10  ;;  %3127 = vmatpush.bf16.msra.mxu0 %v3629_v1 }
 0x823   : > { %v2709_v37 = vmul.f32 0.5, %v2708_v26  ;;  %v2663_v46 = vpop.xlane.xlu2 %2662 }
 0x824   : > { %v2669_v35 = vmul.f32 %v2663_v46, %v4184_v42  ;;  %v2747_v39 = vmul.f32 %v5222_v57, %v2738_v31  ;;  %v3628_v31 = vld [vmem:[%s4129_s25 + $0x30] sm:$0xff] }
 0x825   : > { %v2710_v56 = vsub.f32 1.5, %v2709_v37 }
 0x826   : > { %v3852_v25 = vpop.eup %3851  ;;  %v2675_v55 = vadd.f32 1e-06, %v2669_v35  ;;  %v2756_v62 = vadd.f32 %v5230_v44, %v2747_v39  ;;  %3128 = vmatpush.bf16.msra.mxu0 %v3628_v31 }
 0x827   : > { %v2711_v30 = vmul.f32 %v3850_v2, %v2710_v56  ;;  %v2717_v17 = vmul.f32 %v3852_v25, %v2674_v58  ;;  %vm2723_vm5 = vweird.f32 %v3852_v25 }
 0x828   : > { %3853 = vrsqrt.f32 %v2675_v55  ;;  %vm2724_vm8 = vmor %vm2722_vm6, %vm2723_vm5  ;;  %vm2732_vm11 = vweird.f32 %v2675_v55 }
 0x829   : > { %v2715_v63 = vsel %vm2714_vm9, %v3850_v2, %v2711_v30  ;;  %v2718_v61 = vmul.f32 %v3852_v25, %v2717_v17 }
 0x82a   : > { %v2739_v16 = vmul.f32 %v2715_v63, %v5194_v53 }
 0x82b   : > { %v2719_v6 = vmul.f32 0.5, %v2718_v61 }
 0x82c   : > { %v2748_v23 = vmul.f32 %v5222_v57, %v2739_v16 }
 0x82d   : > { %v2720_v0 = vsub.f32 1.5, %v2719_v6  ;;  %v3627_v6 = vld [vmem:[%s4129_s25 + $0x28] sm:$0xff] }
 0x82e   : > { %v3854_v11 = vpop.eup %3853  ;;  %v2757_v10 = vadd.f32 %v5230_v44, %v2748_v23  ;;  %3129 = vmatpush.bf16.msra.mxu0 %v3627_v6 }
 0x82f   : > { %v2721_v27 = vmul.f32 %v3852_v25, %v2720_v0  ;;  %v2727_v47 = vmul.f32 %v3854_v11, %v2675_v55  ;;  %vm2733_vm1 = vweird.f32 %v3854_v11 }
 0x830   : > { %v2761_v19 = vpack.c.bf16 %v2757_v10, %v2756_v62  ;;  %vm2734_vm13 = vmor %vm2732_vm11, %vm2733_vm1  ;;  %v3626_v10 = vld [vmem:[%s4129_s25 + $0x20] sm:$0xff] }
 0x831   : > { %v2728_v9 = vmul.f32 %v3854_v11, %v2727_v47  ;;  %v2725_v53 = vsel %vm2724_vm8, %v3852_v25, %v2721_v27 }
 0x832   : > { %3558 = vmatmul.msk.bf16.gmra.mxu3 %vm5516_vm14, %v2761_v19  ;;  %v2740_v18 = vmul.f32 %v2725_v53, %v5201_v50  ;;  %v5261_v50 = vld [vmem:[%s791_s11] ss:$0 sm:$0xff]  ;;  %3130 = vmatpush.bf16.msra.mxu0 %v3626_v10 }
 0x833   : > { %v2729_v59 = vmul.f32 0.5, %v2728_v9 }
 0x834   : > { %v2749_v15 = vmul.f32 %v5222_v57, %v2740_v18 }
 0x835   : > { %v2730_v43 = vsub.f32 1.5, %v2729_v59 }
 0x836   : > { %v2758_v32 = vadd.f32 %v5230_v44, %v2749_v15 }
 0x837   : > { %v2731_v22 = vmul.f32 %v3854_v11, %v2730_v43 }
 0x839   : > { %v2735_v60 = vsel %vm2734_vm13, %v3854_v11, %v2731_v22  ;;  %v3625_v22 = vld [vmem:[%s4129_s25 + $0x18] sm:$0xff] }
 0x83a   : > { %v2741_v13 = vmul.f32 %v2735_v60, %v5208_v41  ;;  %3131 = vmatpush.bf16.msra.mxu0 %v3625_v22 }
 0x83c   : > { %v2750_v33 = vmul.f32 %v5222_v57, %v2741_v13 }
 0x83e   : > { %v2759_v54 = vadd.f32 %v5230_v44, %v2750_v33 }
 0x840   : > { %v2762_v3 = vpack.c.bf16 %v2759_v54, %v2758_v32  ;;  %v3624_v32 = vld [vmem:[%s4129_s25 + $0x10] sm:$0xff] }
 0x841   : > { %3132 = vmatpush.bf16.msra.mxu0 %v3624_v32 }
 0x842   : > { %3559 = vmatmul.msk.bf16.gmra.mxu3 %vm5517_vm12, %v2762_v3 }
 0x88a   : > { %v2801_v29 = vpop.f32.mrf.mxu3 }
 0x88b   : > { %v5264_v41 = vadd.f32 %v5261_v50, %v2801_v29 }
 0x88d   : > { %v5267_v49 = vmul.f32 0.70710677, %v5264_v41 }
 0x88f   : > { %v2828_v57 = vand.u32 2147483647, %v5267_v49  ;;  %vm3026_vm5 = vcmp.ge.f32.partialorder %v5267_v49, 0.0  ;;  %v2816_v49 = vmul.f32 0.5, %v5264_v41 }
 0x891   : > { %v2834_v12 = vmul.f32 0.3275911, %v2828_v57  ;;  %v2990_v56 = vsub.f32 0.0, %v2828_v57 }
 0x892   : > { %v2803_v44 = vpop.f32.mrf.mxu3 }
 0x893   : > { %v2840_v40 = vadd.f32 1.0, %v2834_v12  ;;  %v5271_v14 = vadd.f32 %v5261_v50, %v2803_v44  ;;  %v2996_v61 = vmul.f32 %v2990_v56, %v2828_v57 }
 0x895   : > { %3855 = vrcp.f32 %v2840_v40  ;;  %v5274_v52 = vmul.f32 0.70710677, %v5271_v14  ;;  %v2857_v2 = vand.u32 2147483648, %v2840_v40  ;;  %v2855_v34 = vand.u32 2147483647, %v2840_v40 }
 0x896   : > { %vm2851_vm2 = vweird.f32 %v2840_v40  ;;  %v3002_v27 = vmul.f32 1.442695, %v2996_v61  ;;  %v2817_v10 = vmul.f32 0.5, %v5271_v14 }
 0x897   : > { %v2829_v7 = vand.u32 2147483647, %v5274_v52  ;;  %v2858_v24 = vor.u32 1.1754944e-38, %v2857_v2  ;;  %vm2856_vm0 = vcmp.eq.f32.partialorder %v2855_v34, 8.507059e+37  ;;  %vm3027_vm6 = vcmp.ge.f32.partialorder %v5274_v52, 0.0 }
 0x899   : > { %v2835_v21 = vmul.f32 0.3275911, %v2829_v7  ;;  %v2991_v53 = vsub.f32 0.0, %v2829_v7 }
 0x89b   : > { %v3856_v4 = vpop.eup %3855  ;;  %v2841_v48 = vadd.f32 1.0, %v2835_v21  ;;  %v2997_v13 = vmul.f32 %v2991_v53, %v2829_v7 }
 0x89c   : > { %v2847_v28 = vmul.f32 %v3856_v4, %v2840_v40  ;;  %vm2852_vm3 = vweird.f32 %v3856_v4 }
 0x89d   : > { %3857 = vrcp.f32 %v2841_v48  ;;  %vm2853_vm15 = vmor %vm2851_vm2, %vm2852_vm3  ;;  %v2872_v63 = vand.u32 2147483648, %v2841_v48  ;;  %v2870_v39 = vand.u32 2147483647, %v2841_v48  ;;  %vm2866_vm10 = vweird.f32 %v2841_v48 }
 0x89e   : > { %v2848_v45 = vsub.f32 1.0, %v2847_v28  ;;  %3859 = vpow2.f32 %v3002_v27  ;;  %v3004_v57 = vmul.f32 1.442695, %v2997_v13  ;;  %v3623_v28 = vld [vmem:[%s4129_s25 + $0x8] sm:$0xff] }
 0x89f   : > { %v2873_v62 = vor.u32 1.1754944e-38, %v2872_v63  ;;  %vm2871_vm9 = vcmp.eq.f32.partialorder %v2870_v39, 8.507059e+37  ;;  %3133 = vmatpush.bf16.msra.mxu0 %v3623_v28 }
 0x8a0   : > { %v2849_v58 = vmul.f32 %v3856_v4, %v2848_v45  ;;  %3861 = vpow2.f32 %v3004_v57 }
 0x8a2   : > { %v2850_v26 = vadd.f32 %v3856_v4, %v2849_v58  ;;  %v3622_v58 = vld [vmem:[%s4129_s25] sm:$0xff] }
 0x8a3   : > { %v3858_v37 = vpop.eup %3857  ;;  %3134 = vmatpush.bf16.msra.mxu0 %v3622_v58 }
 0x8a4   : > { %v2854_v46 = vsel %vm2853_vm15, %v3856_v4, %v2850_v26  ;;  %v2862_v25 = vmul.f32 %v3858_v37, %v2841_v48  ;;  %vm2867_vm7 = vweird.f32 %v3858_v37  ;;  %v3860_v44 = vpop.eup %3859 }
 0x8a5   : > { %v2859_v35 = vsel %vm2856_vm0, %v2858_v24, %v2854_v46  ;;  %vm2868_vm4 = vmor %vm2866_vm10, %vm2867_vm7 }
 0x8a6   : > { %v2936_v55 = vmul.f32 1.0614054, %v2859_v35  ;;  %v2863_v30 = vsub.f32 1.0, %v2862_v25  ;;  %v3862_v56 = vpop.eup %3861 }
 0x8a8   : > { %v2942_v17 = vadd.f32 -1.4531521, %v2936_v55  ;;  %v2864_v16 = vmul.f32 %v3858_v37, %v2863_v30 }
 0x8aa   : > { %v2948_v23 = vmul.f32 %v2942_v17, %v2859_v35  ;;  %v2865_v0 = vadd.f32 %v3858_v37, %v2864_v16 }
 0x8ac   : > { %v2954_v11 = vadd.f32 1.4214138, %v2948_v23  ;;  %v2869_v47 = vsel %vm2868_vm4, %v3858_v37, %v2865_v0 }
 0x8ad   : > { %v2874_v9 = vsel %vm2871_vm9, %v2873_v62, %v2869_v47 }
 0x8ae   : > { %v2960_v19 = vmul.f32 %v2954_v11, %v2859_v35  ;;  %v2937_v59 = vmul.f32 1.0614054, %v2874_v9 }
 0x8b0   : > { %v2966_v43 = vadd.f32 -0.28449672, %v2960_v19  ;;  %v2943_v18 = vadd.f32 -1.4531521, %v2937_v59 }
 0x8b2   : > { %v2972_v60 = vmul.f32 %v2966_v43, %v2859_v35  ;;  %v2949_v15 = vmul.f32 %v2943_v18, %v2874_v9 }
 0x8b4   : > { %v2978_v33 = vadd.f32 0.2548296, %v2972_v60  ;;  %v2955_v54 = vadd.f32 1.4214138, %v2949_v15 }
 0x8b5   : > { %v2806_v3 = vpop.f32.mrf.mxu3 }
 0x8b6   : > { %v2984_v29 = vmul.f32 %v2978_v33, %v2859_v35  ;;  %v5284_v12 = vadd.f32 %v5261_v50, %v2806_v3  ;;  %v2961_v40 = vmul.f32 %v2955_v54, %v2874_v9 }
 0x8b8   : > { %v3014_v21 = vmul.f32 %v3860_v44, %v2984_v29  ;;  %v5287_v4 = vmul.f32 0.70710677, %v5284_v12  ;;  %v2967_v7 = vadd.f32 -0.28449672, %v2961_v40 }
 0x8ba   : > { %v5291_v48 = vand.u32 2147483647, %v5287_v4  ;;  %v3020_v45 = vsub.f32 1.0, %v3014_v21  ;;  %v2973_v2 = vmul.f32 %v2967_v7, %v2874_v9 }
 0x8bc   : > { %v2836_v34 = vmul.f32 0.3275911, %v5291_v48  ;;  %v2979_v1 = vadd.f32 0.2548296, %v2973_v2  ;;  %v3032_v46 = vsub.f32 0.0, %v3020_v45  ;;  %v2992_v29 = vsub.f32 0.0, %v5291_v48 }
 0x8bd   : > { %v2808_v26 = vpop.f32.mrf.mxu3 }
 0x8be   : > { %v2842_v24 = vadd.f32 1.0, %v2836_v34  ;;  %v5296_v37 = vadd.f32 %v5261_v50, %v2808_v26  ;;  %v2985_v35 = vmul.f32 %v2979_v1, %v2874_v9  ;;  %v3038_v55 = vsel %vm3026_vm5, %v3020_v45, %v3032_v46 }
 0x8bf   : > { %v3044_v6 = vadd.f32 1.0, %v3038_v55  ;;  %v2998_v45 = vmul.f32 %v2992_v29, %v5291_v48 }
 0x8c0   : > { %3863 = vrcp.f32 %v2842_v24  ;;  %v3015_v25 = vmul.f32 %v3862_v56, %v2985_v35  ;;  %v5299_v31 = vmul.f32 0.70710677, %v5296_v37  ;;  %v2887_v18 = vand.u32 2147483648, %v2842_v24 }
 0x8c1   : > { %v3050_v9 = vmul.f32 %v3044_v6, %v2816_v49  ;;  %vm2881_vm14 = vweird.f32 %v2842_v24  ;;  %v2885_v60 = vand.u32 2147483647, %v2842_v24  ;;  %v3006_v55 = vmul.f32 1.442695, %v2998_v45 }
 0x8c2   : > { %v3021_v30 = vsub.f32 1.0, %v3015_v25  ;;  %v5303_v17 = vand.u32 2147483647, %v5299_v31  ;;  %v2888_v54 = vor.u32 1.1754944e-38, %v2887_v18 }
 0x8c3   : > { %vm2886_vm11 = vcmp.eq.f32.partialorder %v2885_v60, 8.507059e+37 }
 0x8c4   : > { %v3033_v63 = vsub.f32 0.0, %v3021_v30  ;;  %v2837_v61 = vmul.f32 0.3275911, %v5303_v17 }
 0x8c5   : > { %v2811_v16 = vpop.f32.mrf.mxu3 }
 0x8c6   : > { %v3864_v39 = vpop.eup %3863  ;;  %v5308_v23 = vadd.f32 %v5261_v50, %v2811_v16  ;;  %v3039_v0 = vsel %vm3027_vm6, %v3021_v30, %v3033_v63  ;;  %v2843_v62 = vadd.f32 1.0, %v2837_v61  ;;  %v2993_v63 = vsub.f32 0.0, %v5303_v17 }
 0x8c7   : > { %v2877_v11 = vmul.f32 %v3864_v39, %v2842_v24  ;;  %v3045_v27 = vadd.f32 1.0, %v3039_v0  ;;  %vm2882_vm8 = vweird.f32 %v3864_v39 }
 0x8c8   : > { %v5313_v47 = vmul.f32 0.70710677, %v5308_v23  ;;  %3865 = vrcp.f32 %v2843_v62  ;;  %vm2883_vm1 = vmor %vm2881_vm14, %vm2882_vm8  ;;  %v2900_v58 = vand.u32 2147483647, %v2843_v62  ;;  %vm2896_vm12 = vweird.f32 %v2843_v62 }
 0x8c9   : > { %v2878_v19 = vsub.f32 1.0, %v2877_v11  ;;  %v3051_v53 = vmul.f32 %v3045_v27, %v2817_v10  ;;  %v2999_v10 = vmul.f32 %v2993_v63, %v5303_v17  ;;  %vm3028_vm8 = vcmp.ge.f32.partialorder %v5287_v4, 0.0 }
 0x8ca   : > { %v5316_v52 = vand.u32 2147483647, %v5313_v47  ;;  %vm2901_vm2 = vcmp.eq.f32.partialorder %v2900_v58, 8.507059e+37  ;;  %vm3029_vm14 = vcmp.ge.f32.partialorder %v5299_v31, 0.0 }
 0x8cb   : > { %v2879_v59 = vmul.f32 %v3864_v39, %v2878_v19  ;;  %v3056_v43 = vpack.c.bf16 %v3051_v53, %v3050_v9 }
 0x8cc   : > { %v2838_v22 = vmul.f32 0.3275911, %v5316_v52  ;;  %v2994_v53 = vsub.f32 0.0, %v5316_v52 }
 0x8cd   : > { %v2813_v41 = vpop.f32.mrf.mxu3  ;;  %v2880_v14 = vadd.f32 %v3864_v39, %v2879_v59  ;;  %3135 = vmatmul.bf16.vlgmr.msra.gmra.mxu0 %v3056_v43 }
 0x8ce   : > { %v2844_v13 = vadd.f32 1.0, %v2838_v22  ;;  %v5320_v15 = vadd.f32 %v5261_v50, %v2813_v41  ;;  %v3866_v33 = vpop.eup %3865  ;;  %v2902_v50 = vand.u32 2147483648, %v2843_v62 }
 0x8cf   : > { %v2884_v32 = vsel %vm2883_vm1, %v3864_v39, %v2880_v14  ;;  %v2892_v3 = vmul.f32 %v3866_v33, %v2843_v62  ;;  %vm2897_vm13 = vweird.f32 %v3866_v33  ;;  %vm3030_vm1 = vcmp.ge.f32.partialorder %v5313_v47, 0.0  ;;  %v3732_v47 = vld [vmem:[%s5518_s3] ss:$0 sm:$0xff] }
 0x8d0   : > { %3867 = vrcp.f32 %v2844_v13  ;;  %v5324_v57 = vmul.f32 0.70710677, %v5320_v15  ;;  %v2889_v40 = vsel %vm2886_vm11, %v2888_v54, %v2884_v32  ;;  %vm2898_vm3 = vmor %vm2896_vm12, %vm2897_vm13  ;;  %v2903_v35 = vor.u32 1.1754944e-38, %v2902_v50 }
 0x8d1   : > { %v2893_v44 = vsub.f32 1.0, %v2892_v3  ;;  %v2938_v28 = vmul.f32 1.0614054, %v2889_v40  ;;  %v2917_v48 = vand.u32 2147483648, %v2844_v13  ;;  %v2915_v0 = vand.u32 2147483647, %v2844_v13 }
 0x8d2   : > { %v5327_v21 = vand.u32 2147483647, %v5324_v57  ;;  %vm2911_vm0 = vweird.f32 %v2844_v13  ;;  %v3000_v54 = vmul.f32 %v2994_v53, %v5316_v52  ;;  %vm3031_vm11 = vcmp.ge.f32.partialorder %v5324_v57, 0.0 }
 0x8d3   : > { %v2894_v7 = vmul.f32 %v3866_v33, %v2893_v44  ;;  %v2944_v26 = vadd.f32 -1.4531521, %v2938_v28  ;;  %v2918_v27 = vor.u32 1.1754944e-38, %v2917_v48  ;;  %vm2916_vm10 = vcmp.eq.f32.partialorder %v2915_v0, 8.507059e+37 }
 0x8d4   : > { %v2839_v2 = vmul.f32 0.3275911, %v5327_v21  ;;  %vm5519_vm13 = vcmask 261120  }
 0x8d5   : > { %v2895_v1 = vadd.f32 %v3866_v33, %v2894_v7  ;;  %v2950_v25 = vmul.f32 %v2944_v26, %v2889_v40  ;;  %vm5520_vm12 = vmmov %vm5519_vm13 }
 0x8d6   : > { %v3868_v34 = vpop.eup %3867  ;;  %v2845_v46 = vadd.f32 1.0, %v2839_v2 }
 0x8d7   : > { %v2907_v24 = vmul.f32 %v3868_v34, %v2844_v13  ;;  %v2899_v56 = vsel %vm2898_vm3, %v3866_v33, %v2895_v1  ;;  %v2956_v16 = vadd.f32 1.4214138, %v2950_v25  ;;  %vm2912_vm15 = vweird.f32 %v3868_v34  ;;  %vm5521_vm3 = vmmov %vm5520_vm12 }
 0x8d8   : > { %3869 = vrcp.f32 %v2845_v46  ;;  %v2904_v61 = vsel %vm2901_vm2, %v2903_v35, %v2899_v56  ;;  %vm2913_vm7 = vmor %vm2911_vm0, %vm2912_vm15  ;;  %v3008_v13 = vmul.f32 1.442695, %v2999_v10  ;;  %v2932_v17 = vand.u32 2147483648, %v2845_v46 }
 0x8d9   : > { %v2908_v30 = vsub.f32 1.0, %v2907_v24  ;;  %v2939_v6 = vmul.f32 1.0614054, %v2904_v61  ;;  %v2962_v11 = vmul.f32 %v2956_v16, %v2889_v40  ;;  %3871 = vpow2.f32 %v3006_v55  ;;  %vm5522_vm2 = vmmov %vm5521_vm3 }
 0x8da   : > { %v2930_v28 = vand.u32 2147483647, %v2845_v46  ;;  %3873 = vpow2.f32 %v3008_v13  ;;  %vm2926_vm9 = vweird.f32 %v2845_v46  ;;  %v2933_v1 = vor.u32 1.1754944e-38, %v2932_v17  ;;  %vm5523_vm15 = vmmov %vm5522_vm2 }
 0x8db   : > { %v2909_v39 = vmul.f32 %v3868_v34, %v2908_v30  ;;  %v2945_v62 = vadd.f32 -1.4531521, %v2939_v6  ;;  %v2968_v19 = vadd.f32 -0.28449672, %v2962_v11  ;;  %v3010_v35 = vmul.f32 1.442695, %v3000_v54  ;;  %vm5524_vm0 = vmmov %vm5522_vm2 }
 0x8dc   : > { %vm2931_vm6 = vcmp.eq.f32.partialorder %v2930_v28, 8.507059e+37  ;;  %v2995_v25 = vsub.f32 0.0, %v5327_v21  ;;  %v2819_v13 = vmul.f32 0.5, %v5296_v37 }
 0x8dd   : > { %v2910_v49 = vadd.f32 %v3868_v34, %v2909_v39  ;;  %v2951_v59 = vmul.f32 %v2945_v62, %v2904_v61  ;;  %v2974_v22 = vmul.f32 %v2968_v19, %v2889_v40  ;;  %3875 = vpow2.f32 %v3010_v35 }
 0x8de   : > { %v3870_v9 = vpop.eup %3869  ;;  %v3001_v0 = vmul.f32 %v2995_v25, %v5327_v21  ;;  %v2818_v21 = vmul.f32 0.5, %v5284_v12 }
 0x8df   : > { %v2914_v43 = vsel %vm2913_vm7, %v3868_v34, %v2910_v49  ;;  %v2922_v18 = vmul.f32 %v3870_v9, %v2845_v46  ;;  %v2957_v14 = vadd.f32 1.4214138, %v2951_v59  ;;  %v2980_v32 = vadd.f32 0.2548296, %v2974_v22  ;;  %v3872_v44 = vpop.eup %3871 }
 0x8e0   : > { %v2919_v41 = vsel %vm2916_vm10, %v2918_v27, %v2914_v43  ;;  %vm2927_vm4 = vweird.f32 %v3870_v9  ;;  %v3874_v46 = vpop.eup %3873  ;;  %v3012_v53 = vmul.f32 1.442695, %v3001_v0 }
 0x8e1   : > { %v2940_v60 = vmul.f32 1.0614054, %v2919_v41  ;;  %v2923_v33 = vsub.f32 1.0, %v2922_v18  ;;  %v2963_v3 = vmul.f32 %v2957_v14, %v2904_v61  ;;  %v2986_v50 = vmul.f32 %v2980_v32, %v2889_v40  ;;  %vm2928_vm5 = vmor %vm2926_vm9, %vm2927_vm4 }
 0x8e2   : > { %3877 = vpow2.f32 %v3012_v53 }
 0x8e3   : > { %v2946_v29 = vadd.f32 -1.4531521, %v2940_v60  ;;  %v2924_v7 = vmul.f32 %v3870_v9, %v2923_v33  ;;  %v2969_v45 = vadd.f32 -0.28449672, %v2963_v3  ;;  %v3016_v58 = vmul.f32 %v3872_v44, %v2986_v50 }
 0x8e5   : > { %v2952_v2 = vmul.f32 %v2946_v29, %v2919_v41  ;;  %v2925_v34 = vadd.f32 %v3870_v9, %v2924_v7  ;;  %v2975_v26 = vmul.f32 %v2969_v45, %v2904_v61  ;;  %v3022_v52 = vsub.f32 1.0, %v3016_v58 }
 0x8e6   : > { %v2820_v58 = vmul.f32 0.5, %v5308_v23 }
 0x8e7   : > { %v2958_v24 = vadd.f32 1.4214138, %v2952_v2  ;;  %v2929_v56 = vsel %vm2928_vm5, %v3870_v9, %v2925_v34  ;;  %v2981_v55 = vadd.f32 0.2548296, %v2975_v26  ;;  %v3034_v16 = vsub.f32 0.0, %v3022_v52 }
 0x8e8   : > { %v2934_v30 = vsel %vm2931_vm6, %v2933_v1, %v2929_v56  ;;  %v2821_v34 = vmul.f32 0.5, %v5320_v15 }
 0x8e9   : > { %v2964_v40 = vmul.f32 %v2958_v24, %v2919_v41  ;;  %v2941_v63 = vmul.f32 1.0614054, %v2934_v30  ;;  %v2987_v48 = vmul.f32 %v2981_v55, %v2904_v61  ;;  %v3040_v27 = vsel %vm3028_vm8, %v3022_v52, %v3034_v16  ;;  %v3876_v61 = vpop.eup %3875 }
 0x8ea   : > { %v3046_v18 = vadd.f32 1.0, %v3040_v27  ;;  %v3878_v7 = vpop.eup %3877 }
 0x8eb   : > { %v2970_v39 = vadd.f32 -0.28449672, %v2964_v40  ;;  %v2947_v6 = vadd.f32 -1.4531521, %v2941_v63  ;;  %v3017_v11 = vmul.f32 %v3874_v46, %v2987_v48 }
 0x8ec   : > { %v3052_v32 = vmul.f32 %v3046_v18, %v2818_v21 }
 0x8ed   : > { %v2976_v62 = vmul.f32 %v2970_v39, %v2919_v41  ;;  %v2953_v49 = vmul.f32 %v2947_v6, %v2934_v30  ;;  %v3023_v10 = vsub.f32 1.0, %v3017_v11 }
 0x8ef   : > { %v2982_v19 = vadd.f32 0.2548296, %v2976_v62  ;;  %v2959_v9 = vadd.f32 1.4214138, %v2953_v49  ;;  %v3035_v59 = vsub.f32 0.0, %v3023_v10 }
 0x8f1   : > { %v2988_v43 = vmul.f32 %v2982_v19, %v2919_v41  ;;  %v2965_v22 = vmul.f32 %v2959_v9, %v2934_v30  ;;  %v3041_v14 = vsel %vm3029_vm14, %v3023_v10, %v3035_v59 }
 0x8f2   : > { %v3047_v4 = vadd.f32 1.0, %v3041_v14 }
 0x8f3   : > { %v3018_v60 = vmul.f32 %v3876_v61, %v2988_v43  ;;  %v2971_v33 = vadd.f32 -0.28449672, %v2965_v22 }
 0x8f4   : > { %v3053_v54 = vmul.f32 %v3047_v4, %v2819_v13 }
 0x8f5   : > { %v2977_v17 = vmul.f32 %v2971_v33, %v2934_v30  ;;  %v3024_v3 = vsub.f32 1.0, %v3018_v60 }
 0x8f6   : > { %v3057_v29 = vpack.c.bf16 %v3053_v54, %v3052_v32 }
 0x8f7   : > { %v2983_v41 = vadd.f32 0.2548296, %v2977_v17  ;;  %v3036_v31 = vsub.f32 0.0, %v3024_v3 }
 0x8f8   : > { %3140 = vmatmul.bf16.gmra.mxu0 %v3057_v29 }
 0x8f9   : > { %v2989_v44 = vmul.f32 %v2983_v41, %v2934_v30  ;;  %v3042_v28 = vsel %vm3030_vm1, %v3024_v3, %v3036_v31 }
 0x8fa   : > { %v3048_v45 = vadd.f32 1.0, %v3042_v28 }
 0x8fb   : > { %v3019_v50 = vmul.f32 %v3878_v7, %v2989_v44 }
 0x8fc   : > { %v3054_v26 = vmul.f32 %v3048_v45, %v2820_v58 }
 0x8fd   : > { %v3025_v12 = vsub.f32 1.0, %v3019_v50 }
 0x8ff   : > { %v3037_v37 = vsub.f32 0.0, %v3025_v12 }
 0x901   : > { %v3043_v2 = vsel %vm3031_vm11, %v3025_v12, %v3037_v37 }
 0x902   : > { %v3049_v1 = vadd.f32 1.0, %v3043_v2 }
 0x904   : > { %v3055_v24 = vmul.f32 %v3049_v1, %v2821_v34 }
 0x906   : > { %v3058_v35 = vpack.c.bf16 %v3055_v24, %v3054_v26 }
 0x908   : > { %3145 = vmatmul.bf16.gmra.mxu0 %v3058_v35 }
 0x94a   : > { %v3136_v52 = vpop.f32.mrf.mxu0 }
 0x94b   : > { %v3137_v56 = vadd.f32 %v3732_v47, %v3136_v52 }
 0x94d   : > { %v3151_v57 = vadd.f32 %v3137_v56, %v5147_v20 }
 0x94f   : > { %3157 = vst.msk [vmem:[#allocation2] sm:$0xff] %vm5519_vm13, %v3151_v57 }
 0x952   : > { %v3138_v25 = vpop.f32.mrf.mxu0 }
 0x953   : > { %v3139_v23 = vadd.f32 %v3732_v47, %v3138_v25 }
 0x955   : > { %v3152_v15 = vadd.f32 %v3139_v23, %v5151_v5 }
 0x957   : > { %3158 = vst.msk [vmem:[#allocation2 + $0x8] sm:$0xff] %vm5520_vm12, %v3152_v15 }
 0x975   : > { %v3141_v55 = vpop.f32.mrf.mxu0 }
 0x976   : > { %v3142_v30 = vadd.f32 %v3732_v47, %v3141_v55 }
 0x978   : > { %v3153_v40 = vadd.f32 %v3142_v30, %v5155_v51 }
 0x97a   : > { %3159 = vst.msk [vmem:[#allocation2 + $0x10] sm:$0xff] %vm5521_vm3, %v3153_v40 }
 0x97d   : > { %v3143_v63 = vpop.f32.mrf.mxu0 }
 0x97e   : > { %v3144_v48 = vadd.f32 %v3732_v47, %v3143_v63 }
 0x980   : > { %v3154_v16 = vadd.f32 %v3144_v48, %v5159_v38 }
 0x982   : > { %3160 = vst.msk [vmem:[#allocation2 + $0x18] sm:$0xff] %vm5522_vm2, %v3154_v16 }
 0x985   : > { %v3146_v20 = vpop.f32.mrf.mxu0 }
 0x986   : > { %v3147_v39 = vadd.f32 %v3732_v47, %v3146_v20 }
 0x988   : > { %v3155_v46 = vadd.f32 %v3147_v39, %v5163_v8 }
 0x98a   : > { %3161 = vst.msk [vmem:[#allocation2 + $0x20] sm:$0xff] %vm5523_vm15, %v3155_v46 }
 0x98d   : > { %v3148_v5 = vpop.f32.mrf.mxu0 }
 0x98e   : > { %v3149_v6 = vadd.f32 %v3732_v47, %v3148_v5  ;;  %3166 = sbr.rel (%p3592_p6) target bundleno = 2872 (0xb38), region = 104 }
 0x990   : > { %v3156_v0 = vadd.f32 %v3149_v6, %v5167_v36 }
 0x992   : > { %3162 = vst.msk [vmem:[#allocation2 + $0x28] sm:$0xff] %vm5524_vm0, %v3156_v0 }
 0x993   : > { %v3171_v51 = vrot.slane %v3154_v16, 7  ;;  %vm3172_vm7 = vcmask 1041409   ;;  %vm3175_vm10 = vcmask 254976   ;;  %v3631_v43 = vld [vmem:[%s5525_s29 + $0x8] sm:$0xff]  ;;  %v3630_v61 = vld [vmem:[%s5525_s29] sm:$0xff]  ;;  %vm5528_vm6 = vcmask 261120  }
 0x994   : > { %3262 = vmatpush.bf16.msra.mxu0 %v3631_v43  ;;  %v3885_v54 = vld [vmem:[%s5526_s5] ss:$0 sm:$0xff] }
 0x995   : > { %v3173_v38 = vsel %vm3172_vm7, %v3171_v51, %v3151_v57  ;;  %v3887_v1 = vld [vmem:[%s5529_s4] ss:$0 sm:$0xff] }
 0x996   : > { %v3176_v11 = vsel %vm3175_vm10, %v3173_v38, 0.0 }
 0x997   : > { %3177 = vadd.xlane.f32.xlu0 %v3176_v11 }
 0x998   : > { %3263 = vmatpush.bf16.msra.mxu0 %v3630_v61 }
 0xa0a   : > { %v3178_v62 = vpop.xlane.xlu0 %3177 }
 0xa0b   : > { %v3179_v8 = vmul.f32 %v3178_v62, %v4184_v42 }
 0xa0d   : > { %v3181_v49 = vrot.slane %v3179_v8, 1  ;;  %v3184_v10 = vsub.f32 %v3151_v57, %v3179_v8 }
 0xa0f   : > { %v3185_v27 = vsub.f32 %v3154_v16, %v3181_v49  ;;  %v3186_v36 = vmul.f32 %v3184_v10, %v3184_v10 }
 0xa11   : > { %v3187_v19 = vmul.f32 %v3185_v27, %v3185_v27 }
 0xa13   : > { %v3190_v9 = vrot.slane %v3187_v19, 7 }
 0xa15   : > { %v3191_v53 = vsel %vm3172_vm7, %v3190_v9, %v3186_v36 }
 0xa16   : > { %v3193_v59 = vsel %vm3175_vm10, %v3191_v53, 0.0 }
 0xa17   : > { %3194 = vadd.xlane.f32.xlu0 %v3193_v59 }
 0xa8a   : > { %v3195_v18 = vpop.xlane.xlu0 %3194 }
 0xa8b   : > { %v3196_v22 = vmul.f32 %v3195_v18, %v4184_v42  ;;  %v3886_v42 = vld [vmem:[%s5527_s6] ss:$0 sm:$0xff] }
 0xa8d   : > { %v3197_v14 = vadd.f32 1e-06, %v3196_v22 }
 0xa8f   : > { %3888 = vrsqrt.f32 %v3197_v14  ;;  %vm3204_vm9 = vweird.f32 %v3197_v14 }
 0xa95   : > { %v3889_v60 = vpop.eup %3888 }
 0xa96   : > { %v3199_v21 = vmul.f32 %v3889_v60, %v3197_v14  ;;  %vm3205_vm4 = vweird.f32 %v3889_v60 }
 0xa97   : > { %vm3206_vm5 = vmor %vm3204_vm9, %vm3205_vm4 }
 0xa98   : > { %v3200_v13 = vmul.f32 %v3889_v60, %v3199_v21 }
 0xa9a   : > { %v3201_v4 = vmul.f32 0.5, %v3200_v13 }
 0xa9c   : > { %v3202_v33 = vsub.f32 1.5, %v3201_v4 }
 0xa9e   : > { %v3203_v32 = vmul.f32 %v3889_v60, %v3202_v33 }
 0xaa0   : > { %v3207_v17 = vsel %vm3206_vm5, %v3889_v60, %v3203_v32 }
 0xaa1   : > { %v3209_v3 = vrot.slane %v3207_v17, 1  ;;  %v3212_v29 = vmul.f32 %v3207_v17, %v3184_v10 }
 0xaa3   : > { %v3213_v41 = vmul.f32 %v3209_v3, %v3185_v27  ;;  %v3217_v44 = vmul.f32 %v3885_v54, %v3212_v29 }
 0xaa5   : > { %v3218_v31 = vmul.f32 %v3885_v54, %v3213_v41  ;;  %v3222_v7 = vadd.f32 %v3886_v42, %v3217_v44 }
 0xaa7   : > { %v3223_v50 = vadd.f32 %v3886_v42, %v3218_v31  ;;  %v3224_v12 = vpack.c.bf16 %v3222_v7, %v3222_v7 }
 0xaa9   : > { %v3225_v28 = vpack.c.bf16 %v3223_v50, %v3223_v50  ;;  %v3236_v45 = vunpack.c.l.b16 %v3224_v12 }
 0xaab   : > { %v3237_v37 = vunpack.c.l.b16 %v3225_v28 }
 0xaad   : > { %v3238_v2 = vrot.slane %v3237_v37, 7 }
 0xaaf   : > { %v3239_v58 = vsel %vm3172_vm7, %v3238_v2, %v3236_v45 }
 0xab0   : > { %v3240_v34 = vpack.c.b16 %v3239_v58, %v3239_v58 }
 0xab2   : > { %3601 = vmatmul.msk.bf16.vlgmr.msra.gmra.mxu0 %vm5528_vm6, %v3240_v34 }
 0xb2f   : > { %v3265_v26 = vpop.f32.mrf.mxu0 }
 0xb30   : > { %v3266_v24 = vadd.f32 %v3887_v1, %v3265_v26 }
 0xb32   : > { %3269 = vst [vmem:[#allocation3] sm:$0x3] %v3266_v24 }
 0xb37   : > { %v3267_v35 = vpop.f32.mrf.mxu0 }
 0xb38 PF: > { %s5530_s21 = sld [smem:[#allocation7_spill]]  ;;  %s3955_s27 = smov [#allocation3]  }
 0xb39   : > { %s5532_s0 = sld [smem:[#allocation18_spill]]  ;;  %s3278_s23 = sshll.u32 %s3955_s27, 4  ;;  %s3279_s23 = int_to_ptr.vmem [resolvable:$true] %s3278_s23 }
 0xb3e   : > { %s5531_s11 = sadd.s32 4294967295, %s5530_s21  }
 0xb3f   : > { %p3644_p7 = scmp.eq.s32.totalorder %s5531_s11, 1  ;;  %s3280_s22 = sshll.u32 %s5532_s0, 4  ;;  %s3281_s22 = int_to_ptr.hbm [resolvable:$true] %s3280_s22 }
 0xb41   : > { %3641 = dma.vmem_to_hbm [thread:$0]  (%p3644_p7), %s3279_s23, 32, %s3281_s22, [#allocation4]  }
 0xb42   : > { %3931 = dma.done.wait (%p3644_p7), [#allocation4], 32  }
 0xb43   : > { %3933 = vsyncadd (%p3644_p7), [#allocation4], 4294967264 }
 0xb44 PF: > { %s5533_s19 = sld [smem:[#allocation7_spill]] }
 0xb45   : > { %s5534_s0 = sld [smem:[#allocation6_spill]] }
 0xb46   : > { %s5535_s30 = sld [smem:[#allocation8_spill]] }
 0xb4a   : > { %s30_s20 = sadd.s32 1, %s5533_s19  }
 0xb4b   : > { %p27_p8 = scmp.ge.s32.totalorder %s30_s20, 4  }
 0xb4d   :  { %29 = sbr.rel (!%p27_p8) target bundleno = 13 (0xd), region = 168 }
 0xb52   :  { %3294 = vsyncpa [#allocation4], 1 }
 0xb53   :  { %3296 = vsyncpa [#allocation4 + $0x1], 1 }

</bundles_post_ra>
